<compile_context>
chip_gen: v6e
topology: v6e:2x2x1
jax: 0.10.0
libtpu: 0.0.40
codegen_flags: <defaults>
</compile_context>

<pallas_src>
import functools

import jax
import jax.numpy as jnp
from jax.experimental import pallas as pl
from jax.experimental.pallas import tpu as pltpu


def decoder_kernel(tokens_ref, ctx_ref, enc_ref, mask_ref,
                   emb_ref, attn_wt_ref, attn_b_ref,
                   w_fused_ref, b_gate_ref,
                   slot_w_ref, slot_b_ref, cls_w_ref, cls_b_ref,
                   cls_cat_ref, cls_logit_ref, sf_logit_ref, sf_cat_ref,
                   *, T, D):
    f32 = jnp.float32
    enc = enc_ref[...]                       # (B, T, D)
    mask = mask_ref[...]                     # (B, T); 1.0 == padded position
    emb_table = emb_ref[...]                 # (V, E)
    w_fused = w_fused_ref[...]               # (E + 3D, 4D), gate cols [i, f, o, g]
    slot_w = slot_w_ref[...]                 # (2D, SF)

    B = enc.shape[0]
    V = emb_table.shape[0]
    SF = slot_w.shape[1]

    # ---------------- hoisted loop invariants ----------------
    NEG = jnp.float32(-1e12)
    mask_neg = mask * NEG                                       # additive mask (B, T)
    b_gate = jnp.broadcast_to(b_gate_ref[...], (B, 4 * D))      # (B, 4D)
    slot_b = jnp.broadcast_to(slot_b_ref[...], (B, SF))         # (B, SF)
    vocab_iota = jax.lax.broadcasted_iota(jnp.int32, (B, V), 1)

    # hoisted attention projection: encW[b,t,:] = enc[b,t,:] @ attn_W^T + attn_b
    encW = (jnp.dot(enc.reshape(B * T, D), attn_wt_ref[...],
                    preferred_element_type=f32)
            + attn_b_ref[...]).reshape(B, T, D)

    def bmv_enc_over_t(w_bt):   # (B,T) weights over T -> (B,D), batched MXU contraction
        return jnp.einsum('bst,btd->bsd', w_bt[:, None, :], enc,
                          preferred_element_type=f32)[:, 0, :]

    def attention(h):           # (B,D) hidden -> (B,D) context
        scores = jnp.einsum('bsd,btd->bst', h[:, None, :], encW,
                            preferred_element_type=f32)[:, 0, :] + mask_neg
        scores = scores - jnp.max(scores, axis=1, keepdims=True)
        p = jnp.exp(scores)
        alpha = p * pl.reciprocal(jnp.sum(p, axis=1, keepdims=True), approx=True)
        return bmv_enc_over_t(alpha)

    def embed_onehot(oh):       # (B,V) one-hot rows -> (B,E) gather as MXU matmul
        return jnp.dot(oh, emb_table, preferred_element_type=f32)

    # ---- classification heads: with zero hidden the attention softmax is
    #      exactly uniform over unmasked positions -> masked mean of enc.
    keep = 1.0 - mask
    cnt = jnp.maximum(jnp.sum(keep, axis=1, keepdims=True), 1.0)
    cls_ctx = bmv_enc_over_t(keep) * pl.reciprocal(cnt, approx=True)          # (B, D)
    cls_cat_ref[...] = jnp.concatenate([jnp.zeros((B, D), f32), cls_ctx], axis=1)
    # hidden half of the head weight multiplies zeros -> dropped in the wrapper
    cls_logit_ref[...] = (jnp.dot(cls_ctx, cls_w_ref[...],
                                  preferred_element_type=f32) + cls_b_ref[...])

    # ---------------- greedy decode loop (fully unrolled, T static) ----------------
    emb = embed_onehot((vocab_iota == tokens_ref[...]).astype(f32))           # (B, E)
    ctx = ctx_ref[...]                                                        # (B, D)
    h = jnp.zeros((B, D), f32)
    c = jnp.zeros((B, D), f32)
    sf_cats, sf_scores = [], []
    for i in range(T):
        aligned = enc[:, i, :]                                                # (B, D)
        x = jnp.concatenate([emb, ctx, aligned, h], axis=1)                   # (B, E+3D)
        gates = jnp.dot(x, w_fused, preferred_element_type=f32) + b_gate      # (B, 4D) [i,f,o,g]
        ifo = jax.nn.sigmoid(gates[:, :3 * D])     # one EUP push for i, f, o
        g_g = jnp.tanh(gates[:, 3 * D:])
        c = ifo[:, D:2 * D] * c + ifo[:, :D] * g_g
        h = ifo[:, 2 * D:] * jnp.tanh(c)

        concated = jnp.concatenate([h, ctx], axis=1)                          # (B, 2D), pre-update ctx
        score = jnp.dot(concated, slot_w, preferred_element_type=f32) + slot_b
        sf_cats.append(concated)
        sf_scores.append(score)

        # greedy feedback: single max-reduce one-hot straight into the embedding
        # matmul (log_softmax is monotone so argmax is on raw scores).
        # TODO(synk): on exact score ties this sums the tied embedding rows instead
        # of picking the first index like torch.max (measure-zero with real scores).
        mx = jnp.max(score, axis=1, keepdims=True)
        oh = (score == mx).astype(f32)                                        # (B, SF)
        if V > SF:
            oh = jnp.pad(oh, ((0, 0), (0, V - SF)))
        emb = embed_onehot(oh)
        ctx = attention(h)

    # single lane-dense store per output, already in final (B, T*width) layout
    sf_cat_ref[...] = jnp.concatenate(sf_cats, axis=1)                        # (B, T*2D)
    sf_logit_ref[...] = jnp.concatenate(sf_scores, axis=1)                    # (B, T*SF)


def decoder_forward(params, tokens, context, enc_out, enc_mask):
    B, T, D = enc_out.shape
    V, _E = params["embedding"].shape
    SF = params["slot_w"].shape[0]
    ID = params["int_w"].shape[0]
    DX = params["dom_w"].shape[0]
    assert V >= SF, "greedy slot feedback requires embedding vocab >= sf head width"

    def pack_gates(w):          # (4D, IN) torch rows [i,f,g,o] -> (IN, 4D) cols [i,f,o,g]
        n_in = w.shape[1]
        wt = jnp.transpose(w).reshape(n_in, 4, D)
        wt = wt[:, jnp.array([0, 1, 3, 2]), :]
        return wt.reshape(n_in, 4 * D)

    # fused LSTM weight: gates = [emb | ctx | aligned | h] @ W_fused + b_gate
    w_fused = jnp.concatenate([pack_gates(params["w_ih"]),
                               pack_gates(params["w_hh"])], axis=0)           # (E+3D, 4D)
    b_gate = (params["b_ih"] + params["b_hh"]).reshape(1, 4, D)
    b_gate = b_gate[:, jnp.array([0, 1, 3, 2]), :].reshape(1, 4 * D)

    # fused [domain | intent] head, keeping only the context half (hidden half is zero)
    cls_w = jnp.concatenate([params["dom_w"].T[D:], params["int_w"].T[D:]], axis=1)  # (D, DX+ID)
    cls_b = jnp.concatenate([params["dom_b"], params["int_b"]], axis=1)              # (1, DX+ID)

    ctx2d = context.reshape(B, D)
    vmem = functools.partial(pl.BlockSpec, memory_space=pltpu.MemorySpace.VMEM)

    out_shape = (
        jax.ShapeDtypeStruct((B, 2 * D), jnp.float32),       # cls concat (before dc/id)
        jax.ShapeDtypeStruct((B, DX + ID), jnp.float32),     # fused [dc | id] logits
        jax.ShapeDtypeStruct((B, T * SF), jnp.float32),      # slot logits, final layout
        jax.ShapeDtypeStruct((B, T * 2 * D), jnp.float32),   # slot before-logits, final layout
    )
    kern = functools.partial(decoder_kernel, T=T, D=D)
    cls_cat, cls_log, sf_logits, sf_before = pl.pallas_call(
        kern,
        out_shape=out_shape,
        in_specs=[vmem() for _ in range(13)],
        out_specs=tuple(vmem() for _ in range(4)),
    )(tokens.astype(jnp.int32), ctx2d, enc_out, enc_mask.astype(jnp.float32),
      params["embedding"], params["attn_w"].T, params["attn_b"],
      w_fused, b_gate,
      params["slot_w"].T, params["slot_b"], cls_w, cls_b)

    dc = cls_log[:, :DX]
    idl = cls_log[:, DX:DX + ID]
    before_logits = {"dc": cls_cat, "id": cls_cat, "sf": sf_before}
    logits = {"dc": dc, "id": idl, "sf": sf_logits}
    return before_logits, logits


def init_params(key, V, E, D, sf, idn, dx):
    ks = jax.random.split(key, 13)

    def unif(k, shape, a):
        return jax.random.uniform(k, shape, jnp.float32, -a, a)

    s_lin = 1.0 / (D ** 0.5)
    s_head = 1.0 / ((2 * D) ** 0.5)
    lstm_in = E + 2 * D
    return {
        "embedding": unif(ks[0], (V, E), 0.1),                 # init_weights(): U(-0.1, 0.1)
        "attn_w": unif(ks[1], (D, D), s_lin),                  # nn.Linear(D, D)
        "attn_b": unif(ks[2], (1, D), s_lin),
        "w_ih": unif(ks[3], (4 * D, lstm_in), s_lin),          # nn.LSTM gates (i,f,g,o)
        "w_hh": unif(ks[4], (4 * D, D), s_lin),
        "b_ih": unif(ks[5], (1, 4 * D), s_lin),
        "b_hh": unif(ks[6], (1, 4 * D), s_lin),
        "slot_w": unif(ks[7], (sf, 2 * D), s_head),            # nn.Linear(2D, sf)
        "slot_b": unif(ks[8], (1, sf), s_head),
        "int_w": unif(ks[9], (idn, 2 * D), s_head),            # nn.Linear(2D, id)
        "int_b": unif(ks[10], (1, idn), s_head),
        "dom_w": unif(ks[11], (dx, 2 * D), s_head),            # nn.Linear(2D, dx)
        "dom_b": unif(ks[12], (1, dx), s_head),
    }


if __name__ == "__main__":
    B, T, D, E = 4, 8, 32, 16
    head_cfg = {"sf": 8, "id": 5, "dx": 3}
    # TODO(synk): self.slot_size is undefined in the reference __init__; we set it to
    # head_cfg['sf'] since greedy slot predictions are fed back through the embedding.
    V = head_cfg["sf"]

    key = jax.random.PRNGKey(0)
    kp, kt, kc, ke = jax.random.split(key, 4)
    params = init_params(kp, V, E, D, head_cfg["sf"], head_cfg["id"], head_cfg["dx"])

    tokens = jax.random.randint(kt, (B, 1), 0, V, dtype=jnp.int32)       # input : B, L=1
    context = jax.random.normal(kc, (B, 1, D), jnp.float32)              # enc_context : B, 1, D
    enc_out = jax.random.normal(ke, (B, T, D), jnp.float32)              # encoder_outputs : B, T, D
    # encoder_maskings (1.0 == padded position, masked_fill with -1e12)
    lens = jnp.array([[T], [T - 2], [T - 1], [T - 3]], jnp.int32)
    enc_mask = (jax.lax.broadcasted_iota(jnp.int32, (B, T), 1) >= lens).astype(jnp.float32)

    before_logits, logits = decoder_forward(params, tokens, context, enc_out, enc_mask)
    jax.tree_util.tree_map(jax.block_until_ready, (before_logits, logits))

    assert logits["dc"].shape == (B, head_cfg["dx"])
    assert logits["id"].shape == (B, head_cfg["id"])
    assert logits["sf"].shape == (B, T * head_cfg["sf"])
    assert before_logits["dc"].shape == (B, 2 * D)
    assert before_logits["sf"].shape == (B, T * 2 * D)
    finite = all(bool(jnp.all(jnp.isfinite(v))) for v in
                 [logits["dc"], logits["id"], logits["sf"],
                  before_logits["dc"], before_logits["sf"]])
    assert finite
    print("KERNEL_OK")
</pallas_src>

<mosaic_0001>
module attributes {stable_mosaic.version = 11 : i64} {
  func.func @decoder_kernel(%arg0: memref<4x1xi32, #tpu.memory_space<vmem>>, %arg1: memref<4x32xf32, #tpu.memory_space<vmem>>, %arg2: memref<4x8x32xf32, #tpu.memory_space<vmem>>, %arg3: memref<4x8xf32, #tpu.memory_space<vmem>>, %arg4: memref<8x16xf32, #tpu.memory_space<vmem>>, %arg5: memref<32x32xf32, #tpu.memory_space<vmem>>, %arg6: memref<1x32xf32, #tpu.memory_space<vmem>>, %arg7: memref<112x128xf32, #tpu.memory_space<vmem>>, %arg8: memref<1x128xf32, #tpu.memory_space<vmem>>, %arg9: memref<64x8xf32, #tpu.memory_space<vmem>>, %arg10: memref<1x8xf32, #tpu.memory_space<vmem>>, %arg11: memref<32x8xf32, #tpu.memory_space<vmem>>, %arg12: memref<1x8xf32, #tpu.memory_space<vmem>>, %arg13: memref<4x64xf32, #tpu.memory_space<vmem>>, %arg14: memref<4x8xf32, #tpu.memory_space<vmem>>, %arg15: memref<4x64xf32, #tpu.memory_space<vmem>>, %arg16: memref<4x512xf32, #tpu.memory_space<vmem>>) attributes {dimension_semantics = [], scalar_prefetch = 0 : i64, scratch_operands = 0 : i64, tpu.core_type = #tpu.core_type<tc>} {
    %c0 = arith.constant 0 : index
    %c0_0 = arith.constant 0 : index
    %c0_1 = arith.constant 0 : index
    %0 = vector.load %arg2[%c0, %c0_0, %c0_1] : memref<4x8x32xf32, #tpu.memory_space<vmem>>, vector<4x8x32xf32>
    %c0_2 = arith.constant 0 : index
    %c0_3 = arith.constant 0 : index
    %1 = vector.load %arg3[%c0_2, %c0_3] : memref<4x8xf32, #tpu.memory_space<vmem>>, vector<4x8xf32>
    %c0_4 = arith.constant 0 : index
    %c0_5 = arith.constant 0 : index
    %2 = vector.load %arg4[%c0_4, %c0_5] : memref<8x16xf32, #tpu.memory_space<vmem>>, vector<8x16xf32>
    %c0_6 = arith.constant 0 : index
    %c0_7 = arith.constant 0 : index
    %3 = vector.load %arg7[%c0_6, %c0_7] : memref<112x128xf32, #tpu.memory_space<vmem>>, vector<112x128xf32>
    %c0_8 = arith.constant 0 : index
    %c0_9 = arith.constant 0 : index
    %4 = vector.load %arg9[%c0_8, %c0_9] : memref<64x8xf32, #tpu.memory_space<vmem>>, vector<64x8xf32>
    %cst = arith.constant -9.99999995E+11 : f32
    %5 = vector.broadcast %cst : f32 to vector<4x8xf32>
    %6 = arith.mulf %1, %5 : vector<4x8xf32>
    %c0_10 = arith.constant 0 : index
    %c0_11 = arith.constant 0 : index
    %7 = vector.load %arg8[%c0_10, %c0_11] : memref<1x128xf32, #tpu.memory_space<vmem>>, vector<1x128xf32>
    %8 = vector.shape_cast %7 : vector<1x128xf32> to vector<1x128xf32>
    %9 = vector.broadcast %8 : vector<1x128xf32> to vector<4x128xf32>
    %c0_12 = arith.constant 0 : index
    %c0_13 = arith.constant 0 : index
    %10 = vector.load %arg10[%c0_12, %c0_13] : memref<1x8xf32, #tpu.memory_space<vmem>>, vector<1x8xf32>
    %11 = vector.shape_cast %10 : vector<1x8xf32> to vector<1x8xf32>
    %12 = vector.broadcast %11 : vector<1x8xf32> to vector<4x8xf32>
    %13 = tpu.iota {dimensions = array<i32: 1>} : vector<4x8xi32>
    %14 = vector.shape_cast %0 : vector<4x8x32xf32> to vector<32x32xf32>
    %c0_14 = arith.constant 0 : index
    %c0_15 = arith.constant 0 : index
    %15 = vector.load %arg5[%c0_14, %c0_15] : memref<32x32xf32, #tpu.memory_space<vmem>>, vector<32x32xf32>
    %cst_16 = arith.constant dense<0.000000e+00> : vector<32x32xf32>
    %16 = tpu.matmul %14, %15, %cst_16 {dimension_numbers = #tpu.dot_dimension_numbers<[1], [0], [0], [1], [0, 0, 1, 1], [], []>} : vector<32x32xf32>, vector<32x32xf32>, vector<32x32xf32> -> vector<32x32xf32>
    %c0_17 = arith.constant 0 : index
    %c0_18 = arith.constant 0 : index
    %17 = vector.load %arg6[%c0_17, %c0_18] : memref<1x32xf32, #tpu.memory_space<vmem>>, vector<1x32xf32>
    %18 = vector.broadcast %17 : vector<1x32xf32> to vector<32x32xf32>
    %19 = arith.addf %16, %18 : vector<32x32xf32>
    %20 = vector.shape_cast %19 : vector<32x32xf32> to vector<4x8x32xf32>
    %cst_19 = arith.constant 1.000000e+00 : f32
    %21 = vector.broadcast %cst_19 : f32 to vector<4x8xf32>
    %22 = arith.subf %21, %1 : vector<4x8xf32>
    %cst_20 = arith.constant dense<0.000000e+00> : vector<4xf32>
    %23 = vector.multi_reduction <add>, %22, %cst_20 [1] : vector<4x8xf32> to vector<4xf32>
    %24 = vector.shape_cast %23 : vector<4xf32> to vector<4x1xf32>
    %cst_21 = arith.constant 1.000000e+00 : f32
    %25 = vector.broadcast %cst_21 : f32 to vector<4x1xf32>
    %26 = arith.maximumf %24, %25 : vector<4x1xf32>
    %27 = vector.shape_cast %22 : vector<4x8xf32> to vector<4x1x8xf32>
    "tpu.trace_start"() <{level = 10 : i32, message = "bst,btd->bsd"}> : () -> ()
    %cst_22 = arith.constant dense<0.000000e+00> : vector<4x1x32xf32>
    %28 = tpu.matmul %27, %0, %cst_22 {dimension_numbers = #tpu.dot_dimension_numbers<[2], [1], [1], [2], [0, 0, 0, 1, 1, 2], [0], [0]>} : vector<4x1x8xf32>, vector<4x8x32xf32>, vector<4x1x32xf32> -> vector<4x1x32xf32>
    "tpu.trace_stop"() : () -> ()
    %29 = vector.shape_cast %28 : vector<4x1x32xf32> to vector<4x32xf32>
    %30 = tpu.reciprocal %26 {approx = true} : vector<4x1xf32> -> vector<4x1xf32>
    %31 = vector.broadcast %30 : vector<4x1xf32> to vector<4x32xf32>
    %32 = arith.mulf %29, %31 : vector<4x32xf32>
    %cst_23 = arith.constant 0.000000e+00 : f32
    %33 = vector.broadcast %cst_23 : f32 to vector<4x32xf32>
    %34 = tpu.concatenate %33, %32 in 1 : vector<4x32xf32>, vector<4x32xf32> -> vector<4x64xf32>
    %c0_24 = arith.constant 0 : index
    %c0_25 = arith.constant 0 : index
    %35 = vector.load %arg13[%c0_24, %c0_25] : memref<4x64xf32, #tpu.memory_space<vmem>>, vector<4x64xf32>
    tpu.vector_store %arg13[%c0_24, %c0_25], %34 {strides = array<i32>} : memref<4x64xf32, #tpu.memory_space<vmem>>, vector<4x64xf32>,
    %c0_26 = arith.constant 0 : index
    %c0_27 = arith.constant 0 : index
    %36 = vector.load %arg11[%c0_26, %c0_27] : memref<32x8xf32, #tpu.memory_space<vmem>>, vector<32x8xf32>
    %cst_28 = arith.constant dense<0.000000e+00> : vector<4x8xf32>
    %37 = tpu.matmul %32, %36, %cst_28 {dimension_numbers = #tpu.dot_dimension_numbers<[1], [0], [0], [1], [0, 0, 1, 1], [], []>} : vector<4x32xf32>, vector<32x8xf32>, vector<4x8xf32> -> vector<4x8xf32>
    %c0_29 = arith.constant 0 : index
    %c0_30 = arith.constant 0 : index
    %38 = vector.load %arg12[%c0_29, %c0_30] : memref<1x8xf32, #tpu.memory_space<vmem>>, vector<1x8xf32>
    %39 = vector.broadcast %38 : vector<1x8xf32> to vector<4x8xf32>
    %40 = arith.addf %37, %39 : vector<4x8xf32>
    %c0_31 = arith.constant 0 : index
    %c0_32 = arith.constant 0 : index
    %41 = vector.load %arg14[%c0_31, %c0_32] : memref<4x8xf32, #tpu.memory_space<vmem>>, vector<4x8xf32>
    tpu.vector_store %arg14[%c0_31, %c0_32], %40 {strides = array<i32>} : memref<4x8xf32, #tpu.memory_space<vmem>>, vector<4x8xf32>,
    %c0_33 = arith.constant 0 : index
    %c0_34 = arith.constant 0 : index
    %42 = vector.load %arg0[%c0_33, %c0_34] : memref<4x1xi32, #tpu.memory_space<vmem>>, vector<4x1xi32>
    %43 = vector.broadcast %42 : vector<4x1xi32> to vector<4x8xi32>
    %44 = arith.cmpi eq, %13, %43 : vector<4x8xi32>
    %45 = arith.extui %44 : vector<4x8xi1> to vector<4x8xi32>
    %46 = arith.sitofp %45 : vector<4x8xi32> to vector<4x8xf32>
    %cst_35 = arith.constant dense<0.000000e+00> : vector<4x16xf32>
    %47 = tpu.matmul %46, %2, %cst_35 {dimension_numbers = #tpu.dot_dimension_numbers<[1], [0], [0], [1], [0, 0, 1, 1], [], []>} : vector<4x8xf32>, vector<8x16xf32>, vector<4x16xf32> -> vector<4x16xf32>
    %c0_36 = arith.constant 0 : index
    %c0_37 = arith.constant 0 : index
    %48 = vector.load %arg1[%c0_36, %c0_37] : memref<4x32xf32, #tpu.memory_space<vmem>>, vector<4x32xf32>
    %cst_38 = arith.constant 0.000000e+00 : f32
    %49 = vector.broadcast %cst_38 : f32 to vector<4x32xf32>
    %cst_39 = arith.constant 0.000000e+00 : f32
    %50 = vector.broadcast %cst_39 : f32 to vector<4x32xf32>
    %51 = vector.extract_strided_slice %0 {offsets = [0, 0, 0], sizes = [4, 1, 32], strides = [1, 1, 1]} : vector<4x8x32xf32> to vector<4x1x32xf32>
    %52 = vector.shape_cast %51 : vector<4x1x32xf32> to vector<4x32xf32>
    %53 = tpu.concatenate %47, %48, %52, %49 in 1 : vector<4x16xf32>, vector<4x32xf32>, vector<4x32xf32>, vector<4x32xf32> -> vector<4x112xf32>
    %cst_40 = arith.constant dense<0.000000e+00> : vector<4x128xf32>
    %54 = tpu.matmul %53, %3, %cst_40 {dimension_numbers = #tpu.dot_dimension_numbers<[1], [0], [0], [1], [0, 0, 1, 1], [], []>} : vector<4x112xf32>, vector<112x128xf32>, vector<4x128xf32> -> vector<4x128xf32>
    %55 = arith.addf %54, %9 : vector<4x128xf32>
    %56 = vector.extract_strided_slice %55 {offsets = [0, 0], sizes = [4, 96], strides = [1, 1]} : vector<4x128xf32> to vector<4x96xf32>
    %57 = arith.negf %56 : vector<4x96xf32>
    %58 = math.exp %57 : vector<4x96xf32>
    %cst_41 = arith.constant 1.000000e+00 : f32
    %59 = vector.broadcast %cst_41 : f32 to vector<4x96xf32>
    %60 = arith.addf %59, %58 : vector<4x96xf32>
    %61 = arith.divf %59, %60 : vector<4x96xf32>
    %62 = vector.extract_strided_slice %55 {offsets = [0, 96], sizes = [4, 32], strides = [1, 1]} : vector<4x128xf32> to vector<4x32xf32>
    %63 = math.tanh %62 : vector<4x32xf32>
    %64 = vector.extract_strided_slice %61 {offsets = [0, 32], sizes = [4, 32], strides = [1, 1]} : vector<4x96xf32> to vector<4x32xf32>
    %65 = arith.mulf %64, %50 : vector<4x32xf32>
    %66 = vector.extract_strided_slice %61 {offsets = [0, 0], sizes = [4, 32], strides = [1, 1]} : vector<4x96xf32> to vector<4x32xf32>
    %67 = arith.mulf %66, %63 : vector<4x32xf32>
    %68 = arith.addf %65, %67 : vector<4x32xf32>
    %69 = vector.extract_strided_slice %61 {offsets = [0, 64], sizes = [4, 32], strides = [1, 1]} : vector<4x96xf32> to vector<4x32xf32>
    %70 = math.tanh %68 : vector<4x32xf32>
    %71 = arith.mulf %69, %70 : vector<4x32xf32>
    %72 = tpu.concatenate %71, %48 in 1 : vector<4x32xf32>, vector<4x32xf32> -> vector<4x64xf32>
    %cst_42 = arith.constant dense<0.000000e+00> : vector<4x8xf32>
    %73 = tpu.matmul %72, %4, %cst_42 {dimension_numbers = #tpu.dot_dimension_numbers<[1], [0], [0], [1], [0, 0, 1, 1], [], []>} : vector<4x64xf32>, vector<64x8xf32>, vector<4x8xf32> -> vector<4x8xf32>
    %74 = arith.addf %73, %12 : vector<4x8xf32>
    %cst_43 = arith.constant dense<0xFF800000> : vector<4xf32>
    %75 = vector.multi_reduction <maximumf>, %74, %cst_43 [1] : vector<4x8xf32> to vector<4xf32>
    %76 = vector.shape_cast %75 : vector<4xf32> to vector<4x1xf32>
    %77 = vector.broadcast %76 : vector<4x1xf32> to vector<4x8xf32>
    %78 = arith.cmpf oeq, %74, %77 : vector<4x8xf32>
    %79 = arith.extui %78 : vector<4x8xi1> to vector<4x8xi32>
    %80 = arith.sitofp %79 : vector<4x8xi32> to vector<4x8xf32>
    %cst_44 = arith.constant dense<0.000000e+00> : vector<4x16xf32>
    %81 = tpu.matmul %80, %2, %cst_44 {dimension_numbers = #tpu.dot_dimension_numbers<[1], [0], [0], [1], [0, 0, 1, 1], [], []>} : vector<4x8xf32>, vector<8x16xf32>, vector<4x16xf32> -> vector<4x16xf32>
    %82 = vector.shape_cast %71 : vector<4x32xf32> to vector<4x1x32xf32>
    "tpu.trace_start"() <{level = 10 : i32, message = "bsd,btd->bst"}> : () -> ()
    %cst_45 = arith.constant dense<0.000000e+00> : vector<4x1x8xf32>
    %83 = tpu.matmul %82, %20, %cst_45 {dimension_numbers = #tpu.dot_dimension_numbers<[2], [2], [1], [1], [0, 0, 0, 1, 1, 1], [0], [0]>} : vector<4x1x32xf32>, vector<4x8x32xf32>, vector<4x1x8xf32> -> vector<4x1x8xf32>
    "tpu.trace_stop"() : () -> ()
    %84 = vector.shape_cast %83 : vector<4x1x8xf32> to vector<4x8xf32>
    %85 = arith.addf %84, %6 : vector<4x8xf32>
    %cst_46 = arith.constant dense<0xFF800000> : vector<4xf32>
    %86 = vector.multi_reduction <maximumf>, %85, %cst_46 [1] : vector<4x8xf32> to vector<4xf32>
    %87 = vector.shape_cast %86 : vector<4xf32> to vector<4x1xf32>
    %88 = vector.broadcast %87 : vector<4x1xf32> to vector<4x8xf32>
    %89 = arith.subf %85, %88 : vector<4x8xf32>
    %90 = math.exp %89 : vector<4x8xf32>
    %cst_47 = arith.constant dense<0.000000e+00> : vector<4xf32>
    %91 = vector.multi_reduction <add>, %90, %cst_47 [1] : vector<4x8xf32> to vector<4xf32>
    %92 = vector.shape_cast %91 : vector<4xf32> to vector<4x1xf32>
    %93 = tpu.reciprocal %92 {approx = true} : vector<4x1xf32> -> vector<4x1xf32>
    %94 = vector.broadcast %93 : vector<4x1xf32> to vector<4x8xf32>
    %95 = arith.mulf %90, %94 : vector<4x8xf32>
    %96 = vector.shape_cast %95 : vector<4x8xf32> to vector<4x1x8xf32>
    "tpu.trace_start"() <{level = 10 : i32, message = "bst,btd->bsd"}> : () -> ()
    %cst_48 = arith.constant dense<0.000000e+00> : vector<4x1x32xf32>
    %97 = tpu.matmul %96, %0, %cst_48 {dimension_numbers = #tpu.dot_dimension_numbers<[2], [1], [1], [2], [0, 0, 0, 1, 1, 2], [0], [0]>} : vector<4x1x8xf32>, vector<4x8x32xf32>, vector<4x1x32xf32> -> vector<4x1x32xf32>
    "tpu.trace_stop"() : () -> ()
    %98 = vector.shape_cast %97 : vector<4x1x32xf32> to vector<4x32xf32>
    %99 = vector.extract_strided_slice %0 {offsets = [0, 1, 0], sizes = [4, 1, 32], strides = [1, 1, 1]} : vector<4x8x32xf32> to vector<4x1x32xf32>
    %100 = vector.shape_cast %99 : vector<4x1x32xf32> to vector<4x32xf32>
    %101 = tpu.concatenate %81, %98, %100, %71 in 1 : vector<4x16xf32>, vector<4x32xf32>, vector<4x32xf32>, vector<4x32xf32> -> vector<4x112xf32>
    %cst_49 = arith.constant dense<0.000000e+00> : vector<4x128xf32>
    %102 = tpu.matmul %101, %3, %cst_49 {dimension_numbers = #tpu.dot_dimension_numbers<[1], [0], [0], [1], [0, 0, 1, 1], [], []>} : vector<4x112xf32>, vector<112x128xf32>, vector<4x128xf32> -> vector<4x128xf32>
    %103 = arith.addf %102, %9 : vector<4x128xf32>
    %104 = vector.extract_strided_slice %103 {offsets = [0, 0], sizes = [4, 96], strides = [1, 1]} : vector<4x128xf32> to vector<4x96xf32>
    %105 = arith.negf %104 : vector<4x96xf32>
    %106 = math.exp %105 : vector<4x96xf32>
    %cst_50 = arith.constant 1.000000e+00 : f32
    %107 = vector.broadcast %cst_50 : f32 to vector<4x96xf32>
    %108 = arith.addf %107, %106 : vector<4x96xf32>
    %109 = arith.divf %107, %108 : vector<4x96xf32>
    %110 = vector.extract_strided_slice %103 {offsets = [0, 96], sizes = [4, 32], strides = [1, 1]} : vector<4x128xf32> to vector<4x32xf32>
    %111 = math.tanh %110 : vector<4x32xf32>
    %112 = vector.extract_strided_slice %109 {offsets = [0, 32], sizes = [4, 32], strides = [1, 1]} : vector<4x96xf32> to vector<4x32xf32>
    %113 = arith.mulf %112, %68 : vector<4x32xf32>
    %114 = vector.extract_strided_slice %109 {offsets = [0, 0], sizes = [4, 32], strides = [1, 1]} : vector<4x96xf32> to vector<4x32xf32>
    %115 = arith.mulf %114, %111 : vector<4x32xf32>
    %116 = arith.addf %113, %115 : vector<4x32xf32>
    %117 = vector.extract_strided_slice %109 {offsets = [0, 64], sizes = [4, 32], strides = [1, 1]} : vector<4x96xf32> to vector<4x32xf32>
    %118 = math.tanh %116 : vector<4x32xf32>
    %119 = arith.mulf %117, %118 : vector<4x32xf32>
    %120 = tpu.concatenate %119, %98 in 1 : vector<4x32xf32>, vector<4x32xf32> -> vector<4x64xf32>
    %cst_51 = arith.constant dense<0.000000e+00> : vector<4x8xf32>
    %121 = tpu.matmul %120, %4, %cst_51 {dimension_numbers = #tpu.dot_dimension_numbers<[1], [0], [0], [1], [0, 0, 1, 1], [], []>} : vector<4x64xf32>, vector<64x8xf32>, vector<4x8xf32> -> vector<4x8xf32>
    %122 = arith.addf %121, %12 : vector<4x8xf32>
    %cst_52 = arith.constant dense<0xFF800000> : vector<4xf32>
    %123 = vector.multi_reduction <maximumf>, %122, %cst_52 [1] : vector<4x8xf32> to vector<4xf32>
    %124 = vector.shape_cast %123 : vector<4xf32> to vector<4x1xf32>
    %125 = vector.broadcast %124 : vector<4x1xf32> to vector<4x8xf32>
    %126 = arith.cmpf oeq, %122, %125 : vector<4x8xf32>
    %127 = arith.extui %126 : vector<4x8xi1> to vector<4x8xi32>
    %128 = arith.sitofp %127 : vector<4x8xi32> to vector<4x8xf32>
    %cst_53 = arith.constant dense<0.000000e+00> : vector<4x16xf32>
    %129 = tpu.matmul %128, %2, %cst_53 {dimension_numbers = #tpu.dot_dimension_numbers<[1], [0], [0], [1], [0, 0, 1, 1], [], []>} : vector<4x8xf32>, vector<8x16xf32>, vector<4x16xf32> -> vector<4x16xf32>
    %130 = vector.shape_cast %119 : vector<4x32xf32> to vector<4x1x32xf32>
    "tpu.trace_start"() <{level = 10 : i32, message = "bsd,btd->bst"}> : () -> ()
    %cst_54 = arith.constant dense<0.000000e+00> : vector<4x1x8xf32>
    %131 = tpu.matmul %130, %20, %cst_54 {dimension_numbers = #tpu.dot_dimension_numbers<[2], [2], [1], [1], [0, 0, 0, 1, 1, 1], [0], [0]>} : vector<4x1x32xf32>, vector<4x8x32xf32>, vector<4x1x8xf32> -> vector<4x1x8xf32>
    "tpu.trace_stop"() : () -> ()
    %132 = vector.shape_cast %131 : vector<4x1x8xf32> to vector<4x8xf32>
    %133 = arith.addf %132, %6 : vector<4x8xf32>
    %cst_55 = arith.constant dense<0xFF800000> : vector<4xf32>
    %134 = vector.multi_reduction <maximumf>, %133, %cst_55 [1] : vector<4x8xf32> to vector<4xf32>
    %135 = vector.shape_cast %134 : vector<4xf32> to vector<4x1xf32>
    %136 = vector.broadcast %135 : vector<4x1xf32> to vector<4x8xf32>
    %137 = arith.subf %133, %136 : vector<4x8xf32>
    %138 = math.exp %137 : vector<4x8xf32>
    %cst_56 = arith.constant dense<0.000000e+00> : vector<4xf32>
    %139 = vector.multi_reduction <add>, %138, %cst_56 [1] : vector<4x8xf32> to vector<4xf32>
    %140 = vector.shape_cast %139 : vector<4xf32> to vector<4x1xf32>
    %141 = tpu.reciprocal %140 {approx = true} : vector<4x1xf32> -> vector<4x1xf32>
    %142 = vector.broadcast %141 : vector<4x1xf32> to vector<4x8xf32>
    %143 = arith.mulf %138, %142 : vector<4x8xf32>
    %144 = vector.shape_cast %143 : vector<4x8xf32> to vector<4x1x8xf32>
    "tpu.trace_start"() <{level = 10 : i32, message = "bst,btd->bsd"}> : () -> ()
    %cst_57 = arith.constant dense<0.000000e+00> : vector<4x1x32xf32>
    %145 = tpu.matmul %144, %0, %cst_57 {dimension_numbers = #tpu.dot_dimension_numbers<[2], [1], [1], [2], [0, 0, 0, 1, 1, 2], [0], [0]>} : vector<4x1x8xf32>, vector<4x8x32xf32>, vector<4x1x32xf32> -> vector<4x1x32xf32>
    "tpu.trace_stop"() : () -> ()
    %146 = vector.shape_cast %145 : vector<4x1x32xf32> to vector<4x32xf32>
    %147 = vector.extract_strided_slice %0 {offsets = [0, 2, 0], sizes = [4, 1, 32], strides = [1, 1, 1]} : vector<4x8x32xf32> to vector<4x1x32xf32>
    %148 = vector.shape_cast %147 : vector<4x1x32xf32> to vector<4x32xf32>
    %149 = tpu.concatenate %129, %146, %148, %119 in 1 : vector<4x16xf32>, vector<4x32xf32>, vector<4x32xf32>, vector<4x32xf32> -> vector<4x112xf32>
    %cst_58 = arith.constant dense<0.000000e+00> : vector<4x128xf32>
    %150 = tpu.matmul %149, %3, %cst_58 {dimension_numbers = #tpu.dot_dimension_numbers<[1], [0], [0], [1], [0, 0, 1, 1], [], []>} : vector<4x112xf32>, vector<112x128xf32>, vector<4x128xf32> -> vector<4x128xf32>
    %151 = arith.addf %150, %9 : vector<4x128xf32>
    %152 = vector.extract_strided_slice %151 {offsets = [0, 0], sizes = [4, 96], strides = [1, 1]} : vector<4x128xf32> to vector<4x96xf32>
    %153 = arith.negf %152 : vector<4x96xf32>
    %154 = math.exp %153 : vector<4x96xf32>
    %cst_59 = arith.constant 1.000000e+00 : f32
    %155 = vector.broadcast %cst_59 : f32 to vector<4x96xf32>
    %156 = arith.addf %155, %154 : vector<4x96xf32>
    %157 = arith.divf %155, %156 : vector<4x96xf32>
    %158 = vector.extract_strided_slice %151 {offsets = [0, 96], sizes = [4, 32], strides = [1, 1]} : vector<4x128xf32> to vector<4x32xf32>
    %159 = math.tanh %158 : vector<4x32xf32>
    %160 = vector.extract_strided_slice %157 {offsets = [0, 32], sizes = [4, 32], strides = [1, 1]} : vector<4x96xf32> to vector<4x32xf32>
    %161 = arith.mulf %160, %116 : vector<4x32xf32>
    %162 = vector.extract_strided_slice %157 {offsets = [0, 0], sizes = [4, 32], strides = [1, 1]} : vector<4x96xf32> to vector<4x32xf32>
    %163 = arith.mulf %162, %159 : vector<4x32xf32>
    %164 = arith.addf %161, %163 : vector<4x32xf32>
    %165 = vector.extract_strided_slice %157 {offsets = [0, 64], sizes = [4, 32], strides = [1, 1]} : vector<4x96xf32> to vector<4x32xf32>
    %166 = math.tanh %164 : vector<4x32xf32>
    %167 = arith.mulf %165, %166 : vector<4x32xf32>
    %168 = tpu.concatenate %167, %146 in 1 : vector<4x32xf32>, vector<4x32xf32> -> vector<4x64xf32>
    %cst_60 = arith.constant dense<0.000000e+00> : vector<4x8xf32>
    %169 = tpu.matmul %168, %4, %cst_60 {dimension_numbers = #tpu.dot_dimension_numbers<[1], [0], [0], [1], [0, 0, 1, 1], [], []>} : vector<4x64xf32>, vector<64x8xf32>, vector<4x8xf32> -> vector<4x8xf32>
    %170 = arith.addf %169, %12 : vector<4x8xf32>
    %cst_61 = arith.constant dense<0xFF800000> : vector<4xf32>
    %171 = vector.multi_reduction <maximumf>, %170, %cst_61 [1] : vector<4x8xf32> to vector<4xf32>
    %172 = vector.shape_cast %171 : vector<4xf32> to vector<4x1xf32>
    %173 = vector.broadcast %172 : vector<4x1xf32> to vector<4x8xf32>
    %174 = arith.cmpf oeq, %170, %173 : vector<4x8xf32>
    %175 = arith.extui %174 : vector<4x8xi1> to vector<4x8xi32>
    %176 = arith.sitofp %175 : vector<4x8xi32> to vector<4x8xf32>
    %cst_62 = arith.constant dense<0.000000e+00> : vector<4x16xf32>
    %177 = tpu.matmul %176, %2, %cst_62 {dimension_numbers = #tpu.dot_dimension_numbers<[1], [0], [0], [1], [0, 0, 1, 1], [], []>} : vector<4x8xf32>, vector<8x16xf32>, vector<4x16xf32> -> vector<4x16xf32>
    %178 = vector.shape_cast %167 : vector<4x32xf32> to vector<4x1x32xf32>
    "tpu.trace_start"() <{level = 10 : i32, message = "bsd,btd->bst"}> : () -> ()
    %cst_63 = arith.constant dense<0.000000e+00> : vector<4x1x8xf32>
    %179 = tpu.matmul %178, %20, %cst_63 {dimension_numbers = #tpu.dot_dimension_numbers<[2], [2], [1], [1], [0, 0, 0, 1, 1, 1], [0], [0]>} : vector<4x1x32xf32>, vector<4x8x32xf32>, vector<4x1x8xf32> -> vector<4x1x8xf32>
    "tpu.trace_stop"() : () -> ()
    %180 = vector.shape_cast %179 : vector<4x1x8xf32> to vector<4x8xf32>
    %181 = arith.addf %180, %6 : vector<4x8xf32>
    %cst_64 = arith.constant dense<0xFF800000> : vector<4xf32>
    %182 = vector.multi_reduction <maximumf>, %181, %cst_64 [1] : vector<4x8xf32> to vector<4xf32>
    %183 = vector.shape_cast %182 : vector<4xf32> to vector<4x1xf32>
    %184 = vector.broadcast %183 : vector<4x1xf32> to vector<4x8xf32>
    %185 = arith.subf %181, %184 : vector<4x8xf32>
    %186 = math.exp %185 : vector<4x8xf32>
    %cst_65 = arith.constant dense<0.000000e+00> : vector<4xf32>
    %187 = vector.multi_reduction <add>, %186, %cst_65 [1] : vector<4x8xf32> to vector<4xf32>
    %188 = vector.shape_cast %187 : vector<4xf32> to vector<4x1xf32>
    %189 = tpu.reciprocal %188 {approx = true} : vector<4x1xf32> -> vector<4x1xf32>
    %190 = vector.broadcast %189 : vector<4x1xf32> to vector<4x8xf32>
    %191 = arith.mulf %186, %190 : vector<4x8xf32>
    %192 = vector.shape_cast %191 : vector<4x8xf32> to vector<4x1x8xf32>
    "tpu.trace_start"() <{level = 10 : i32, message = "bst,btd->bsd"}> : () -> ()
    %cst_66 = arith.constant dense<0.000000e+00> : vector<4x1x32xf32>
    %193 = tpu.matmul %192, %0, %cst_66 {dimension_numbers = #tpu.dot_dimension_numbers<[2], [1], [1], [2], [0, 0, 0, 1, 1, 2], [0], [0]>} : vector<4x1x8xf32>, vector<4x8x32xf32>, vector<4x1x32xf32> -> vector<4x1x32xf32>
    "tpu.trace_stop"() : () -> ()
    %194 = vector.shape_cast %193 : vector<4x1x32xf32> to vector<4x32xf32>
    %195 = vector.extract_strided_slice %0 {offsets = [0, 3, 0], sizes = [4, 1, 32], strides = [1, 1, 1]} : vector<4x8x32xf32> to vector<4x1x32xf32>
    %196 = vector.shape_cast %195 : vector<4x1x32xf32> to vector<4x32xf32>
    %197 = tpu.concatenate %177, %194, %196, %167 in 1 : vector<4x16xf32>, vector<4x32xf32>, vector<4x32xf32>, vector<4x32xf32> -> vector<4x112xf32>
    %cst_67 = arith.constant dense<0.000000e+00> : vector<4x128xf32>
    %198 = tpu.matmul %197, %3, %cst_67 {dimension_numbers = #tpu.dot_dimension_numbers<[1], [0], [0], [1], [0, 0, 1, 1], [], []>} : vector<4x112xf32>, vector<112x128xf32>, vector<4x128xf32> -> vector<4x128xf32>
    %199 = arith.addf %198, %9 : vector<4x128xf32>
    %200 = vector.extract_strided_slice %199 {offsets = [0, 0], sizes = [4, 96], strides = [1, 1]} : vector<4x128xf32> to vector<4x96xf32>
    %201 = arith.negf %200 : vector<4x96xf32>
    %202 = math.exp %201 : vector<4x96xf32>
    %cst_68 = arith.constant 1.000000e+00 : f32
    %203 = vector.broadcast %cst_68 : f32 to vector<4x96xf32>
    %204 = arith.addf %203, %202 : vector<4x96xf32>
    %205 = arith.divf %203, %204 : vector<4x96xf32>
    %206 = vector.extract_strided_slice %199 {offsets = [0, 96], sizes = [4, 32], strides = [1, 1]} : vector<4x128xf32> to vector<4x32xf32>
    %207 = math.tanh %206 : vector<4x32xf32>
    %208 = vector.extract_strided_slice %205 {offsets = [0, 32], sizes = [4, 32], strides = [1, 1]} : vector<4x96xf32> to vector<4x32xf32>
    %209 = arith.mulf %208, %164 : vector<4x32xf32>
    %210 = vector.extract_strided_slice %205 {offsets = [0, 0], sizes = [4, 32], strides = [1, 1]} : vector<4x96xf32> to vector<4x32xf32>
    %211 = arith.mulf %210, %207 : vector<4x32xf32>
    %212 = arith.addf %209, %211 : vector<4x32xf32>
    %213 = vector.extract_strided_slice %205 {offsets = [0, 64], sizes = [4, 32], strides = [1, 1]} : vector<4x96xf32> to vector<4x32xf32>
    %214 = math.tanh %212 : vector<4x32xf32>
    %215 = arith.mulf %213, %214 : vector<4x32xf32>
    %216 = tpu.concatenate %215, %194 in 1 : vector<4x32xf32>, vector<4x32xf32> -> vector<4x64xf32>
    %cst_69 = arith.constant dense<0.000000e+00> : vector<4x8xf32>
    %217 = tpu.matmul %216, %4, %cst_69 {dimension_numbers = #tpu.dot_dimension_numbers<[1], [0], [0], [1], [0, 0, 1, 1], [], []>} : vector<4x64xf32>, vector<64x8xf32>, vector<4x8xf32> -> vector<4x8xf32>
    %218 = arith.addf %217, %12 : vector<4x8xf32>
    %cst_70 = arith.constant dense<0xFF800000> : vector<4xf32>
    %219 = vector.multi_reduction <maximumf>, %218, %cst_70 [1] : vector<4x8xf32> to vector<4xf32>
    %220 = vector.shape_cast %219 : vector<4xf32> to vector<4x1xf32>
    %221 = vector.broadcast %220 : vector<4x1xf32> to vector<4x8xf32>
    %222 = arith.cmpf oeq, %218, %221 : vector<4x8xf32>
    %223 = arith.extui %222 : vector<4x8xi1> to vector<4x8xi32>
    %224 = arith.sitofp %223 : vector<4x8xi32> to vector<4x8xf32>
    %cst_71 = arith.constant dense<0.000000e+00> : vector<4x16xf32>
    %225 = tpu.matmul %224, %2, %cst_71 {dimension_numbers = #tpu.dot_dimension_numbers<[1], [0], [0], [1], [0, 0, 1, 1], [], []>} : vector<4x8xf32>, vector<8x16xf32>, vector<4x16xf32> -> vector<4x16xf32>
    %226 = vector.shape_cast %215 : vector<4x32xf32> to vector<4x1x32xf32>
    "tpu.trace_start"() <{level = 10 : i32, message = "bsd,btd->bst"}> : () -> ()
    %cst_72 = arith.constant dense<0.000000e+00> : vector<4x1x8xf32>
    %227 = tpu.matmul %226, %20, %cst_72 {dimension_numbers = #tpu.dot_dimension_numbers<[2], [2], [1], [1], [0, 0, 0, 1, 1, 1], [0], [0]>} : vector<4x1x32xf32>, vector<4x8x32xf32>, vector<4x1x8xf32> -> vector<4x1x8xf32>
    "tpu.trace_stop"() : () -> ()
    %228 = vector.shape_cast %227 : vector<4x1x8xf32> to vector<4x8xf32>
    %229 = arith.addf %228, %6 : vector<4x8xf32>
    %cst_73 = arith.constant dense<0xFF800000> : vector<4xf32>
    %230 = vector.multi_reduction <maximumf>, %229, %cst_73 [1] : vector<4x8xf32> to vector<4xf32>
    %231 = vector.shape_cast %230 : vector<4xf32> to vector<4x1xf32>
    %232 = vector.broadcast %231 : vector<4x1xf32> to vector<4x8xf32>
    %233 = arith.subf %229, %232 : vector<4x8xf32>
    %234 = math.exp %233 : vector<4x8xf32>
    %cst_74 = arith.constant dense<0.000000e+00> : vector<4xf32>
    %235 = vector.multi_reduction <add>, %234, %cst_74 [1] : vector<4x8xf32> to vector<4xf32>
    %236 = vector.shape_cast %235 : vector<4xf32> to vector<4x1xf32>
    %237 = tpu.reciprocal %236 {approx = true} : vector<4x1xf32> -> vector<4x1xf32>
    %238 = vector.broadcast %237 : vector<4x1xf32> to vector<4x8xf32>
    %239 = arith.mulf %234, %238 : vector<4x8xf32>
    %240 = vector.shape_cast %239 : vector<4x8xf32> to vector<4x1x8xf32>
    "tpu.trace_start"() <{level = 10 : i32, message = "bst,btd->bsd"}> : () -> ()
    %cst_75 = arith.constant dense<0.000000e+00> : vector<4x1x32xf32>
    %241 = tpu.matmul %240, %0, %cst_75 {dimension_numbers = #tpu.dot_dimension_numbers<[2], [1], [1], [2], [0, 0, 0, 1, 1, 2], [0], [0]>} : vector<4x1x8xf32>, vector<4x8x32xf32>, vector<4x1x32xf32> -> vector<4x1x32xf32>
    "tpu.trace_stop"() : () -> ()
    %242 = vector.shape_cast %241 : vector<4x1x32xf32> to vector<4x32xf32>
    %243 = vector.extract_strided_slice %0 {offsets = [0, 4, 0], sizes = [4, 1, 32], strides = [1, 1, 1]} : vector<4x8x32xf32> to vector<4x1x32xf32>
    %244 = vector.shape_cast %243 : vector<4x1x32xf32> to vector<4x32xf32>
    %245 = tpu.concatenate %225, %242, %244, %215 in 1 : vector<4x16xf32>, vector<4x32xf32>, vector<4x32xf32>, vector<4x32xf32> -> vector<4x112xf32>
    %cst_76 = arith.constant dense<0.000000e+00> : vector<4x128xf32>
    %246 = tpu.matmul %245, %3, %cst_76 {dimension_numbers = #tpu.dot_dimension_numbers<[1], [0], [0], [1], [0, 0, 1, 1], [], []>} : vector<4x112xf32>, vector<112x128xf32>, vector<4x128xf32> -> vector<4x128xf32>
    %247 = arith.addf %246, %9 : vector<4x128xf32>
    %248 = vector.extract_strided_slice %247 {offsets = [0, 0], sizes = [4, 96], strides = [1, 1]} : vector<4x128xf32> to vector<4x96xf32>
    %249 = arith.negf %248 : vector<4x96xf32>
    %250 = math.exp %249 : vector<4x96xf32>
    %cst_77 = arith.constant 1.000000e+00 : f32
    %251 = vector.broadcast %cst_77 : f32 to vector<4x96xf32>
    %252 = arith.addf %251, %250 : vector<4x96xf32>
    %253 = arith.divf %251, %252 : vector<4x96xf32>
    %254 = vector.extract_strided_slice %247 {offsets = [0, 96], sizes = [4, 32], strides = [1, 1]} : vector<4x128xf32> to vector<4x32xf32>
    %255 = math.tanh %254 : vector<4x32xf32>
    %256 = vector.extract_strided_slice %253 {offsets = [0, 32], sizes = [4, 32], strides = [1, 1]} : vector<4x96xf32> to vector<4x32xf32>
    %257 = arith.mulf %256, %212 : vector<4x32xf32>
    %258 = vector.extract_strided_slice %253 {offsets = [0, 0], sizes = [4, 32], strides = [1, 1]} : vector<4x96xf32> to vector<4x32xf32>
    %259 = arith.mulf %258, %255 : vector<4x32xf32>
    %260 = arith.addf %257, %259 : vector<4x32xf32>
    %261 = vector.extract_strided_slice %253 {offsets = [0, 64], sizes = [4, 32], strides = [1, 1]} : vector<4x96xf32> to vector<4x32xf32>
    %262 = math.tanh %260 : vector<4x32xf32>
    %263 = arith.mulf %261, %262 : vector<4x32xf32>
    %264 = tpu.concatenate %263, %242 in 1 : vector<4x32xf32>, vector<4x32xf32> -> vector<4x64xf32>
    %cst_78 = arith.constant dense<0.000000e+00> : vector<4x8xf32>
    %265 = tpu.matmul %264, %4, %cst_78 {dimension_numbers = #tpu.dot_dimension_numbers<[1], [0], [0], [1], [0, 0, 1, 1], [], []>} : vector<4x64xf32>, vector<64x8xf32>, vector<4x8xf32> -> vector<4x8xf32>
    %266 = arith.addf %265, %12 : vector<4x8xf32>
    %cst_79 = arith.constant dense<0xFF800000> : vector<4xf32>
    %267 = vector.multi_reduction <maximumf>, %266, %cst_79 [1] : vector<4x8xf32> to vector<4xf32>
    %268 = vector.shape_cast %267 : vector<4xf32> to vector<4x1xf32>
    %269 = vector.broadcast %268 : vector<4x1xf32> to vector<4x8xf32>
    %270 = arith.cmpf oeq, %266, %269 : vector<4x8xf32>
    %271 = arith.extui %270 : vector<4x8xi1> to vector<4x8xi32>
    %272 = arith.sitofp %271 : vector<4x8xi32> to vector<4x8xf32>
    %cst_80 = arith.constant dense<0.000000e+00> : vector<4x16xf32>
    %273 = tpu.matmul %272, %2, %cst_80 {dimension_numbers = #tpu.dot_dimension_numbers<[1], [0], [0], [1], [0, 0, 1, 1], [], []>} : vector<4x8xf32>, vector<8x16xf32>, vector<4x16xf32> -> vector<4x16xf32>
    %274 = vector.shape_cast %263 : vector<4x32xf32> to vector<4x1x32xf32>
    "tpu.trace_start"() <{level = 10 : i32, message = "bsd,btd->bst"}> : () -> ()
    %cst_81 = arith.constant dense<0.000000e+00> : vector<4x1x8xf32>
    %275 = tpu.matmul %274, %20, %cst_81 {dimension_numbers = #tpu.dot_dimension_numbers<[2], [2], [1], [1], [0, 0, 0, 1, 1, 1], [0], [0]>} : vector<4x1x32xf32>, vector<4x8x32xf32>, vector<4x1x8xf32> -> vector<4x1x8xf32>
    "tpu.trace_stop"() : () -> ()
    %276 = vector.shape_cast %275 : vector<4x1x8xf32> to vector<4x8xf32>
    %277 = arith.addf %276, %6 : vector<4x8xf32>
    %cst_82 = arith.constant dense<0xFF800000> : vector<4xf32>
    %278 = vector.multi_reduction <maximumf>, %277, %cst_82 [1] : vector<4x8xf32> to vector<4xf32>
    %279 = vector.shape_cast %278 : vector<4xf32> to vector<4x1xf32>
    %280 = vector.broadcast %279 : vector<4x1xf32> to vector<4x8xf32>
    %281 = arith.subf %277, %280 : vector<4x8xf32>
    %282 = math.exp %281 : vector<4x8xf32>
    %cst_83 = arith.constant dense<0.000000e+00> : vector<4xf32>
    %283 = vector.multi_reduction <add>, %282, %cst_83 [1] : vector<4x8xf32> to vector<4xf32>
    %284 = vector.shape_cast %283 : vector<4xf32> to vector<4x1xf32>
    %285 = tpu.reciprocal %284 {approx = true} : vector<4x1xf32> -> vector<4x1xf32>
    %286 = vector.broadcast %285 : vector<4x1xf32> to vector<4x8xf32>
    %287 = arith.mulf %282, %286 : vector<4x8xf32>
    %288 = vector.shape_cast %287 : vector<4x8xf32> to vector<4x1x8xf32>
    "tpu.trace_start"() <{level = 10 : i32, message = "bst,btd->bsd"}> : () -> ()
    %cst_84 = arith.constant dense<0.000000e+00> : vector<4x1x32xf32>
    %289 = tpu.matmul %288, %0, %cst_84 {dimension_numbers = #tpu.dot_dimension_numbers<[2], [1], [1], [2], [0, 0, 0, 1, 1, 2], [0], [0]>} : vector<4x1x8xf32>, vector<4x8x32xf32>, vector<4x1x32xf32> -> vector<4x1x32xf32>
    "tpu.trace_stop"() : () -> ()
    %290 = vector.shape_cast %289 : vector<4x1x32xf32> to vector<4x32xf32>
    %291 = vector.extract_strided_slice %0 {offsets = [0, 5, 0], sizes = [4, 1, 32], strides = [1, 1, 1]} : vector<4x8x32xf32> to vector<4x1x32xf32>
    %292 = vector.shape_cast %291 : vector<4x1x32xf32> to vector<4x32xf32>
    %293 = tpu.concatenate %273, %290, %292, %263 in 1 : vector<4x16xf32>, vector<4x32xf32>, vector<4x32xf32>, vector<4x32xf32> -> vector<4x112xf32>
    %cst_85 = arith.constant dense<0.000000e+00> : vector<4x128xf32>
    %294 = tpu.matmul %293, %3, %cst_85 {dimension_numbers = #tpu.dot_dimension_numbers<[1], [0], [0], [1], [0, 0, 1, 1], [], []>} : vector<4x112xf32>, vector<112x128xf32>, vector<4x128xf32> -> vector<4x128xf32>
    %295 = arith.addf %294, %9 : vector<4x128xf32>
    %296 = vector.extract_strided_slice %295 {offsets = [0, 0], sizes = [4, 96], strides = [1, 1]} : vector<4x128xf32> to vector<4x96xf32>
    %297 = arith.negf %296 : vector<4x96xf32>
    %298 = math.exp %297 : vector<4x96xf32>
    %cst_86 = arith.constant 1.000000e+00 : f32
    %299 = vector.broadcast %cst_86 : f32 to vector<4x96xf32>
    %300 = arith.addf %299, %298 : vector<4x96xf32>
    %301 = arith.divf %299, %300 : vector<4x96xf32>
    %302 = vector.extract_strided_slice %295 {offsets = [0, 96], sizes = [4, 32], strides = [1, 1]} : vector<4x128xf32> to vector<4x32xf32>
    %303 = math.tanh %302 : vector<4x32xf32>
    %304 = vector.extract_strided_slice %301 {offsets = [0, 32], sizes = [4, 32], strides = [1, 1]} : vector<4x96xf32> to vector<4x32xf32>
    %305 = arith.mulf %304, %260 : vector<4x32xf32>
    %306 = vector.extract_strided_slice %301 {offsets = [0, 0], sizes = [4, 32], strides = [1, 1]} : vector<4x96xf32> to vector<4x32xf32>
    %307 = arith.mulf %306, %303 : vector<4x32xf32>
    %308 = arith.addf %305, %307 : vector<4x32xf32>
    %309 = vector.extract_strided_slice %301 {offsets = [0, 64], sizes = [4, 32], strides = [1, 1]} : vector<4x96xf32> to vector<4x32xf32>
    %310 = math.tanh %308 : vector<4x32xf32>
    %311 = arith.mulf %309, %310 : vector<4x32xf32>
    %312 = tpu.concatenate %311, %290 in 1 : vector<4x32xf32>, vector<4x32xf32> -> vector<4x64xf32>
    %cst_87 = arith.constant dense<0.000000e+00> : vector<4x8xf32>
    %313 = tpu.matmul %312, %4, %cst_87 {dimension_numbers = #tpu.dot_dimension_numbers<[1], [0], [0], [1], [0, 0, 1, 1], [], []>} : vector<4x64xf32>, vector<64x8xf32>, vector<4x8xf32> -> vector<4x8xf32>
    %314 = arith.addf %313, %12 : vector<4x8xf32>
    %cst_88 = arith.constant dense<0xFF800000> : vector<4xf32>
    %315 = vector.multi_reduction <maximumf>, %314, %cst_88 [1] : vector<4x8xf32> to vector<4xf32>
    %316 = vector.shape_cast %315 : vector<4xf32> to vector<4x1xf32>
    %317 = vector.broadcast %316 : vector<4x1xf32> to vector<4x8xf32>
    %318 = arith.cmpf oeq, %314, %317 : vector<4x8xf32>
    %319 = arith.extui %318 : vector<4x8xi1> to vector<4x8xi32>
    %320 = arith.sitofp %319 : vector<4x8xi32> to vector<4x8xf32>
    %cst_89 = arith.constant dense<0.000000e+00> : vector<4x16xf32>
    %321 = tpu.matmul %320, %2, %cst_89 {dimension_numbers = #tpu.dot_dimension_numbers<[1], [0], [0], [1], [0, 0, 1, 1], [], []>} : vector<4x8xf32>, vector<8x16xf32>, vector<4x16xf32> -> vector<4x16xf32>
    %322 = vector.shape_cast %311 : vector<4x32xf32> to vector<4x1x32xf32>
    "tpu.trace_start"() <{level = 10 : i32, message = "bsd,btd->bst"}> : () -> ()
    %cst_90 = arith.constant dense<0.000000e+00> : vector<4x1x8xf32>
    %323 = tpu.matmul %322, %20, %cst_90 {dimension_numbers = #tpu.dot_dimension_numbers<[2], [2], [1], [1], [0, 0, 0, 1, 1, 1], [0], [0]>} : vector<4x1x32xf32>, vector<4x8x32xf32>, vector<4x1x8xf32> -> vector<4x1x8xf32>
    "tpu.trace_stop"() : () -> ()
    %324 = vector.shape_cast %323 : vector<4x1x8xf32> to vector<4x8xf32>
    %325 = arith.addf %324, %6 : vector<4x8xf32>
    %cst_91 = arith.constant dense<0xFF800000> : vector<4xf32>
    %326 = vector.multi_reduction <maximumf>, %325, %cst_91 [1] : vector<4x8xf32> to vector<4xf32>
    %327 = vector.shape_cast %326 : vector<4xf32> to vector<4x1xf32>
    %328 = vector.broadcast %327 : vector<4x1xf32> to vector<4x8xf32>
    %329 = arith.subf %325, %328 : vector<4x8xf32>
    %330 = math.exp %329 : vector<4x8xf32>
    %cst_92 = arith.constant dense<0.000000e+00> : vector<4xf32>
    %331 = vector.multi_reduction <add>, %330, %cst_92 [1] : vector<4x8xf32> to vector<4xf32>
    %332 = vector.shape_cast %331 : vector<4xf32> to vector<4x1xf32>
    %333 = tpu.reciprocal %332 {approx = true} : vector<4x1xf32> -> vector<4x1xf32>
    %334 = vector.broadcast %333 : vector<4x1xf32> to vector<4x8xf32>
    %335 = arith.mulf %330, %334 : vector<4x8xf32>
    %336 = vector.shape_cast %335 : vector<4x8xf32> to vector<4x1x8xf32>
    "tpu.trace_start"() <{level = 10 : i32, message = "bst,btd->bsd"}> : () -> ()
    %cst_93 = arith.constant dense<0.000000e+00> : vector<4x1x32xf32>
    %337 = tpu.matmul %336, %0, %cst_93 {dimension_numbers = #tpu.dot_dimension_numbers<[2], [1], [1], [2], [0, 0, 0, 1, 1, 2], [0], [0]>} : vector<4x1x8xf32>, vector<4x8x32xf32>, vector<4x1x32xf32> -> vector<4x1x32xf32>
    "tpu.trace_stop"() : () -> ()
    %338 = vector.shape_cast %337 : vector<4x1x32xf32> to vector<4x32xf32>
    %339 = vector.extract_strided_slice %0 {offsets = [0, 6, 0], sizes = [4, 1, 32], strides = [1, 1, 1]} : vector<4x8x32xf32> to vector<4x1x32xf32>
    %340 = vector.shape_cast %339 : vector<4x1x32xf32> to vector<4x32xf32>
    %341 = tpu.concatenate %321, %338, %340, %311 in 1 : vector<4x16xf32>, vector<4x32xf32>, vector<4x32xf32>, vector<4x32xf32> -> vector<4x112xf32>
    %cst_94 = arith.constant dense<0.000000e+00> : vector<4x128xf32>
    %342 = tpu.matmul %341, %3, %cst_94 {dimension_numbers = #tpu.dot_dimension_numbers<[1], [0], [0], [1], [0, 0, 1, 1], [], []>} : vector<4x112xf32>, vector<112x128xf32>, vector<4x128xf32> -> vector<4x128xf32>
    %343 = arith.addf %342, %9 : vector<4x128xf32>
    %344 = vector.extract_strided_slice %343 {offsets = [0, 0], sizes = [4, 96], strides = [1, 1]} : vector<4x128xf32> to vector<4x96xf32>
    %345 = arith.negf %344 : vector<4x96xf32>
    %346 = math.exp %345 : vector<4x96xf32>
    %cst_95 = arith.constant 1.000000e+00 : f32
    %347 = vector.broadcast %cst_95 : f32 to vector<4x96xf32>
    %348 = arith.addf %347, %346 : vector<4x96xf32>
    %349 = arith.divf %347, %348 : vector<4x96xf32>
    %350 = vector.extract_strided_slice %343 {offsets = [0, 96], sizes = [4, 32], strides = [1, 1]} : vector<4x128xf32> to vector<4x32xf32>
    %351 = math.tanh %350 : vector<4x32xf32>
    %352 = vector.extract_strided_slice %349 {offsets = [0, 32], sizes = [4, 32], strides = [1, 1]} : vector<4x96xf32> to vector<4x32xf32>
    %353 = arith.mulf %352, %308 : vector<4x32xf32>
    %354 = vector.extract_strided_slice %349 {offsets = [0, 0], sizes = [4, 32], strides = [1, 1]} : vector<4x96xf32> to vector<4x32xf32>
    %355 = arith.mulf %354, %351 : vector<4x32xf32>
    %356 = arith.addf %353, %355 : vector<4x32xf32>
    %357 = vector.extract_strided_slice %349 {offsets = [0, 64], sizes = [4, 32], strides = [1, 1]} : vector<4x96xf32> to vector<4x32xf32>
    %358 = math.tanh %356 : vector<4x32xf32>
    %359 = arith.mulf %357, %358 : vector<4x32xf32>
    %360 = tpu.concatenate %359, %338 in 1 : vector<4x32xf32>, vector<4x32xf32> -> vector<4x64xf32>
    %cst_96 = arith.constant dense<0.000000e+00> : vector<4x8xf32>
    %361 = tpu.matmul %360, %4, %cst_96 {dimension_numbers = #tpu.dot_dimension_numbers<[1], [0], [0], [1], [0, 0, 1, 1], [], []>} : vector<4x64xf32>, vector<64x8xf32>, vector<4x8xf32> -> vector<4x8xf32>
    %362 = arith.addf %361, %12 : vector<4x8xf32>
    %cst_97 = arith.constant dense<0xFF800000> : vector<4xf32>
    %363 = vector.multi_reduction <maximumf>, %362, %cst_97 [1] : vector<4x8xf32> to vector<4xf32>
    %364 = vector.shape_cast %363 : vector<4xf32> to vector<4x1xf32>
    %365 = vector.broadcast %364 : vector<4x1xf32> to vector<4x8xf32>
    %366 = arith.cmpf oeq, %362, %365 : vector<4x8xf32>
    %367 = arith.extui %366 : vector<4x8xi1> to vector<4x8xi32>
    %368 = arith.sitofp %367 : vector<4x8xi32> to vector<4x8xf32>
    %cst_98 = arith.constant dense<0.000000e+00> : vector<4x16xf32>
    %369 = tpu.matmul %368, %2, %cst_98 {dimension_numbers = #tpu.dot_dimension_numbers<[1], [0], [0], [1], [0, 0, 1, 1], [], []>} : vector<4x8xf32>, vector<8x16xf32>, vector<4x16xf32> -> vector<4x16xf32>
    %370 = vector.shape_cast %359 : vector<4x32xf32> to vector<4x1x32xf32>
    "tpu.trace_start"() <{level = 10 : i32, message = "bsd,btd->bst"}> : () -> ()
    %cst_99 = arith.constant dense<0.000000e+00> : vector<4x1x8xf32>
    %371 = tpu.matmul %370, %20, %cst_99 {dimension_numbers = #tpu.dot_dimension_numbers<[2], [2], [1], [1], [0, 0, 0, 1, 1, 1], [0], [0]>} : vector<4x1x32xf32>, vector<4x8x32xf32>, vector<4x1x8xf32> -> vector<4x1x8xf32>
    "tpu.trace_stop"() : () -> ()
    %372 = vector.shape_cast %371 : vector<4x1x8xf32> to vector<4x8xf32>
    %373 = arith.addf %372, %6 : vector<4x8xf32>
    %cst_100 = arith.constant dense<0xFF800000> : vector<4xf32>
    %374 = vector.multi_reduction <maximumf>, %373, %cst_100 [1] : vector<4x8xf32> to vector<4xf32>
    %375 = vector.shape_cast %374 : vector<4xf32> to vector<4x1xf32>
    %376 = vector.broadcast %375 : vector<4x1xf32> to vector<4x8xf32>
    %377 = arith.subf %373, %376 : vector<4x8xf32>
    %378 = math.exp %377 : vector<4x8xf32>
    %cst_101 = arith.constant dense<0.000000e+00> : vector<4xf32>
    %379 = vector.multi_reduction <add>, %378, %cst_101 [1] : vector<4x8xf32> to vector<4xf32>
    %380 = vector.shape_cast %379 : vector<4xf32> to vector<4x1xf32>
    %381 = tpu.reciprocal %380 {approx = true} : vector<4x1xf32> -> vector<4x1xf32>
    %382 = vector.broadcast %381 : vector<4x1xf32> to vector<4x8xf32>
    %383 = arith.mulf %378, %382 : vector<4x8xf32>
    %384 = vector.shape_cast %383 : vector<4x8xf32> to vector<4x1x8xf32>
    "tpu.trace_start"() <{level = 10 : i32, message = "bst,btd->bsd"}> : () -> ()
    %cst_102 = arith.constant dense<0.000000e+00> : vector<4x1x32xf32>
    %385 = tpu.matmul %384, %0, %cst_102 {dimension_numbers = #tpu.dot_dimension_numbers<[2], [1], [1], [2], [0, 0, 0, 1, 1, 2], [0], [0]>} : vector<4x1x8xf32>, vector<4x8x32xf32>, vector<4x1x32xf32> -> vector<4x1x32xf32>
    "tpu.trace_stop"() : () -> ()
    %386 = vector.shape_cast %385 : vector<4x1x32xf32> to vector<4x32xf32>
    %387 = vector.extract_strided_slice %0 {offsets = [0, 7, 0], sizes = [4, 1, 32], strides = [1, 1, 1]} : vector<4x8x32xf32> to vector<4x1x32xf32>
    %388 = vector.shape_cast %387 : vector<4x1x32xf32> to vector<4x32xf32>
    %389 = tpu.concatenate %369, %386, %388, %359 in 1 : vector<4x16xf32>, vector<4x32xf32>, vector<4x32xf32>, vector<4x32xf32> -> vector<4x112xf32>
    %cst_103 = arith.constant dense<0.000000e+00> : vector<4x128xf32>
    %390 = tpu.matmul %389, %3, %cst_103 {dimension_numbers = #tpu.dot_dimension_numbers<[1], [0], [0], [1], [0, 0, 1, 1], [], []>} : vector<4x112xf32>, vector<112x128xf32>, vector<4x128xf32> -> vector<4x128xf32>
    %391 = arith.addf %390, %9 : vector<4x128xf32>
    %392 = vector.extract_strided_slice %391 {offsets = [0, 0], sizes = [4, 96], strides = [1, 1]} : vector<4x128xf32> to vector<4x96xf32>
    %393 = arith.negf %392 : vector<4x96xf32>
    %394 = math.exp %393 : vector<4x96xf32>
    %cst_104 = arith.constant 1.000000e+00 : f32
    %395 = vector.broadcast %cst_104 : f32 to vector<4x96xf32>
    %396 = arith.addf %395, %394 : vector<4x96xf32>
    %397 = arith.divf %395, %396 : vector<4x96xf32>
    %398 = vector.extract_strided_slice %391 {offsets = [0, 96], sizes = [4, 32], strides = [1, 1]} : vector<4x128xf32> to vector<4x32xf32>
    %399 = math.tanh %398 : vector<4x32xf32>
    %400 = vector.extract_strided_slice %397 {offsets = [0, 32], sizes = [4, 32], strides = [1, 1]} : vector<4x96xf32> to vector<4x32xf32>
    %401 = arith.mulf %400, %356 : vector<4x32xf32>
    %402 = vector.extract_strided_slice %397 {offsets = [0, 0], sizes = [4, 32], strides = [1, 1]} : vector<4x96xf32> to vector<4x32xf32>
    %403 = arith.mulf %402, %399 : vector<4x32xf32>
    %404 = arith.addf %401, %403 : vector<4x32xf32>
    %405 = vector.extract_strided_slice %397 {offsets = [0, 64], sizes = [4, 32], strides = [1, 1]} : vector<4x96xf32> to vector<4x32xf32>
    %406 = math.tanh %404 : vector<4x32xf32>
    %407 = arith.mulf %405, %406 : vector<4x32xf32>
    %408 = tpu.concatenate %407, %386 in 1 : vector<4x32xf32>, vector<4x32xf32> -> vector<4x64xf32>
    %cst_105 = arith.constant dense<0.000000e+00> : vector<4x8xf32>
    %409 = tpu.matmul %408, %4, %cst_105 {dimension_numbers = #tpu.dot_dimension_numbers<[1], [0], [0], [1], [0, 0, 1, 1], [], []>} : vector<4x64xf32>, vector<64x8xf32>, vector<4x8xf32> -> vector<4x8xf32>
    %410 = arith.addf %409, %12 : vector<4x8xf32>
    %411 = tpu.concatenate %72, %120, %168, %216, %264, %312, %360, %408 in 1 : vector<4x64xf32>, vector<4x64xf32>, vector<4x64xf32>, vector<4x64xf32>, vector<4x64xf32>, vector<4x64xf32>, vector<4x64xf32>, vector<4x64xf32> -> vector<4x512xf32>
    %c0_106 = arith.constant 0 : index
    %c0_107 = arith.constant 0 : index
    %412 = vector.load %arg16[%c0_106, %c0_107] : memref<4x512xf32, #tpu.memory_space<vmem>>, vector<4x512xf32>
    tpu.vector_store %arg16[%c0_106, %c0_107], %411 {strides = array<i32>} : memref<4x512xf32, #tpu.memory_space<vmem>>, vector<4x512xf32>,
    %413 = tpu.concatenate %74, %122, %170, %218, %266, %314, %362, %410 in 1 : vector<4x8xf32>, vector<4x8xf32>, vector<4x8xf32>, vector<4x8xf32>, vector<4x8xf32>, vector<4x8xf32>, vector<4x8xf32>, vector<4x8xf32> -> vector<4x64xf32>
    %c0_108 = arith.constant 0 : index
    %c0_109 = arith.constant 0 : index
    %414 = vector.load %arg15[%c0_108, %c0_109] : memref<4x64xf32, #tpu.memory_space<vmem>>, vector<4x64xf32>
    tpu.vector_store %arg15[%c0_108, %c0_109], %413 {strides = array<i32>} : memref<4x64xf32, #tpu.memory_space<vmem>>, vector<4x64xf32>,
    return
  }
}

</mosaic_0001>

<bundles_post_ra>
// kernel: tpu_custom_call.1
= control target key start
LH: loop header
LB: loop body
LE: loop exit
PB: predicated region body
PF: predicated region fallthrough
CT: control target
= control target key end

     0   :  { %s11560_s0 = inlined_call_operand.vmem [shape: s32[4,1], index: 0, kind: input, shape index: {}]   ;;  %s11561_s1 = inlined_call_operand.hbm [shape: f32[4,32], index: 1, kind: input, shape index: {}]   ;;  %s11562_s2 = inlined_call_operand.hbm [shape: f32[4,8,32], index: 2, kind: input, shape index: {}]   ;;  %s11563_s3 = inlined_call_operand.hbm [shape: f32[4,8], index: 3, kind: input, shape index: {}]   ;;  %s11564_s4 = inlined_call_operand.hbm [shape: f32[8,16], index: 4, kind: input, shape index: {}]   ;;  %s11565_s5 = inlined_call_operand.hbm [shape: f32[32,32], index: 5, kind: input, shape index: {}]   ;;  %s11566_s6 = inlined_call_operand.vmem [shape: f32[1,32], index: 6, kind: input, shape index: {}]   ;;  %s11567_s7 = inlined_call_operand.vmem [shape: f32[112,128], index: 7, kind: input, shape index: {}]   ;;  %s11568_s8 = inlined_call_operand.vmem [shape: f32[1,128], index: 8, kind: input, shape index: {}]   ;;  %s11569_s9 = inlined_call_operand.vmem [shape: f32[64,8], index: 9, kind: input, shape index: {}]   ;;  %s11570_s10 = inlined_call_operand.vmem [shape: f32[1,8], index: 10, kind: input, shape index: {}]   ;;  %s11571_s11 = inlined_call_operand.vmem [shape: f32[32,8], index: 11, kind: input, shape index: {}]   ;;  %s11572_s12 = inlined_call_operand.vmem [shape: f32[1,8], index: 12, kind: input, shape index: {}]   ;;  %s11573_s13 = inlined_call_operand.hbm [shape: f32[4,64], index: 13, kind: output, shape index: {0}]   ;;  %s11574_s14 = inlined_call_operand.hbm [shape: f32[4,8], index: 14, kind: output, shape index: {1}]   ;;  %s11575_s15 = inlined_call_operand.hbm [shape: f32[4,64], index: 15, kind: output, shape index: {2}]   ;;  %s11576_s16 = inlined_call_operand.hbm [shape: f32[4,512], index: 16, kind: output, shape index: {3}]  }
   0x1   :  { %11593 = sst [smem:[#allocation35_spill]] %s11560_s0 }
   0x2   :  { %22 = vsyncpa [#allocation3], 0 }
   0x3   :  { %23 = vsyncpa [#allocation6], 0 }
   0x4   :  { %24 = vsyncpa [#allocation9], 0 }
   0x5   :  { %25 = vsyncpa [#allocation4], 0 }
   0x6   :  { %26 = vsyncpa [#allocation13], 0 }
   0x7   :  { %27 = vsyncpa [#allocation16], 0  ;;  %s9631_s21 = smov [#allocation5]  }
   0x8   :  { %s45_s22 = sshll.u32 %s9631_s21, 4  ;;  %s46_s22 = int_to_ptr.vmem [resolvable:$true] %s45_s22 }
   0x9   :  { %s9447_s23 = scalar_lea.vmem %s46_s22, 512  ;;  %p9452_p1 = scmp.lt.s32.totalorder %s46_s22, %s46_s22 }
   0xa   :  { %p9448_p0 = scmp.ne.s32.totalorder %s46_s22, %s9447_s23  ;;  %p9453_p2 = scmp.lt.s32.totalorder %s9447_s23, %s9447_s23 }
   0xc   :  { %p9454_p3 = por %p9453_p2, %p9452_p1 }
   0xe   :  { %p9455_p4 = pnand %p9454_p3, %p9448_p0 }
  0x10   :  { %9458 = shalt.err (!%p9455_p4)
}
  0x11   :  { %s9632_s24 = smov 128   ;;  %s9633_s25 = smov 8  }
  0x12   :  { %51 = dma.hbm_to_vmem [thread:$0]  %s11562_s2, 512, %s46_s22, [#allocation6], %s9632_s24, %s9632_s24, %s9633_s25  }
  0x13   :  { %s9634_s28 = smov [#allocation8]   ;;  %s9635_s30 = smov [#allocation2]  }
  0x14   :  { %s68_s29 = sshll.u32 %s9634_s28, 4  ;;  %s36_s0 = sshll.u32 %s9635_s30, 4  ;;  %s69_s29 = int_to_ptr.vmem [resolvable:$true] %s68_s29  ;;  %s37_s0 = int_to_ptr.vmem [resolvable:$true] %s36_s0 }
  0x15   :  { %s9467_s17 = scalar_lea.vmem %s69_s29, 128  ;;  %p9472_p6 = scmp.lt.s32.totalorder %s69_s29, %s69_s29 }
  0x16   :  { %p9468_p5 = scmp.ne.s32.totalorder %s69_s29, %s9467_s17  ;;  %p9473_p7 = scmp.lt.s32.totalorder %s9467_s17, %s9467_s17 }
  0x18   :  { %p9474_p8 = por %p9473_p7, %p9472_p6 }
  0x1a   :  { %p9475_p9 = pnand %p9474_p8, %p9468_p5 }
  0x1c   :  { %9478 = shalt.err (!%p9475_p9)
}
  0x1d   :  { %71 = dma.hbm_to_vmem [thread:$0]  %s11564_s4, 128, %s69_s29, [#allocation9]  }
  0x1e   :  { %s9487_s20 = scalar_lea.vmem %s37_s0, 64  ;;  %p9492_p11 = scmp.lt.s32.totalorder %s37_s0, %s37_s0 }
  0x1f   :  { %p9488_p10 = scmp.ne.s32.totalorder %s37_s0, %s9487_s20  ;;  %p9493_p12 = scmp.lt.s32.totalorder %s9487_s20, %s9487_s20 }
  0x21   :  { %p9494_p13 = por %p9493_p12, %p9492_p11 }
  0x23   :  { %p9495_p0 = pnand %p9494_p13, %p9488_p10 }
  0x25   :  { %9498 = shalt.err (!%p9495_p0)
}
  0x26   :  { %39 = dma.hbm_to_vmem [thread:$0]  %s11561_s1, 64, %s37_s0, [#allocation3]  }
  0x27   :  { %s9636_s22 = smov [#allocation7]   ;;  %s9637_s26 = smov [#allocation10]  }
  0x28   :  { %s58_s23 = sshll.u32 %s9636_s22, 4  ;;  %s77_s27 = sshll.u32 %s9637_s26, 4  ;;  %s59_s23 = int_to_ptr.vmem [resolvable:$true] %s58_s23  ;;  %s78_s27 = int_to_ptr.vmem [resolvable:$true] %s77_s27 }
  0x29   :  { %s9507_s28 = scalar_lea.vmem %s59_s23, 64  ;;  %p9512_p2 = scmp.lt.s32.totalorder %s59_s23, %s59_s23 }
  0x2a   :  { %p9508_p1 = scmp.ne.s32.totalorder %s59_s23, %s9507_s28  ;;  %p9513_p3 = scmp.lt.s32.totalorder %s9507_s28, %s9507_s28 }
  0x2c   :  { %p9514_p4 = por %p9513_p3, %p9512_p2 }
  0x2e   :  { %p9515_p5 = pnand %p9514_p4, %p9508_p1 }
  0x30   :  { %9518 = shalt.err (!%p9515_p5)
}
  0x31   :  { %61 = dma.hbm_to_vmem [thread:$0]  %s11563_s3, 64, %s59_s23, [#allocation6]  }
  0x32   :  { %s9527_s30 = scalar_lea.vmem %s78_s27, 512  ;;  %p9532_p7 = scmp.lt.s32.totalorder %s78_s27, %s78_s27 }
  0x33   :  { %p9528_p6 = scmp.ne.s32.totalorder %s78_s27, %s9527_s30  ;;  %p9533_p8 = scmp.lt.s32.totalorder %s9527_s30, %s9527_s30 }
  0x35   :  { %p9534_p9 = por %p9533_p8, %p9532_p7 }
  0x37   :  { %p9535_p10 = pnand %p9534_p9, %p9528_p6 }
  0x39   :  { %9538 = shalt.err (!%p9535_p10)
}
  0x3a   :  { %83 = dma.hbm_to_vmem [thread:$0]  %s11565_s5, 512, %s78_s27, [#allocation9], %s9632_s24, %s9632_s24, %s9633_s25  }
  0x3b   :  { %9619 = dma.done.wait [#allocation3], 64  }
  0x3c   :  { %9620 = vsyncadd [#allocation3], 4294967232 }
  0x3d   :  { %9621 = dma.done.wait [#allocation6], 576  }
  0x3e   :  { %9622 = vsyncadd [#allocation6], 4294966720 }
  0x3f   :  { %9623 = dma.done.wait [#allocation9], 640  }
  0x40   :  { %9624 = vsyncadd [#allocation9], 4294966656  ;;  %v156_v0 = vlaneseq  ;;  %v9638_v1 = vmov 0   ;;  %v11577_v2 = vmov 0.0   ;;  %vm9640_vm0 = vmmov 0   ;;  %s11594_s24 = sld [smem:[#allocation35_spill]] }
  0x41   :  { %9241 = vset.pattern.permute.xlu0 %v9638_v1  ;;  %8468 = vmatprep.subr.mxu1 %v11577_v2  ;;  %v9641_v3 = vmov 1966171168   ;;  %v9771_v9 = vld [vmem:[#allocation5] sm:$0xff]  ;;  %v9777_v12 = vld [vmem:[#allocation5 + $0x8] sm:$0xff]  ;;  %v9779_v13 = vld [vmem:[#allocation5 + $0x10] sm:$0xff]  ;;  %vm605_vm1 = vcmask 1041409  }
  0x42   :  { %8470 = vmatprep.mubr.msk.f32.mxu1 %vm9640_vm0, %v11577_v2  ;;  %v275_v4 = vunpack.c.l.s4 %v9641_v3  ;;  %v9763_v5 = vshrl.u32 %v156_v0, 7  ;;  %v9773_v10 = vld [vmem:[#allocation7] sm:$0xf]  ;;  %8469 = vmatpush3.msra.mxu1 %v9771_v9  ;;  %v9781_v14 = vld [vmem:[#allocation5 + $0x18] sm:$0xff]  ;;  %vm608_vm2 = vcmask 1042434   ;;  %v788_v16 = vrot.slane %v9777_v12, 7 }
  0x43   :  { %v267_v11 = vsub.f32 1.0, %v9773_v10  ;;  %8473 = vmatprep.subr.mxu1 %v11577_v2  ;;  %v9784_v15 = vld [vmem:[#allocation2] sm:$0xf]  ;;  %v790_v17 = vrot.slane %v9779_v13, 6  ;;  %v792_v18 = vrot.slane %v9781_v14, 5  ;;  %s9642_s17 = smov 16  }
  0x44   :  { %v276_v6 = vunpack.c.0.s8 %v275_v4  ;;  %785 = vrot.lane.b32.xlu1 %v9784_v15, %s9642_s17  ;;  %vm611_vm3 = vcmask 1043459   ;;  %vm298_vm4 = vcmask 64512   ;;  %v789_v20 = vsel %vm605_vm1, %v788_v16, %v9771_v9  ;;  %s9643_s18 = smov 48   ;;  %v9814_v28 = vld [vmem:[#allocation8] sm:$0xff]  ;;  %v160_v31 = vld [vmem:[#allocation10 + $0x10] sm:$0xff]  ;;  %v159_v32 = vld [vmem:[#allocation10 + $0x8] sm:$0xff] }
  0x45   :  { %v791_v23 = vsel %vm608_vm2, %v790_v17, %v789_v20  ;;  %vm268_vm5 = vcmask 60416   ;;  %v161_v30 = vld [vmem:[#allocation10 + $0x18] sm:$0xff]  ;;  %v158_v33 = vld [vmem:[#allocation10] sm:$0xff]  ;;  %vm169_vm6 = vcmask 261120   ;;  %v622_v34 = vld [vmem:[%s11571_s11 + $0x18] sm:$0xff]  ;;  %v157_v38 = vand.u32 127, %v156_v0 }
  0x46   :  { %v9766_v7 = vsub.s32 %v276_v6, %v9763_v5  ;;  %v703_v8 = vld [vmem:[%s11594_s24] sm:$0xf]  ;;  %v793_v24 = vsel %vm611_vm3, %v792_v18, %v791_v23  ;;  %v269_v29 = vsel %vm268_vm5, %v267_v11, 0.0  ;;  %8454 = vmatprep.subr.mxu0 %v161_v30  ;;  %8462 = vmatprep.mubr.msk.f32.mxu0 %vm169_vm6, %v9771_v9  ;;  %v621_v35 = vld [vmem:[%s11571_s11 + $0x10] sm:$0xff]  ;;  %v620_v36 = vld [vmem:[%s11571_s11 + $0x8] sm:$0xff]  ;;  %vm797_vm8 = vcmask 130048  }
  0x47   :  { %705 = vperm.xlu0 %9241, %v703_v8   ;;  %8455 = vmatpush3.msra.mxu0 %v161_v30  ;;  %v619_v37 = vld [vmem:[%s11571_s11] sm:$0xff]  ;;  %v9859_v0 = vld [vmem:[%s11567_s7 + $0x68] sm:$0xff]  ;;  %v9878_v4 = vld [vmem:[%s11567_s7 + $0x58] sm:$0xff]  ;;  %vm799_vm9 = vcmask 392192   ;;  %vm801_vm10 = vcmask 654336   ;;  %vm803_vm11 = vcmask 916480  }
  0x48   :  { %v280_v19 = vrot.slane %v267_v11, %v9766_v7  ;;  %794 = vrot.lane.b32.xlu1 %v793_v24, %s9643_s18  ;;  %8456 = vmatprep.subr.mxu0 %v160_v31  ;;  %v9869_v3 = vld [vmem:[%s11567_s7 + $0x60] sm:$0xff]  ;;  %v9885_v6 = vld [vmem:[%s11567_s7 + $0x50] sm:$0xff]  ;;  %v9892_v8 = vld [vmem:[%s11567_s7 + $0x48] sm:$0xff]  ;;  %s9644_s22 = smov 32   ;;  %s9645_s2 = smov 64   ;;  %vm909_vm12 = vcmask 523264  }
  0x49   :  { %8457 = vmatpush3.msra.mxu0 %v160_v31  ;;  %v9899_v11 = vld [vmem:[%s11567_s7 + $0x40] sm:$0xff]  ;;  %v9906_v16 = vld [vmem:[%s11567_s7 + $0x38] sm:$0xff]  ;;  %v9913_v17 = vld [vmem:[%s11567_s7 + $0x30] sm:$0xff] }
  0x4a   :  { %v281_v21 = vcombine.high %v280_v19, %v280_v19  ;;  %v288_v22 = vrot.slane %v280_v19, %v9766_v7  ;;  %8458 = vmatprep.subr.mxu0 %v159_v32  ;;  %v9920_v18 = vld [vmem:[%s11567_s7 + $0x28] sm:$0xff]  ;;  %v9927_v19 = vld [vmem:[%s11567_s7 + $0x20] sm:$0xff]  ;;  %v9934_v20 = vld [vmem:[%s11567_s7 + $0x18] sm:$0xff] }
  0x4b   :  { %8459 = vmatpush3.msra.mxu0 %v159_v32  ;;  %v9955_v23 = vld [vmem:[%s11567_s7] sm:$0xff] }
  0x4c   :  { %8471 = vmatmul.mubr.msk.f32.vlgmr.msra.gmra.mxu1 %vm298_vm4, %v288_v22  ;;  %v295_v25 = vrot.slane %v281_v21, %v9766_v7  ;;  %v296_v26 = vcombine.high %v288_v22, %v288_v22  ;;  %8460 = vmatprep.subr.mxu0 %v158_v33  ;;  %v9941_v21 = vld [vmem:[%s11567_s7 + $0x10] sm:$0xff]  ;;  %v9948_v22 = vld [vmem:[%s11567_s7 + $0x8] sm:$0xff] }
  0x4d   :  { %8474 = vmatpush3.msra.mxu1 %v9777_v12  ;;  %8475 = vmatprep.mubr.msk.f32.mxu1 %vm9640_vm0, %v11577_v2 }
  0x4e   :  { %8478 = vmatprep.subr.mxu1 %v11577_v2  ;;  %v297_v27 = vcombine.high %v295_v25, %v295_v25  ;;  %8461 = vmatpush3.msra.mxu0 %v158_v33 }
  0x4f   :  { %8488 = vmatprep.subr.mxu0 %v11577_v2  ;;  %8463 = vmatmul.mubr.msk.f32.vlgmr.msra.gmra.mxu0 %vm169_vm6, %v9777_v12 }
  0x50   :  { %8476 = vmatmul.mubr.msk.f32.vlgmr.msra.gmra.mxu1 %vm298_vm4, %v295_v25  ;;  %8489 = vmatpush3.msra.mxu0 %v622_v34 }
  0x51   :  { %8479 = vmatpush3.msra.mxu1 %v9779_v13  ;;  %8480 = vmatprep.mubr.msk.f32.mxu1 %vm9640_vm0, %v11577_v2 }
  0x52   :  { %8483 = vmatprep.subr.mxu1 %v11577_v2  ;;  %8465 = vmatprep.mubr.msk.f32.mxu0 %vm169_vm6, %v9779_v13 }
  0x53   :  { %8490 = vmatprep.subr.mxu0 %v11577_v2  ;;  %8466 = vmatmul.mubr.msk.f32.gmra.mxu0 %vm169_vm6, %v9781_v14 }
  0x54   :  { %8481 = vmatmul.mubr.msk.f32.vlgmr.msra.gmra.mxu1 %vm298_vm4, %v296_v26  ;;  %8491 = vmatpush3.msra.mxu0 %v621_v35 }
  0x55   :  { %8484 = vmatpush3.msra.mxu1 %v9781_v14  ;;  %8485 = vmatprep.mubr.msk.f32.mxu1 %vm9640_vm0, %v11577_v2 }
  0x56   :  { %8499 = vmatprep.subr.mxu1 %v11577_v2  ;;  %8492 = vmatprep.subr.mxu0 %v11577_v2 }
  0x57   :  { %8493 = vmatpush3.msra.mxu0 %v620_v36  ;;  %8496 = vmatprep.mubr.msk.f32.mxu0 %vm9640_vm0, %v11577_v2  ;;  %v7987_v36 = vld [vmem:[%s11572_s12] ss:$0 sm:$0xff] }
  0x58   :  { %8486 = vmatmul.mubr.msk.f32.vlgmr.msra.gmra.mxu1 %vm298_vm4, %v297_v27  ;;  %8494 = vmatprep.subr.mxu0 %v11577_v2 }
  0x59   :  { %8500 = vmatpush3.msra.mxu1 %v9814_v28  ;;  %8501 = vmatprep.mubr.msk.f32.mxu1 %vm9640_vm0, %v11577_v2 }
  0x5a   :  { %8535 = vmatprep.subr.mxu1 %v11577_v2  ;;  %8495 = vmatpush3.msra.mxu0 %v619_v37 }
  0x5b   :  { %8504 = vmatprep.subr.mxu0 %v11577_v2 }
  0x66   :  { %270 = vadd.xlane.f32.xlu0 %v269_v29 }
  0xb6   :  { %v786_v24 = vpop.permute.xlu1 %785 }
  0xba   :  { %v795_v25 = vpop.permute.xlu1 %794 }
  0xc2   :  { %v706_v39 = vpop.permute.xlu0 %705 }
  0xc3   :  { %vm707_vm7 = vcmp.eq.s32.totalorder %v157_v38, %v706_v39 }
  0xc4   :  { %v7989_v40 = vsel %vm707_vm7, 1.0, %v11577_v2 }
  0xc5   :  { %8502 = vmatmul.mubr.msk.f32.vlgmr.msra.gmra.mxu1 %vm298_vm4, %v7989_v40  ;;  %v9984_v40 = vld [vmem:[%s11568_s8] ss:$0 sm:$0xff] }
  0xc6   :  { %8551 = vmatprep.mubr.msk.f32.mxu1 %vm9640_vm0, %v11577_v2 }
  0xef   :  { %v271_v41 = vpop.xlane.xlu0 %270 }
  0xf0   :  { %v272_v42 = vmax.f32 %v271_v41, 1.0 }
  0xf2   :  { %9242 = vrcp.f32 %v272_v42 }
  0xff   :  { %v9243_v43 = vpop.eup %9242 }
 0x100   :  { %v589_v45 = vrot.slane %v9243_v43, 1  ;;  %v590_v49 = vrot.slane %v9243_v43, 2  ;;  %v591_v55 = vrot.slane %v9243_v43, 3 }
 0x10c   :  { %v367_v44 = vpop.f32.mrf.mxu1 }
 0x10d   :  { %v596_v51 = vmul.f32 %v9243_v43, %v367_v44 }
 0x10e   :  { %v8472_v46 = vpop.f32.mrf.mxu1 }
 0x10f   :  { %v9969_v32 = vpop.f32.mrf.mxu0 }
 0x110   :  { %v439_v47 = vpop.f32.mrf.mxu1 }
 0x111   :  { %v597_v48 = vmul.f32 %v589_v45, %v439_v47  ;;  %v9971_v33 = vpop.f32.mrf.mxu0 }
 0x112   :  { %v8477_v50 = vpop.f32.mrf.mxu1 }
 0x113   :  { %v604_v52 = vrot.slane %v597_v48, 7  ;;  %v9973_v34 = vpop.f32.mrf.mxu0 }
 0x114   :  { %v511_v53 = vpop.f32.mrf.mxu1 }
 0x115   :  { %v598_v54 = vmul.f32 %v590_v49, %v511_v53  ;;  %v606_v57 = vsel %vm605_vm1, %v604_v52, %v596_v51  ;;  %v9975_v35 = vpop.f32.mrf.mxu0 }
 0x116   :  { %v8482_v56 = vpop.f32.mrf.mxu1 }
 0x117   :  { %v607_v58 = vrot.slane %v598_v54, 6  ;;  %v10001_v56 = vld [vmem:[%s11569_s9 + $0x30] sm:$0xff] }
 0x118   :  { %v583_v59 = vpop.f32.mrf.mxu1 }
 0x119   :  { %v599_v60 = vmul.f32 %v591_v55, %v583_v59  ;;  %v609_v61 = vsel %vm608_vm2, %v607_v58, %v606_v57  ;;  %v9996_v55 = vld [vmem:[%s11569_s9 + $0x38] sm:$0xff]  ;;  %v10008_v57 = vld [vmem:[%s11569_s9 + $0x28] sm:$0xff]  ;;  %v10015_v58 = vld [vmem:[%s11569_s9 + $0x20] sm:$0xff] }
 0x11a   :  { %v8487_v62 = vpop.f32.mrf.mxu1  ;;  %8536 = vmatpush3.msra.mxu1 %v9996_v55  ;;  %v10022_v59 = vld [vmem:[%s11569_s9 + $0x18] sm:$0xff] }
 0x11b   :  { %v610_v63 = vrot.slane %v599_v60, 5  ;;  %8537 = vmatprep.subr.mxu1 %v11577_v2  ;;  %v10031_v60 = vld [vmem:[%s11569_s9 + $0x10] sm:$0xff]  ;;  %v10045_v62 = vld [vmem:[%s11569_s9] sm:$0xff] }
 0x11c   :  { %8538 = vmatpush3.msra.mxu1 %v10001_v56 }
 0x11d   :  { %v9862_v1 = vsel %vm611_vm3, %v610_v63, %v609_v61  ;;  %8539 = vmatprep.subr.mxu1 %v11577_v2  ;;  %v10036_v61 = vld [vmem:[%s11569_s9 + $0x8] sm:$0xff] }
 0x11e   :  { %11595 = vst [vmem:[#allocation23_spill] sm:$0xff] %v9862_v1  ;;  %8497 = vmatmul.mubr.msk.f32.vlgmr.msra.gmra.mxu0 %vm169_vm6, %v9862_v1  ;;  %8540 = vmatpush3.msra.mxu1 %v10008_v57 }
 0x11f   :  { %8505 = vmatpush3.msra.mxu0 %v9859_v0  ;;  %8532 = vmatprep.mubr.msk.f32.mxu0 %vm9640_vm0, %v11577_v2 }
 0x120   :  { %8506 = vmatprep.subr.mxu0 %v11577_v2  ;;  %8541 = vmatprep.subr.mxu1 %v11577_v2 }
 0x121   :  { %8507 = vmatpush3.msra.mxu0 %v9869_v3  ;;  %8542 = vmatpush3.msra.mxu1 %v10015_v58 }
 0x122   :  { %8508 = vmatprep.subr.mxu0 %v11577_v2  ;;  %8543 = vmatprep.subr.mxu1 %v11577_v2 }
 0x123   :  { %8509 = vmatpush3.msra.mxu0 %v9878_v4  ;;  %8544 = vmatpush3.msra.mxu1 %v10022_v59 }
 0x124   :  { %8510 = vmatprep.subr.mxu0 %v11577_v2  ;;  %8545 = vmatprep.subr.mxu1 %v11577_v2 }
 0x125   :  { %8511 = vmatpush3.msra.mxu0 %v9885_v6  ;;  %8546 = vmatpush3.msra.mxu1 %v10031_v60 }
 0x126   :  { %8512 = vmatprep.subr.mxu0 %v11577_v2  ;;  %8547 = vmatprep.subr.mxu1 %v11577_v2 }
 0x127   :  { %8513 = vmatpush3.msra.mxu0 %v9892_v8  ;;  %8548 = vmatpush3.msra.mxu1 %v10036_v61 }
 0x128   :  { %8514 = vmatprep.subr.mxu0 %v11577_v2  ;;  %8549 = vmatprep.subr.mxu1 %v11577_v2 }
 0x129   :  { %8515 = vmatpush3.msra.mxu0 %v9899_v11  ;;  %8550 = vmatpush3.msra.mxu1 %v10045_v62 }
 0x12a   :  { %8516 = vmatprep.subr.mxu0 %v11577_v2  ;;  %8554 = vmatprep.subr.mxu1 %v11577_v2 }
 0x12b   :  { %8517 = vmatpush3.msra.mxu0 %v9906_v16 }
 0x12c   :  { %8518 = vmatprep.subr.mxu0 %v11577_v2 }
 0x12d   :  { %8519 = vmatpush3.msra.mxu0 %v9913_v17 }
 0x12e   :  { %8520 = vmatprep.subr.mxu0 %v11577_v2 }
 0x12f   :  { %8521 = vmatpush3.msra.mxu0 %v9920_v18 }
 0x130   :  { %8522 = vmatprep.subr.mxu0 %v11577_v2 }
 0x131   :  { %8523 = vmatpush3.msra.mxu0 %v9927_v19 }
 0x132   :  { %8524 = vmatprep.subr.mxu0 %v11577_v2 }
 0x133   :  { %8525 = vmatpush3.msra.mxu0 %v9934_v20 }
 0x134   :  { %8526 = vmatprep.subr.mxu0 %v11577_v2 }
 0x135   :  { %8527 = vmatpush3.msra.mxu0 %v9941_v21 }
 0x136   :  { %8528 = vmatprep.subr.mxu0 %v11577_v2 }
 0x137   :  { %8529 = vmatpush3.msra.mxu0 %v9948_v22 }
 0x138   :  { %8530 = vmatprep.subr.mxu0 %v11577_v2 }
 0x139   :  { %8531 = vmatpush3.msra.mxu0 %v9955_v23 }
 0x13a   :  { %8579 = vmatprep.subr.mxu0 %v11577_v2 }
 0x185   :  { %v779_v26 = vpop.f32.mrf.mxu1 }
 0x186   :  { %v798_v27 = vsel %vm797_vm8, %v779_v26, %v786_v24 }
 0x187   :  { %v800_v29 = vsel %vm799_vm9, %v798_v27, %v795_v25  ;;  %v8503_v30 = vpop.f32.mrf.mxu1  ;;  %v10052_v25 = vsub.s32 0, %v9763_v5 }
 0x188   :  { %v802_v31 = vsel %vm801_vm10, %v800_v29, 0.0 }
 0x189   :  { %8533 = vmatmul.mubr.msk.f32.vlgmr.msra.gmra.mxu0 %vm803_vm11, %v802_v31 }
 0x18a   :  { %8580 = vmatpush3.msra.mxu0 %v9771_v9  ;;  %8581 = vmatprep.mubr.msk.f32.mxu0 %vm9640_vm0, %v11577_v2 }
 0x18b   :  { %8589 = vmatprep.subr.mxu0 %v11577_v2 }
 0x1de   :  { %v698_v37 = vpop.f32.mrf.mxu0 }
 0x1df   :  { %v699_v38 = vadd.f32 %v7987_v36, %v698_v37 }
 0x1e0   :  { %v8498_v39 = vpop.f32.mrf.mxu0 }
 0x1e1   :  { %702 = vst.msk [vmem:[#allocation12] sm:$0xf] %vm268_vm5, %v699_v38 }
 0x249   :  { %v873_v41 = vpop.f32.mrf.mxu0 }
 0x24a   :  { %v874_v42 = vadd.f32 %v9984_v40, %v873_v41  ;;  %v10080_v41 = vld [vmem:[%s11570_s10] ss:$0 sm:$0xff] }
 0x24b   :  { %v8534_v43 = vpop.f32.mrf.mxu0 }
 0x24c   :  { %9244 = vtanh.f32 %v874_v42  ;;  %v7992_v45 = vmul.f32 -1.442695, %v874_v42 }
 0x24e   :  { %9246 = vpow2.f32 %v7992_v45 }
 0x259   :  { %v9245_v44 = vpop.eup %9244 }
 0x25a   :  { %886 = vrot.lane.b32.xlu1 %v9245_v44, %s9644_s22 }
 0x25b   :  { %v9247_v46 = vpop.eup %9246 }
 0x25c   :  { %v880_v47 = vadd.f32 1.0, %v9247_v46 }
 0x25e   :  { %9248 = vrcp.f32 %v880_v47 }
 0x26b   :  { %v9249_v48 = vpop.eup %9248 }
 0x26c   :  { %v884_v51 = vmul.f32 0.0, %v9249_v48 }
 0x2cc   :  { %v887_v49 = vpop.permute.xlu1 %886 }
 0x2cd   :  { %v889_v50 = vmul.f32 %v9249_v48, %v887_v49 }
 0x2cf   :  { %891 = vrot.lane.b32.xlu1 %v889_v50, %s9644_s22 }
 0x341   :  { %v892_v52 = vpop.permute.xlu1 %891 }
 0x342   :  { %v9989_v53 = vadd.f32 %v892_v52, %v884_v51 }
 0x344   :  { %9250 = vtanh.f32 %v9989_v53 }
 0x351   :  { %v9251_v54 = vpop.eup %9250 }
 0x352   :  { %897 = vrot.lane.b32.xlu1 %v9251_v54, %s9644_s22 }
 0x3c4   :  { %v898_v63 = vpop.permute.xlu1 %897 }
 0x3c5   :  { %v10049_v24 = vmul.f32 %v9249_v48, %v898_v63  ;;  %v7978_v48 = vld [vmem:[%s11566_s6] ss:$0 sm:$0xff] }
 0x3c6   :  { %v10094_v50 = vadd.f32 %v7978_v48, %v9971_v33  ;;  %v10104_v54 = vadd.f32 %v9969_v32, %v7978_v48  ;;  %v10113_v63 = vadd.f32 %v7978_v48, %v9975_v35  ;;  %v10122_v32 = vadd.f32 %v9973_v34, %v7978_v48 }
 0x3c7   :  { %v1068_v26 = vrot.slane %v10049_v24, %v9766_v7  ;;  %902 = vrot.lane.b32.xlu1 %v10049_v24, %s9645_s2 }
 0x3c9   :  { %v1076_v27 = vrot.slane %v1068_v26, %v9766_v7  ;;  %v1069_v29 = vcombine.high %v1068_v26, %v1068_v26 }
 0x3cb   :  { %905 = vrot.lane.b32.xlu1 %v9784_v15, %s9644_s22  ;;  %v1089_v30 = vrot.slane %v1076_v27, %v10052_v25  ;;  %v1083_v31 = vrot.slane %v1069_v29, %v9766_v7  ;;  %v1084_v36 = vcombine.high %v1076_v27, %v1076_v27 }
 0x3cd   :  { %1090 = vrot.lane.b32.xlu0 %v1089_v30, %s9645_s2  ;;  %v1170_v5 = vrot.slane %v1083_v31, %v10052_v25  ;;  %v1251_v37 = vrot.slane %v1084_v36, %v10052_v25  ;;  %v1085_v46 = vcombine.high %v1083_v31, %v1083_v31  ;;  %v10138_v30 = vmul.f32 -1e+12, %v9773_v10 }
 0x3cf   :  { %v1332_v47 = vrot.slane %v1085_v46, %v10052_v25 }
 0x3d1   :  { %1171 = vrot.lane.b32.xlu0 %v1170_v5, %s9645_s2  ;;  %v10141_v5 = vrot.slane %v10138_v30, 1 }
 0x3d5   :  { %1252 = vrot.lane.b32.xlu0 %v1251_v37, %s9645_s2  ;;  %v10144_v37 = vrot.slane %v10138_v30, 2 }
 0x439   :  { %v903_v38 = vpop.permute.xlu1 %902 }
 0x43d   :  { %v906_v39 = vpop.permute.xlu1 %905 }
 0x43e   :  { %v10069_v15 = vsel %vm169_vm6, %v903_v38, %v906_v39 }
 0x43f   :  { %11596 = vst [vmem:[#allocation24_spill] sm:$0xff] %v10069_v15  ;;  %8552 = vmatmul.mubr.msk.f32.vlgmr.msra.gmra.mxu1 %vm909_vm12, %v10069_v15  ;;  %v1091_v51 = vpop.permute.xlu0 %1090 }
 0x440   :  { %8555 = vmatpush3.msra.mxu1 %v9814_v28  ;;  %8556 = vmatprep.mubr.msk.f32.mxu1 %vm9640_vm0, %v11577_v2 }
 0x441   :  { %8559 = vmatprep.subr.mxu1 %v11577_v2 }
 0x443   :  { %v1172_v33 = vpop.permute.xlu0 %1171 }
 0x447   :  { %v1253_v26 = vpop.permute.xlu0 %1252 }
 0x4ff   :  { %v979_v42 = vpop.f32.mrf.mxu1 }
 0x500   :  { %v10083_v43 = vadd.f32 %v10080_v41, %v979_v42 }
 0x501   :  { %v8553_v44 = vpop.f32.mrf.mxu1 }
 0x502   :  { %11597 = vst [vmem:[#allocation25_spill] sm:$0xff] %v10083_v43  ;;  %v983_v45 = vsel %vm268_vm5, %v10083_v43, -inf }
 0x503   :  { %984 = vmax.xlane.f32.xlu1 %v983_v45  ;;  %v10149_v45 = vrot.slane %v10138_v30, 3 }
 0x505   :  { %11598 = vst [vmem:[#allocation26_spill] sm:$0xff] %v10149_v45 }
 0x514   :  { %1333 = vrot.lane.b32.xlu1 %v1332_v47, %s9645_s2 }
 0x58c   :  { %v985_v49 = vpop.xlane.xlu1 %984 }
 0x58d   :  { %vm986_vm13 = vcmp.eq.f32.partialorder %v10083_v43, %v985_v49 }
 0x58e   :  { %v7994_v52 = vsel %vm986_vm13, 1.0, %v11577_v2 }
 0x58f   :  { %8557 = vmatmul.mubr.msk.f32.vlgmr.msra.gmra.mxu1 %vm298_vm4, %v7994_v52 }
 0x590   :  { %8560 = vmatpush3.xpose.msk.msra.mxu1 %vm169_vm6, %v10094_v50  ;;  %8561 = vmatprep.mubr.msk.f32.mxu1 %vm9640_vm0, %v11577_v2  ;;  %v1334_v35 = vpop.permute.xlu1 %1333 }
 0x591   :  { %8564 = vmatprep.subr.mxu1 %v11577_v2 }
 0x593   :  { %8562 = vmatmul.mubr.msk.f32.vlgmr.msra.gmra.mxu1 %vm169_vm6, %v1091_v51 }
 0x594   :  { %8565 = vmatpush3.xpose.msk.msra.mxu1 %vm169_vm6, %v10104_v54  ;;  %8566 = vmatprep.mubr.msk.f32.mxu1 %vm9640_vm0, %v11577_v2 }
 0x595   :  { %8569 = vmatprep.subr.mxu1 %v11577_v2 }
 0x597   :  { %8567 = vmatmul.mubr.msk.f32.vlgmr.msra.gmra.mxu1 %vm169_vm6, %v1172_v33 }
 0x598   :  { %8570 = vmatpush3.xpose.msk.msra.mxu1 %vm169_vm6, %v10113_v63  ;;  %8571 = vmatprep.mubr.msk.f32.mxu1 %vm9640_vm0, %v11577_v2 }
 0x599   :  { %8574 = vmatprep.subr.mxu1 %v11577_v2 }
 0x59b   :  { %8572 = vmatmul.mubr.msk.f32.vlgmr.msra.gmra.mxu1 %vm169_vm6, %v1253_v26 }
 0x59c   :  { %8575 = vmatpush3.xpose.msk.msra.mxu1 %vm169_vm6, %v10122_v32  ;;  %8576 = vmatprep.mubr.msk.f32.mxu1 %vm9640_vm0, %v11577_v2 }
 0x59d   :  { %8584 = vmatprep.subr.mxu1 %v11577_v2 }
 0x59f   :  { %8577 = vmatmul.mubr.msk.f32.vlgmr.msra.gmra.mxu1 %vm169_vm6, %v1334_v35 }
 0x5a0   :  { %8585 = vmatpush3.msra.mxu1 %v9777_v12  ;;  %8586 = vmatprep.mubr.msk.f32.mxu1 %vm9640_vm0, %v11577_v2 }
 0x5a1   :  { %8594 = vmatprep.subr.mxu1 %v11577_v2 }
 0x64f   :  { %v10135_v34 = vpop.f32.mrf.mxu1 }
 0x651   :  { %v8558_v27 = vpop.f32.mrf.mxu1 }
 0x653   :  { %v1163_v29 = vpop.f32.mrf.mxu1 }
 0x654   :  { %v1418_v49 = vadd.f32 %v1163_v29, %v10138_v30 }
 0x655   :  { %v8563_v31 = vpop.f32.mrf.mxu1 }
 0x657   :  { %v1244_v36 = vpop.f32.mrf.mxu1 }
 0x658   :  { %v1419_v39 = vadd.f32 %v10141_v5, %v1244_v36 }
 0x659   :  { %v8568_v38 = vpop.f32.mrf.mxu1 }
 0x65a   :  { %v1426_v10 = vrot.slane %v1419_v39, 7 }
 0x65b   :  { %v1325_v42 = vpop.f32.mrf.mxu1 }
 0x65c   :  { %v1420_v44 = vadd.f32 %v10144_v37, %v1325_v42  ;;  %v1427_v26 = vsel %vm605_vm1, %v1426_v10, %v1418_v49 }
 0x65d   :  { %v8573_v46 = vpop.f32.mrf.mxu1 }
 0x65e   :  { %v1428_v47 = vrot.slane %v1420_v44, 6 }
 0x65f   :  { %v1406_v48 = vpop.f32.mrf.mxu1 }
 0x660   :  { %v1421_v51 = vadd.f32 %v10149_v45, %v1406_v48  ;;  %v1429_v35 = vsel %vm608_vm2, %v1428_v47, %v1427_v26 }
 0x661   :  { %v8578_v52 = vpop.f32.mrf.mxu1 }
 0x662   :  { %v1430_v33 = vrot.slane %v1421_v51, 5 }
 0x664   :  { %v1431_v27 = vsel %vm611_vm3, %v1430_v33, %v1429_v35 }
 0x665   :  { %v1433_v31 = vsel %vm268_vm5, %v1431_v27, -inf }
 0x666   :  { %1434 = vmax.xlane.f32.xlu0 %v1433_v31 }
 0x6ef   :  { %v1435_v36 = vpop.xlane.xlu0 %1434 }
 0x6f0   :  { %v1437_v38 = vrot.slane %v1435_v36, 1  ;;  %v1438_v42 = vrot.slane %v1435_v36, 2  ;;  %v1439_v46 = vrot.slane %v1435_v36, 3  ;;  %v1444_v2 = vsub.f32 %v1418_v49, %v1435_v36 }
 0x6f2   :  { %v1445_v15 = vsub.f32 %v1419_v39, %v1437_v38  ;;  %v1446_v29 = vsub.f32 %v1420_v44, %v1438_v42  ;;  %v1447_v43 = vsub.f32 %v1421_v51, %v1439_v46  ;;  %v1448_v48 = vmul.f32 1.442695, %v1444_v2 }
 0x6f3   :  { %v11599_v42 = vmov 0.0  }
 0x6f4   :  { %v1450_v52 = vmul.f32 1.442695, %v1445_v15  ;;  %v1452_v1 = vmul.f32 1.442695, %v1446_v29  ;;  %v1454_v45 = vmul.f32 1.442695, %v1447_v43  ;;  %9252 = vpow2.f32 %v1448_v48 }
 0x6f5   :  { %v1788_v48 = vrot.slane %v9771_v9, 1 }
 0x6f6   :  { %9254 = vpow2.f32 %v1450_v52  ;;  %v1790_v52 = vrot.slane %v9779_v13, 7 }
 0x6f7   :  { %9256 = vpow2.f32 %v1452_v1 }
 0x6f8   :  { %9258 = vpow2.f32 %v1454_v45 }
 0x701   :  { %v9253_v10 = vpop.eup %9252 }
 0x703   :  { %v9255_v47 = vpop.eup %9254 }
 0x704   :  { %v9257_v33 = vpop.eup %9256  ;;  %v1460_v26 = vrot.slane %v9255_v47, 7 }
 0x705   :  { %v9259_v35 = vpop.eup %9258  ;;  %v1462_v27 = vrot.slane %v9257_v33, 6 }
 0x706   :  { %v1461_v31 = vsel %vm605_vm1, %v1460_v26, %v9253_v10  ;;  %v1464_v49 = vrot.slane %v9259_v35, 5 }
 0x707   :  { %v1463_v39 = vsel %vm608_vm2, %v1462_v27, %v1461_v31 }
 0x708   :  { %v1465_v2 = vsel %vm611_vm3, %v1464_v49, %v1463_v39 }
 0x709   :  { %v1467_v15 = vsel %vm268_vm5, %v1465_v2, 0.0 }
 0x70a   :  { %1468 = vadd.xlane.f32.xlu1 %v1467_v15 }
 0x793   :  { %v1469_v43 = vpop.xlane.xlu1 %1468 }
 0x794   :  { %9260 = vrcp.f32 %v1469_v43 }
 0x7a1   :  { %v9261_v1 = vpop.eup %9260 }
 0x7a2   :  { %v1479_v44 = vmul.f32 %v9261_v1, %v9253_v10  ;;  %v1472_v45 = vrot.slane %v9261_v1, 1  ;;  %v1473_v51 = vrot.slane %v9261_v1, 2  ;;  %v1474_v38 = vrot.slane %v9261_v1, 3 }
 0x7a3   :  { %v1789_v10 = vsel %vm605_vm1, %v9777_v12, %v1788_v48 }
 0x7a4   :  { %8582 = vmatmul.mubr.msk.f32.vlgmr.msra.gmra.mxu0 %vm298_vm4, %v1479_v44  ;;  %v1480_v36 = vmul.f32 %v9255_v47, %v1472_v45  ;;  %v1481_v46 = vmul.f32 %v9257_v33, %v1473_v51  ;;  %v1482_v29 = vmul.f32 %v9259_v35, %v1474_v38  ;;  %v1792_v47 = vrot.slane %v9781_v14, 6 }
 0x7a5   :  { %8590 = vmatpush3.msra.mxu0 %v9779_v13  ;;  %8591 = vmatprep.mubr.msk.f32.mxu0 %vm9640_vm0, %v11599_v42  ;;  %v1791_v33 = vsel %vm608_vm2, %v1790_v52, %v1789_v10 }
 0x7a6   :  { %8587 = vmatmul.mubr.msk.f32.vlgmr.msra.gmra.mxu1 %vm298_vm4, %v1480_v36  ;;  %8599 = vmatprep.subr.mxu0 %v11599_v42  ;;  %v1793_v26 = vsel %vm611_vm3, %v1792_v47, %v1791_v33 }
 0x7a7   :  { %8595 = vmatpush3.msra.mxu1 %v9781_v14  ;;  %8596 = vmatprep.mubr.msk.f32.mxu1 %vm9640_vm0, %v11599_v42 }
 0x7a8   :  { %8592 = vmatmul.mubr.msk.f32.vlgmr.msra.gmra.mxu0 %vm298_vm4, %v1481_v46  ;;  %8630 = vmatprep.subr.mxu1 %v11599_v42 }
 0x7a9   :  { %8600 = vmatpush3.msra.mxu0 %v9859_v0  ;;  %8627 = vmatprep.mubr.msk.f32.mxu0 %vm9640_vm0, %v11599_v42 }
 0x7aa   :  { %8597 = vmatmul.mubr.msk.f32.vlgmr.msra.gmra.mxu1 %vm298_vm4, %v1482_v29  ;;  %8601 = vmatprep.subr.mxu0 %v11599_v42 }
 0x7ab   :  { %8602 = vmatpush3.msra.mxu0 %v9869_v3  ;;  %8631 = vmatpush3.msra.mxu1 %v9996_v55 }
 0x7ac   :  { %8603 = vmatprep.subr.mxu0 %v11599_v42  ;;  %8632 = vmatprep.subr.mxu1 %v11599_v42 }
 0x7ad   :  { %8604 = vmatpush3.msra.mxu0 %v9878_v4  ;;  %8633 = vmatpush3.msra.mxu1 %v10001_v56 }
 0x7ae   :  { %8605 = vmatprep.subr.mxu0 %v11599_v42  ;;  %8634 = vmatprep.subr.mxu1 %v11599_v42 }
 0x7af   :  { %8606 = vmatpush3.msra.mxu0 %v9885_v6  ;;  %8635 = vmatpush3.msra.mxu1 %v10008_v57 }
 0x7b0   :  { %8607 = vmatprep.subr.mxu0 %v11599_v42  ;;  %8636 = vmatprep.subr.mxu1 %v11599_v42 }
 0x7b1   :  { %8608 = vmatpush3.msra.mxu0 %v9892_v8  ;;  %8637 = vmatpush3.msra.mxu1 %v10015_v58 }
 0x7b2   :  { %8609 = vmatprep.subr.mxu0 %v11599_v42  ;;  %8638 = vmatprep.subr.mxu1 %v11599_v42 }
 0x7b3   :  { %8610 = vmatpush3.msra.mxu0 %v9899_v11  ;;  %8639 = vmatpush3.msra.mxu1 %v10022_v59 }
 0x7b4   :  { %8611 = vmatprep.subr.mxu0 %v11599_v42  ;;  %8640 = vmatprep.subr.mxu1 %v11599_v42 }
 0x7b5   :  { %8612 = vmatpush3.msra.mxu0 %v9906_v16  ;;  %8641 = vmatpush3.msra.mxu1 %v10031_v60 }
 0x7b6   :  { %8613 = vmatprep.subr.mxu0 %v11599_v42  ;;  %8642 = vmatprep.subr.mxu1 %v11599_v42 }
 0x7b7   :  { %8614 = vmatpush3.msra.mxu0 %v9913_v17  ;;  %8643 = vmatpush3.msra.mxu1 %v10036_v61 }
 0x7b8   :  { %8615 = vmatprep.subr.mxu0 %v11599_v42  ;;  %8644 = vmatprep.subr.mxu1 %v11599_v42 }
 0x7b9   :  { %8616 = vmatpush3.msra.mxu0 %v9920_v18  ;;  %8645 = vmatpush3.msra.mxu1 %v10045_v62 }
 0x7ba   :  { %8617 = vmatprep.subr.mxu0 %v11599_v42  ;;  %8646 = vmatprep.mubr.msk.f32.mxu1 %vm9640_vm0, %v11599_v42 }
 0x7bb   :  { %8618 = vmatpush3.msra.mxu0 %v9927_v19  ;;  %8649 = vmatprep.subr.mxu1 %v11599_v42 }
 0x7bc   :  { %8619 = vmatprep.subr.mxu0 %v11599_v42  ;;  %1794 = vrot.lane.b32.xlu1 %v1793_v26, %s9643_s18 }
 0x7bd   :  { %8620 = vmatpush3.msra.mxu0 %v9934_v20 }
 0x7be   :  { %8621 = vmatprep.subr.mxu0 %v11599_v42 }
 0x7bf   :  { %8622 = vmatpush3.msra.mxu0 %v9941_v21 }
 0x7c0   :  { %8623 = vmatprep.subr.mxu0 %v11599_v42 }
 0x7c1   :  { %8624 = vmatpush3.msra.mxu0 %v9948_v22 }
 0x7c2   :  { %8625 = vmatprep.subr.mxu0 %v11599_v42 }
 0x7c3   :  { %8626 = vmatpush3.msra.mxu0 %v9955_v23 }
 0x7c4   :  { %8664 = vmatprep.subr.mxu0 %v11599_v42 }
 0x82e   :  { %v1795_v38 = vpop.permute.xlu1 %1794 }
 0x864   :  { %v1552_v35 = vpop.f32.mrf.mxu0 }
 0x866   :  { %v8583_v27 = vpop.f32.mrf.mxu0  ;;  %v1625_v31 = vpop.f32.mrf.mxu1 }
 0x867   :  { %v1779_v49 = vrot.slane %v1625_v31, 7 }
 0x868   :  { %v8588_v39 = vpop.f32.mrf.mxu1  ;;  %v1698_v2 = vpop.f32.mrf.mxu0 }
 0x869   :  { %v1780_v15 = vsel %vm605_vm1, %v1779_v49, %v1552_v35  ;;  %v1781_v13 = vrot.slane %v1698_v2, 6 }
 0x86a   :  { %v8593_v43 = vpop.f32.mrf.mxu0  ;;  %v1771_v1 = vpop.f32.mrf.mxu1 }
 0x86b   :  { %v1783_v12 = vrot.slane %v1771_v1, 5  ;;  %v1782_v14 = vsel %vm608_vm2, %v1781_v13, %v1780_v15 }
 0x86c   :  { %v8598_v44 = vpop.f32.mrf.mxu1 }
 0x86d   :  { %v1784_v45 = vsel %vm611_vm3, %v1783_v12, %v1782_v14 }
 0x86e   :  { %1904 = vrot.lane.b32.xlu1 %v1784_v45, %s9644_s22  ;;  %1785 = vrot.lane.b32.xlu0 %v1784_v45, %s9642_s17 }
 0x872   :  { %1797 = vrot.lane.b32.xlu0 %v10049_v24, %s9642_s17 }
 0x8e0   :  { %v1786_v51 = vpop.permute.xlu0 %1785 }
 0x8e1   :  { %v1800_v36 = vsel %vm797_vm8, %v10135_v34, %v1786_v51 }
 0x8e2   :  { %v1801_v46 = vsel %vm799_vm9, %v1800_v36, %v1795_v38 }
 0x8e4   :  { %v1798_v29 = vpop.permute.xlu0 %1797 }
 0x8e5   :  { %v1802_v48 = vsel %vm801_vm10, %v1801_v46, %v1798_v29  ;;  %v1905_v29 = vpop.permute.xlu1 %1904 }
 0x8e6   :  { %8628 = vmatmul.mubr.msk.f32.vlgmr.msra.gmra.mxu0 %vm803_vm11, %v1802_v48 }
 0x8e7   :  { %8665 = vmatpush3.xpose.msk.msra.mxu0 %vm169_vm6, %v10113_v63  ;;  %8666 = vmatprep.mubr.msk.f32.mxu0 %vm9640_vm0, %v11599_v42 }
 0x8e8   :  { %8674 = vmatprep.subr.mxu0 %v11599_v42 }
 0x9a6   :  { %v1872_v24 = vpop.f32.mrf.mxu0 }
 0x9a7   :  { %v1873_v52 = vadd.f32 %v9984_v40, %v1872_v24 }
 0x9a8   :  { %v8629_v34 = vpop.f32.mrf.mxu0 }
 0x9a9   :  { %9262 = vtanh.f32 %v1873_v52  ;;  %v8009_v47 = vmul.f32 -1.442695, %v1873_v52 }
 0x9ab   :  { %9264 = vpow2.f32 %v8009_v47 }
 0x9b6   :  { %v9263_v10 = vpop.eup %9262 }
 0x9b7   :  { %1885 = vrot.lane.b32.xlu0 %v9263_v10, %s9644_s22 }
 0x9b8   :  { %v9265_v33 = vpop.eup %9264 }
 0x9b9   :  { %v1879_v26 = vadd.f32 1.0, %v9265_v33 }
 0x9bb   :  { %9266 = vrcp.f32 %v1879_v26 }
 0x9c8   :  { %v9267_v35 = vpop.eup %9266 }
 0x9c9   :  { %v1883_v49 = vmul.f32 %v9267_v35, %v9989_v53 }
 0xa29   :  { %v1886_v27 = vpop.permute.xlu0 %1885 }
 0xa2a   :  { %v1888_v31 = vmul.f32 %v9267_v35, %v1886_v27 }
 0xa2c   :  { %1890 = vrot.lane.b32.xlu0 %v1888_v31, %s9644_s22 }
 0xa9e   :  { %v1891_v39 = vpop.permute.xlu0 %1890 }
 0xa9f   :  { %v10250_v2 = vadd.f32 %v1891_v39, %v1883_v49  ;;  %v10310_v39 = vld [vmem:[#allocation5 + $0x8] sm:$0xff] }
 0xaa1   :  { %9268 = vtanh.f32 %v10250_v2 }
 0xaae   :  { %v9269_v15 = vpop.eup %9268 }
 0xaaf   :  { %1896 = vrot.lane.b32.xlu0 %v9269_v15, %s9644_s22 }
 0xb21   :  { %v1897_v13 = vpop.permute.xlu0 %1896 }
 0xb22   :  { %v10254_v43 = vmul.f32 %v9267_v35, %v1897_v13 }
 0xb24   :  { %v2066_v1 = vrot.slane %v10254_v43, %v9766_v7  ;;  %1901 = vrot.lane.b32.xlu0 %v10254_v43, %s9645_s2 }
 0xb26   :  { %v2074_v12 = vrot.slane %v2066_v1, %v9766_v7  ;;  %v2067_v53 = vcombine.high %v2066_v1, %v2066_v1 }
 0xb28   :  { %v2087_v14 = vrot.slane %v2074_v12, %v10052_v25  ;;  %v2081_v44 = vrot.slane %v2067_v53, %v9766_v7  ;;  %v2082_v51 = vcombine.high %v2074_v12, %v2074_v12 }
 0xb2a   :  { %2088 = vrot.lane.b32.xlu1 %v2087_v14, %s9645_s2  ;;  %v2165_v45 = vrot.slane %v2081_v44, %v10052_v25  ;;  %v2243_v36 = vrot.slane %v2082_v51, %v10052_v25  ;;  %v2083_v38 = vcombine.high %v2081_v44, %v2081_v44 }
 0xb2c   :  { %v2321_v46 = vrot.slane %v2083_v38, %v10052_v25 }
 0xb2e   :  { %2166 = vrot.lane.b32.xlu1 %v2165_v45, %s9645_s2 }
 0xb32   :  { %2244 = vrot.lane.b32.xlu1 %v2243_v36, %s9645_s2 }
 0xb36   :  { %2322 = vrot.lane.b32.xlu1 %v2321_v46, %s9645_s2  ;;  %v11602_v46 = vld [vmem:[#allocation26_spill] sm:$0xff] }
 0xb96   :  { %v1902_v48 = vpop.permute.xlu0 %1901 }
 0xb97   :  { %v10271_v24 = vsel %vm169_vm6, %v1902_v48, %v1905_v29 }
 0xb98   :  { %11600 = vst [vmem:[#allocation27_spill] sm:$0xff] %v10271_v24  ;;  %8647 = vmatmul.mubr.msk.f32.vlgmr.msra.gmra.mxu1 %vm909_vm12, %v10271_v24 }
 0xb99   :  { %8650 = vmatpush3.msra.mxu1 %v9814_v28  ;;  %8651 = vmatprep.mubr.msk.f32.mxu1 %vm9640_vm0, %v11599_v42 }
 0xb9a   :  { %8654 = vmatprep.subr.mxu1 %v11599_v42 }
 0xb9c   :  { %v2089_v52 = vpop.permute.xlu1 %2088 }
 0xba0   :  { %v2167_v34 = vpop.permute.xlu1 %2166 }
 0xba4   :  { %v2245_v10 = vpop.permute.xlu1 %2244 }
 0xba5   :  { %8667 = vmatmul.mubr.msk.f32.vlgmr.msra.gmra.mxu0 %vm169_vm6, %v2245_v10 }
 0xba6   :  { %8675 = vmatpush3.msra.mxu0 %v9771_v9  ;;  %8676 = vmatprep.mubr.msk.f32.mxu0 %vm9640_vm0, %v11599_v42 }
 0xba7   :  { %8684 = vmatprep.subr.mxu0 %v11599_v42 }
 0xba8   :  { %v2323_v49 = vpop.permute.xlu1 %2322 }
 0xc58   :  { %v1977_v47 = vpop.f32.mrf.mxu1 }
 0xc59   :  { %v10285_v28 = vadd.f32 %v10080_v41, %v1977_v47 }
 0xc5a   :  { %v8648_v33 = vpop.f32.mrf.mxu1 }
 0xc5b   :  { %11601 = vst [vmem:[#allocation28_spill] sm:$0xff] %v10285_v28  ;;  %v1981_v26 = vsel %vm268_vm5, %v10285_v28, -inf }
 0xc5c   :  { %1982 = vmax.xlane.f32.xlu0 %v1981_v26 }
 0xc65   :  { %v2314_v35 = vpop.f32.mrf.mxu0 }
 0xc66   :  { %v2398_v44 = vadd.f32 %v2314_v35, %v10144_v37 }
 0xc67   :  { %v8668_v27 = vpop.f32.mrf.mxu0 }
 0xce5   :  { %v1983_v31 = vpop.xlane.xlu0 %1982 }
 0xce6   :  { %vm1984_vm14 = vcmp.eq.f32.partialorder %v10285_v28, %v1983_v31 }
 0xce7   :  { %v8011_v9 = vsel %vm1984_vm14, 1.0, %v11599_v42 }
 0xce8   :  { %8652 = vmatmul.mubr.msk.f32.vlgmr.msra.gmra.mxu1 %vm298_vm4, %v8011_v9 }
 0xce9   :  { %8655 = vmatpush3.xpose.msk.msra.mxu1 %vm169_vm6, %v10094_v50  ;;  %8656 = vmatprep.mubr.msk.f32.mxu1 %vm9640_vm0, %v11599_v42 }
 0xcea   :  { %8659 = vmatprep.subr.mxu1 %v11599_v42 }
 0xcec   :  { %8657 = vmatmul.mubr.msk.f32.vlgmr.msra.gmra.mxu1 %vm169_vm6, %v2089_v52  ;;  %v2406_v52 = vrot.slane %v2398_v44, 6 }
 0xced   :  { %8660 = vmatpush3.xpose.msk.msra.mxu1 %vm169_vm6, %v10104_v54  ;;  %8661 = vmatprep.mubr.msk.f32.mxu1 %vm9640_vm0, %v11599_v42 }
 0xcee   :  { %8669 = vmatprep.subr.mxu1 %v11599_v42 }
 0xcf0   :  { %8662 = vmatmul.mubr.msk.f32.vlgmr.msra.gmra.mxu1 %vm169_vm6, %v2167_v34 }
 0xcf1   :  { %8670 = vmatpush3.xpose.msk.msra.mxu1 %vm169_vm6, %v10122_v32  ;;  %8671 = vmatprep.mubr.msk.f32.mxu1 %vm9640_vm0, %v11599_v42 }
 0xcf2   :  { %8679 = vmatprep.subr.mxu1 %v11599_v42 }
 0xcf4   :  { %8672 = vmatmul.mubr.msk.f32.vlgmr.msra.gmra.mxu1 %vm169_vm6, %v2323_v49 }
 0xcf5   :  { %8680 = vmatpush3.msra.mxu1 %v10310_v39  ;;  %8681 = vmatprep.mubr.msk.f32.mxu1 %vm9640_vm0, %v11599_v42 }
 0xcf6   :  { %8689 = vmatprep.subr.mxu1 %v11599_v42 }
 0xda8   :  { %v10316_v15 = vpop.f32.mrf.mxu1 }
 0xdaa   :  { %v8653_v13 = vpop.f32.mrf.mxu1 }
 0xdac   :  { %v2158_v1 = vpop.f32.mrf.mxu1 }
 0xdad   :  { %v2396_v51 = vadd.f32 %v2158_v1, %v10138_v30 }
 0xdae   :  { %v8658_v12 = vpop.f32.mrf.mxu1 }
 0xdb0   :  { %v2236_v53 = vpop.f32.mrf.mxu1 }
 0xdb1   :  { %v2397_v14 = vadd.f32 %v2236_v53, %v10141_v5 }
 0xdb2   :  { %v8663_v45 = vpop.f32.mrf.mxu1 }
 0xdb3   :  { %v2404_v36 = vrot.slane %v2397_v14, 7 }
 0xdb4   :  { %v2392_v38 = vpop.f32.mrf.mxu1 }
 0xdb5   :  { %v2399_v29 = vadd.f32 %v2392_v38, %v11602_v46  ;;  %v2405_v48 = vsel %vm605_vm1, %v2404_v36, %v2396_v51 }
 0xdb6   :  { %v8673_v34 = vpop.f32.mrf.mxu1  ;;  %v2407_v47 = vsel %vm608_vm2, %v2406_v52, %v2405_v48 }
 0xdb7   :  { %v2408_v10 = vrot.slane %v2399_v29, 5 }
 0xdb9   :  { %v2409_v33 = vsel %vm611_vm3, %v2408_v10, %v2407_v47 }
 0xdba   :  { %v2411_v26 = vsel %vm268_vm5, %v2409_v33, -inf }
 0xdbb   :  { %2412 = vmax.xlane.f32.xlu1 %v2411_v26 }
 0xe44   :  { %v2413_v35 = vpop.xlane.xlu1 %2412 }
 0xe45   :  { %v2415_v27 = vrot.slane %v2413_v35, 1  ;;  %v2416_v31 = vrot.slane %v2413_v35, 2  ;;  %v2417_v9 = vrot.slane %v2413_v35, 3  ;;  %v2422_v49 = vsub.f32 %v2396_v51, %v2413_v35 }
 0xe47   :  { %v2423_v13 = vsub.f32 %v2397_v14, %v2415_v27  ;;  %v2424_v1 = vsub.f32 %v2398_v44, %v2416_v31  ;;  %v2425_v12 = vsub.f32 %v2399_v29, %v2417_v9  ;;  %v2426_v53 = vmul.f32 1.442695, %v2422_v49 }
 0xe49   :  { %v2428_v45 = vmul.f32 1.442695, %v2423_v13  ;;  %v2430_v36 = vmul.f32 1.442695, %v2424_v1  ;;  %v2432_v38 = vmul.f32 1.442695, %v2425_v12  ;;  %9270 = vpow2.f32 %v2426_v53 }
 0xe4a   :  { %v10331_v12 = vld [vmem:[#allocation5 + $0x10] sm:$0xff] }
 0xe4b   :  { %9272 = vpow2.f32 %v2428_v45  ;;  %v10338_v45 = vld [vmem:[#allocation5 + $0x18] sm:$0xff] }
 0xe4c   :  { %9274 = vpow2.f32 %v2430_v36 }
 0xe4d   :  { %9276 = vpow2.f32 %v2432_v38 }
 0xe56   :  { %v9271_v48 = vpop.eup %9270 }
 0xe58   :  { %v9273_v52 = vpop.eup %9272 }
 0xe59   :  { %v9275_v34 = vpop.eup %9274  ;;  %v2438_v10 = vrot.slane %v9273_v52, 7 }
 0xe5a   :  { %v9277_v47 = vpop.eup %9276  ;;  %v2440_v33 = vrot.slane %v9275_v34, 6 }
 0xe5b   :  { %v2439_v26 = vsel %vm605_vm1, %v2438_v10, %v9271_v48  ;;  %v2442_v51 = vrot.slane %v9277_v47, 5 }
 0xe5c   :  { %v2441_v14 = vsel %vm608_vm2, %v2440_v33, %v2439_v26 }
 0xe5d   :  { %v2443_v44 = vsel %vm611_vm3, %v2442_v51, %v2441_v14 }
 0xe5e   :  { %v2445_v29 = vsel %vm268_vm5, %v2443_v44, 0.0 }
 0xe5f   :  { %2446 = vadd.xlane.f32.xlu0 %v2445_v29 }
 0xee8   :  { %v2447_v35 = vpop.xlane.xlu0 %2446 }
 0xee9   :  { %9278 = vrcp.f32 %v2447_v35 }
 0xef6   :  { %v9279_v27 = vpop.eup %9278 }
 0xef7   :  { %v2457_v31 = vmul.f32 %v9279_v27, %v9271_v48  ;;  %v2450_v9 = vrot.slane %v9279_v27, 1  ;;  %v2451_v49 = vrot.slane %v9279_v27, 2  ;;  %v2452_v1 = vrot.slane %v9279_v27, 3 }
 0xef9   :  { %8677 = vmatmul.mubr.msk.f32.vlgmr.msra.gmra.mxu0 %vm298_vm4, %v2457_v31  ;;  %v2458_v13 = vmul.f32 %v9273_v52, %v2450_v9  ;;  %v2459_v53 = vmul.f32 %v9275_v34, %v2451_v49  ;;  %v2460_v36 = vmul.f32 %v9277_v47, %v2452_v1 }
 0xefa   :  { %8685 = vmatpush3.msra.mxu0 %v10331_v12  ;;  %8686 = vmatprep.mubr.msk.f32.mxu0 %vm9640_vm0, %v11599_v42 }
 0xefb   :  { %8682 = vmatmul.mubr.msk.f32.vlgmr.msra.gmra.mxu1 %vm298_vm4, %v2458_v13  ;;  %8694 = vmatprep.subr.mxu0 %v11599_v42 }
 0xefc   :  { %8690 = vmatpush3.msra.mxu1 %v10338_v45  ;;  %8691 = vmatprep.mubr.msk.f32.mxu1 %vm9640_vm0, %v11599_v42 }
 0xefd   :  { %8687 = vmatmul.mubr.msk.f32.vlgmr.msra.gmra.mxu0 %vm298_vm4, %v2459_v53  ;;  %8725 = vmatprep.subr.mxu1 %v11599_v42 }
 0xefe   :  { %8695 = vmatpush3.msra.mxu0 %v9859_v0  ;;  %8722 = vmatprep.mubr.msk.f32.mxu0 %vm9640_vm0, %v11599_v42  ;;  %v10394_v0 = vld [vmem:[#allocation5] sm:$0xff] }
 0xeff   :  { %8692 = vmatmul.mubr.msk.f32.vlgmr.msra.gmra.mxu1 %vm298_vm4, %v2460_v36  ;;  %8696 = vmatprep.subr.mxu0 %v11599_v42 }
 0xf00   :  { %8697 = vmatpush3.msra.mxu0 %v9869_v3  ;;  %8726 = vmatpush3.msra.mxu1 %v9996_v55  ;;  %v2766_v3 = vrot.slane %v10394_v0, 2 }
 0xf01   :  { %8698 = vmatprep.subr.mxu0 %v11599_v42  ;;  %8727 = vmatprep.subr.mxu1 %v11599_v42 }
 0xf02   :  { %8699 = vmatpush3.msra.mxu0 %v9878_v4  ;;  %8728 = vmatpush3.msra.mxu1 %v10001_v56  ;;  %v2767_v4 = vrot.slane %v10310_v39, 1 }
 0xf03   :  { %8700 = vmatprep.subr.mxu0 %v11599_v42  ;;  %8729 = vmatprep.subr.mxu1 %v11599_v42 }
 0xf04   :  { %8701 = vmatpush3.msra.mxu0 %v9885_v6  ;;  %8730 = vmatpush3.msra.mxu1 %v10008_v57  ;;  %v2768_v6 = vsel %vm605_vm1, %v2767_v4, %v2766_v3 }
 0xf05   :  { %8702 = vmatprep.subr.mxu0 %v11599_v42  ;;  %8731 = vmatprep.subr.mxu1 %v11599_v42 }
 0xf06   :  { %8703 = vmatpush3.msra.mxu0 %v9892_v8  ;;  %8732 = vmatpush3.msra.mxu1 %v10015_v58  ;;  %v2770_v8 = vrot.slane %v10338_v45, 7 }
 0xf07   :  { %8704 = vmatprep.subr.mxu0 %v11599_v42  ;;  %8733 = vmatprep.subr.mxu1 %v11599_v42 }
 0xf08   :  { %8705 = vmatpush3.msra.mxu0 %v9899_v11  ;;  %8734 = vmatpush3.msra.mxu1 %v10022_v59  ;;  %v2769_v11 = vsel %vm608_vm2, %v10331_v12, %v2768_v6 }
 0xf09   :  { %8706 = vmatprep.subr.mxu0 %v11599_v42  ;;  %8735 = vmatprep.subr.mxu1 %v11599_v42 }
 0xf0a   :  { %8707 = vmatpush3.msra.mxu0 %v9906_v16  ;;  %8736 = vmatpush3.msra.mxu1 %v10031_v60  ;;  %v2771_v16 = vsel %vm611_vm3, %v2770_v8, %v2769_v11 }
 0xf0b   :  { %8708 = vmatprep.subr.mxu0 %v11599_v42  ;;  %8737 = vmatprep.subr.mxu1 %v11599_v42 }
 0xf0c   :  { %8709 = vmatpush3.msra.mxu0 %v9913_v17  ;;  %8738 = vmatpush3.msra.mxu1 %v10036_v61 }
 0xf0d   :  { %8710 = vmatprep.subr.mxu0 %v11599_v42  ;;  %8739 = vmatprep.subr.mxu1 %v11599_v42 }
 0xf0e   :  { %8711 = vmatpush3.msra.mxu0 %v9920_v18  ;;  %8740 = vmatpush3.msra.mxu1 %v10045_v62 }
 0xf0f   :  { %8712 = vmatprep.subr.mxu0 %v11599_v42  ;;  %8741 = vmatprep.mubr.msk.f32.mxu1 %vm9640_vm0, %v11599_v42 }
 0xf10   :  { %8713 = vmatpush3.msra.mxu0 %v9927_v19  ;;  %8744 = vmatprep.subr.mxu1 %v11599_v42 }
 0xf11   :  { %8714 = vmatprep.subr.mxu0 %v11599_v42  ;;  %2772 = vrot.lane.b32.xlu1 %v2771_v16, %s9643_s18 }
 0xf12   :  { %8715 = vmatpush3.msra.mxu0 %v9934_v20 }
 0xf13   :  { %8716 = vmatprep.subr.mxu0 %v11599_v42 }
 0xf14   :  { %8717 = vmatpush3.msra.mxu0 %v9941_v21 }
 0xf15   :  { %8718 = vmatprep.subr.mxu0 %v11599_v42 }
 0xf16   :  { %8719 = vmatpush3.msra.mxu0 %v9948_v22 }
 0xf17   :  { %8720 = vmatprep.subr.mxu0 %v11599_v42 }
 0xf18   :  { %8721 = vmatpush3.msra.mxu0 %v9955_v23 }
 0xf19   :  { %8759 = vmatprep.subr.mxu0 %v11599_v42 }
 0xf83   :  { %v2773_v48 = vpop.permute.xlu1 %2772 }
 0xfb9   :  { %v2530_v17 = vpop.f32.mrf.mxu0 }
 0xfbb   :  { %v8678_v18 = vpop.f32.mrf.mxu0  ;;  %v2603_v19 = vpop.f32.mrf.mxu1 }
 0xfbc   :  { %v2757_v20 = vrot.slane %v2603_v19, 7 }
 0xfbd   :  { %v8683_v21 = vpop.f32.mrf.mxu1  ;;  %v2676_v22 = vpop.f32.mrf.mxu0 }
 0xfbe   :  { %v2758_v23 = vsel %vm605_vm1, %v2757_v20, %v2530_v17  ;;  %v2759_v55 = vrot.slane %v2676_v22, 6  ;;  %v10450_v20 = vld [vmem:[#allocation8] sm:$0xff] }
 0xfbf   :  { %v8688_v56 = vpop.f32.mrf.mxu0  ;;  %v2749_v57 = vpop.f32.mrf.mxu1 }
 0xfc0   :  { %v2761_v58 = vrot.slane %v2749_v57, 5  ;;  %v2760_v59 = vsel %vm608_vm2, %v2759_v55, %v2758_v23 }
 0xfc1   :  { %v8693_v60 = vpop.f32.mrf.mxu1 }
 0xfc2   :  { %v2762_v61 = vsel %vm611_vm3, %v2761_v58, %v2760_v59 }
 0xfc3   :  { %2763 = vrot.lane.b32.xlu0 %v2762_v61, %s9642_s17 }
 0xfc7   :  { %2775 = vrot.lane.b32.xlu0 %v10254_v43, %s9642_s17 }
0x1035   :  { %v2764_v62 = vpop.permute.xlu0 %2763 }
0x1036   :  { %v2778_v38 = vsel %vm797_vm8, %v10316_v15, %v2764_v62 }
0x1037   :  { %v2779_v52 = vsel %vm799_vm9, %v2778_v38, %v2773_v48 }
0x1039   :  { %v2776_v34 = vpop.permute.xlu0 %2775 }
0x103a   :  { %v2780_v10 = vsel %vm801_vm10, %v2779_v52, %v2776_v34 }
0x103b   :  { %8723 = vmatmul.mubr.msk.f32.vlgmr.msra.gmra.mxu0 %vm803_vm11, %v2780_v10 }
0x103c   :  { %8760 = vmatpush3.xpose.msk.msra.mxu0 %vm169_vm6, %v10113_v63  ;;  %8761 = vmatprep.mubr.msk.f32.mxu0 %vm9640_vm0, %v11599_v42 }
0x103d   :  { %8769 = vmatprep.subr.mxu0 %v11599_v42 }
0x10fb   :  { %v2850_v43 = vpop.f32.mrf.mxu0 }
0x10fc   :  { %v2851_v47 = vadd.f32 %v9984_v40, %v2850_v43 }
0x10fd   :  { %v8724_v15 = vpop.f32.mrf.mxu0 }
0x10fe   :  { %9280 = vtanh.f32 %v2851_v47  ;;  %v8026_v26 = vmul.f32 -1.442695, %v2851_v47 }
0x1100   :  { %9282 = vpow2.f32 %v8026_v26 }
0x110b   :  { %v9281_v33 = vpop.eup %9280 }
0x110c   :  { %2863 = vrot.lane.b32.xlu0 %v9281_v33, %s9644_s22 }
0x110d   :  { %v9283_v51 = vpop.eup %9282 }
0x110e   :  { %v2857_v14 = vadd.f32 1.0, %v9283_v51 }
0x1110   :  { %9284 = vrcp.f32 %v2857_v14 }
0x111d   :  { %v9285_v44 = vpop.eup %9284 }
0x111e   :  { %v2861_v27 = vmul.f32 %v9285_v44, %v10250_v2 }
0x117e   :  { %v2864_v29 = vpop.permute.xlu0 %2863 }
0x117f   :  { %v2866_v35 = vmul.f32 %v9285_v44, %v2864_v29 }
0x1181   :  { %2868 = vrot.lane.b32.xlu0 %v2866_v35, %s9644_s22 }
0x11f3   :  { %v2869_v31 = vpop.permute.xlu0 %2868 }
0x11f4   :  { %v10424_v9 = vadd.f32 %v2869_v31, %v2861_v27 }
0x11f6   :  { %9286 = vtanh.f32 %v10424_v9 }
0x1203   :  { %v9287_v40 = vpop.eup %9286 }
0x1204   :  { %2874 = vrot.lane.b32.xlu0 %v9287_v40, %s9644_s22 }
0x1208   :  { %2882 = vrot.lane.b32.xlu0 %v2762_v61, %s9644_s22 }
0x1276   :  { %v2875_v49 = vpop.permute.xlu0 %2874 }
0x1277   :  { %v10429_v13 = vmul.f32 %v9285_v44, %v2875_v49 }
0x1279   :  { %v3044_v1 = vrot.slane %v10429_v13, %v9766_v7  ;;  %2879 = vrot.lane.b32.xlu1 %v10429_v13, %s9645_s2 }
0x127a   :  { %v2883_v17 = vpop.permute.xlu0 %2882 }
0x127b   :  { %v3045_v2 = vcombine.high %v3044_v1, %v3044_v1  ;;  %v3052_v53 = vrot.slane %v3044_v1, %v9766_v7 }
0x127d   :  { %v3065_v36 = vrot.slane %v3052_v53, %v10052_v25  ;;  %v3059_v3 = vrot.slane %v3045_v2, %v9766_v7  ;;  %v3060_v6 = vcombine.high %v3052_v53, %v3052_v53 }
0x127f   :  { %3066 = vrot.lane.b32.xlu0 %v3065_v36, %s9645_s2  ;;  %v3143_v4 = vrot.slane %v3059_v3, %v10052_v25  ;;  %v3221_v8 = vrot.slane %v3060_v6, %v10052_v25  ;;  %v3061_v11 = vcombine.high %v3059_v3, %v3059_v3 }
0x1281   :  { %v3299_v16 = vrot.slane %v3061_v11, %v10052_v25 }
0x1283   :  { %3144 = vrot.lane.b32.xlu0 %v3143_v4, %s9645_s2 }
0x1287   :  { %3222 = vrot.lane.b32.xlu0 %v3221_v8, %s9645_s2 }
0x128b   :  { %3300 = vrot.lane.b32.xlu0 %v3299_v16, %s9645_s2 }
0x12eb   :  { %v2880_v18 = vpop.permute.xlu1 %2879 }
0x12ec   :  { %v10446_v19 = vsel %vm169_vm6, %v2880_v18, %v2883_v17 }
0x12ed   :  { %11603 = vst [vmem:[#allocation29_spill] sm:$0xff] %v10446_v19  ;;  %8742 = vmatmul.mubr.msk.f32.vlgmr.msra.gmra.mxu1 %vm909_vm12, %v10446_v19 }
0x12ee   :  { %8745 = vmatpush3.msra.mxu1 %v10450_v20  ;;  %8746 = vmatprep.mubr.msk.f32.mxu1 %vm9640_vm0, %v11599_v42 }
0x12ef   :  { %8749 = vmatprep.subr.mxu1 %v11599_v42 }
0x12f1   :  { %v3067_v21 = vpop.permute.xlu0 %3066 }
0x12f5   :  { %v3145_v22 = vpop.permute.xlu0 %3144 }
0x12f9   :  { %v3223_v23 = vpop.permute.xlu0 %3222 }
0x12fa   :  { %8762 = vmatmul.mubr.msk.f32.vlgmr.msra.gmra.mxu0 %vm169_vm6, %v3223_v23 }
0x12fb   :  { %8770 = vmatpush3.msra.mxu0 %v10394_v0  ;;  %8771 = vmatprep.mubr.msk.f32.mxu0 %vm9640_vm0, %v11599_v42 }
0x12fc   :  { %8779 = vmatprep.subr.mxu0 %v11599_v42 }
0x13ad   :  { %v2955_v55 = vpop.f32.mrf.mxu1 }
0x13ae   :  { %v10462_v56 = vadd.f32 %v10080_v41, %v2955_v55  ;;  %v3301_v41 = vpop.permute.xlu0 %3300 }
0x13af   :  { %v8743_v57 = vpop.f32.mrf.mxu1 }
0x13b0   :  { %11604 = vst [vmem:[#allocation30_spill] sm:$0xff] %v10462_v56  ;;  %v2959_v58 = vsel %vm268_vm5, %v10462_v56, -inf }
0x13b1   :  { %2960 = vmax.xlane.f32.xlu1 %v2959_v58 }
0x13ba   :  { %v3292_v59 = vpop.f32.mrf.mxu0 }
0x13bb   :  { %v3376_v47 = vadd.f32 %v3292_v59, %v10144_v37 }
0x13bc   :  { %v8763_v60 = vpop.f32.mrf.mxu0 }
0x13bd   :  { %v3384_v29 = vrot.slane %v3376_v47, 6 }
0x143a   :  { %v2961_v61 = vpop.xlane.xlu1 %2960 }
0x143b   :  { %vm2962_vm15 = vcmp.eq.f32.partialorder %v10462_v56, %v2961_v61 }
0x143c   :  { %v8028_v62 = vsel %vm2962_vm15, 1.0, %v11599_v42 }
0x143d   :  { %8747 = vmatmul.mubr.msk.f32.vlgmr.msra.gmra.mxu1 %vm298_vm4, %v8028_v62 }
0x143e   :  { %8750 = vmatpush3.xpose.msk.msra.mxu1 %vm169_vm6, %v10094_v50  ;;  %8751 = vmatprep.mubr.msk.f32.mxu1 %vm9640_vm0, %v11599_v42 }
0x143f   :  { %8754 = vmatprep.subr.mxu1 %v11599_v42 }
0x1441   :  { %8752 = vmatmul.mubr.msk.f32.vlgmr.msra.gmra.mxu1 %vm169_vm6, %v3067_v21 }
0x1442   :  { %8755 = vmatpush3.xpose.msk.msra.mxu1 %vm169_vm6, %v10104_v54  ;;  %8756 = vmatprep.mubr.msk.f32.mxu1 %vm9640_vm0, %v11599_v42 }
0x1443   :  { %8764 = vmatprep.subr.mxu1 %v11599_v42 }
0x1445   :  { %8757 = vmatmul.mubr.msk.f32.vlgmr.msra.gmra.mxu1 %vm169_vm6, %v3145_v22 }
0x1446   :  { %8765 = vmatpush3.xpose.msk.msra.mxu1 %vm169_vm6, %v10122_v32  ;;  %8766 = vmatprep.mubr.msk.f32.mxu1 %vm9640_vm0, %v11599_v42 }
0x1447   :  { %8774 = vmatprep.subr.mxu1 %v11599_v42 }
0x1449   :  { %8767 = vmatmul.mubr.msk.f32.vlgmr.msra.gmra.mxu1 %vm169_vm6, %v3301_v41 }
0x144a   :  { %8775 = vmatpush3.msra.mxu1 %v10310_v39  ;;  %8776 = vmatprep.mubr.msk.f32.mxu1 %vm9640_vm0, %v11599_v42 }
0x144b   :  { %8784 = vmatprep.subr.mxu1 %v11599_v42 }
0x14fd   :  { %v10491_v38 = vpop.f32.mrf.mxu1 }
0x14ff   :  { %v8748_v48 = vpop.f32.mrf.mxu1 }
0x1501   :  { %v3136_v52 = vpop.f32.mrf.mxu1 }
0x1502   :  { %v3374_v33 = vadd.f32 %v3136_v52, %v10138_v30 }
0x1503   :  { %v8753_v34 = vpop.f32.mrf.mxu1 }
0x1505   :  { %v3214_v10 = vpop.f32.mrf.mxu1 }
0x1506   :  { %v3375_v43 = vadd.f32 %v3214_v10, %v10141_v5 }
0x1507   :  { %v8758_v15 = vpop.f32.mrf.mxu1 }
0x1508   :  { %v3382_v26 = vrot.slane %v3375_v43, 7 }
0x1509   :  { %v3370_v51 = vpop.f32.mrf.mxu1 }
0x150a   :  { %v3377_v14 = vadd.f32 %v3370_v51, %v11602_v46  ;;  %v3383_v44 = vsel %vm605_vm1, %v3382_v26, %v3374_v33  ;;  %v10519_v51 = vld [vmem:[%s11567_s7 + $0x68] sm:$0xff] }
0x150b   :  { %v8768_v35 = vpop.f32.mrf.mxu1  ;;  %v3385_v31 = vsel %vm608_vm2, %v3384_v29, %v3383_v44  ;;  %v10535_v44 = vld [vmem:[%s11569_s9 + $0x38] sm:$0xff] }
0x150c   :  { %v3386_v27 = vrot.slane %v3377_v14, 5  ;;  %v10543_v29 = vld [vmem:[%s11567_s7 + $0x58] sm:$0xff]  ;;  %v10549_v35 = vld [vmem:[%s11569_s9 + $0x30] sm:$0xff] }
0x150e   :  { %v3387_v40 = vsel %vm611_vm3, %v3386_v27, %v3385_v31  ;;  %v10557_v27 = vld [vmem:[%s11567_s7 + $0x50] sm:$0xff]  ;;  %v10563_v31 = vld [vmem:[%s11569_s9 + $0x28] sm:$0xff] }
0x150f   :  { %v3389_v49 = vsel %vm268_vm5, %v3387_v40, -inf  ;;  %v10571_v40 = vld [vmem:[%s11567_s7 + $0x48] sm:$0xff] }
0x1510   :  { %3390 = vmax.xlane.f32.xlu0 %v3389_v49  ;;  %v10577_v49 = vld [vmem:[%s11569_s9 + $0x20] sm:$0xff] }
0x1599   :  { %v3391_v1 = vpop.xlane.xlu0 %3390 }
0x159a   :  { %v3393_v2 = vrot.slane %v3391_v1, 1  ;;  %v3394_v53 = vrot.slane %v3391_v1, 2  ;;  %v3395_v36 = vrot.slane %v3391_v1, 3  ;;  %v3400_v3 = vsub.f32 %v3374_v33, %v3391_v1  ;;  %v10585_v1 = vld [vmem:[%s11567_s7 + $0x40] sm:$0xff] }
0x159c   :  { %v3401_v4 = vsub.f32 %v3375_v43, %v3393_v2  ;;  %v3402_v6 = vsub.f32 %v3376_v47, %v3394_v53  ;;  %v3403_v8 = vsub.f32 %v3377_v14, %v3395_v36  ;;  %v3404_v11 = vmul.f32 1.442695, %v3400_v3  ;;  %v10529_v14 = vld [vmem:[%s11567_s7 + $0x60] sm:$0xff]  ;;  %v10591_v2 = vld [vmem:[%s11569_s9 + $0x18] sm:$0xff]  ;;  %v10605_v36 = vld [vmem:[%s11569_s9 + $0x10] sm:$0xff] }
0x159d   :  { %v10599_v53 = vld [vmem:[%s11567_s7 + $0x38] sm:$0xff]  ;;  %v10613_v3 = vld [vmem:[%s11567_s7 + $0x30] sm:$0xff] }
0x159e   :  { %v3406_v16 = vmul.f32 1.442695, %v3401_v4  ;;  %v3408_v17 = vmul.f32 1.442695, %v3402_v6  ;;  %v3410_v18 = vmul.f32 1.442695, %v3403_v8  ;;  %9288 = vpow2.f32 %v3404_v11 }
0x159f   :  { %v10619_v4 = vld [vmem:[%s11569_s9 + $0x8] sm:$0xff]  ;;  %v10633_v8 = vld [vmem:[%s11569_s9] sm:$0xff] }
0x15a0   :  { %9290 = vpow2.f32 %v3406_v16  ;;  %v10627_v6 = vld [vmem:[%s11567_s7 + $0x28] sm:$0xff]  ;;  %v10642_v11 = vld [vmem:[%s11567_s7 + $0x20] sm:$0xff]  ;;  %v10650_v16 = vld [vmem:[%s11567_s7 + $0x18] sm:$0xff] }
0x15a1   :  { %9292 = vpow2.f32 %v3408_v17  ;;  %v10657_v17 = vld [vmem:[%s11567_s7 + $0x10] sm:$0xff] }
0x15a2   :  { %9294 = vpow2.f32 %v3410_v18  ;;  %v10664_v18 = vld [vmem:[%s11567_s7 + $0x8] sm:$0xff] }
0x15ab   :  { %v9289_v21 = vpop.eup %9288 }
0x15ad   :  { %v9291_v22 = vpop.eup %9290 }
0x15ae   :  { %v9293_v23 = vpop.eup %9292  ;;  %v3416_v55 = vrot.slane %v9291_v22, 7 }
0x15af   :  { %v9295_v57 = vpop.eup %9294  ;;  %v3418_v58 = vrot.slane %v9293_v23, 6 }
0x15b0   :  { %v3417_v59 = vsel %vm605_vm1, %v3416_v55, %v9289_v21  ;;  %v3420_v60 = vrot.slane %v9295_v57, 5  ;;  %v3747_v55 = vrot.slane %v10331_v12, 1 }
0x15b1   :  { %v3419_v61 = vsel %vm608_vm2, %v3418_v58, %v3417_v59 }
0x15b2   :  { %v3421_v62 = vsel %vm611_vm3, %v3420_v60, %v3419_v61 }
0x15b3   :  { %v3423_v41 = vsel %vm268_vm5, %v3421_v62, 0.0 }
0x15b4   :  { %3424 = vadd.xlane.f32.xlu1 %v3423_v41 }
0x163d   :  { %v3425_v48 = vpop.xlane.xlu1 %3424 }
0x163e   :  { %9296 = vrcp.f32 %v3425_v48 }
0x164b   :  { %v9297_v52 = vpop.eup %9296 }
0x164c   :  { %v3435_v34 = vmul.f32 %v9297_v52, %v9289_v21  ;;  %v3428_v10 = vrot.slane %v9297_v52, 1  ;;  %v3429_v43 = vrot.slane %v9297_v52, 2  ;;  %v3430_v15 = vrot.slane %v9297_v52, 3  ;;  %v10671_v21 = vld [vmem:[%s11567_s7] sm:$0xff] }
0x164e   :  { %8772 = vmatmul.mubr.msk.f32.vlgmr.msra.gmra.mxu0 %vm298_vm4, %v3435_v34  ;;  %v3436_v47 = vmul.f32 %v9291_v22, %v3428_v10  ;;  %v3437_v33 = vmul.f32 %v9293_v23, %v3429_v43  ;;  %v3438_v26 = vmul.f32 %v9295_v57, %v3430_v15  ;;  %v3744_v22 = vrot.slane %v10394_v0, 3 }
0x164f   :  { %8780 = vmatpush3.msra.mxu0 %v10331_v12  ;;  %8781 = vmatprep.mubr.msk.f32.mxu0 %vm9640_vm0, %v11599_v42  ;;  %v3745_v23 = vrot.slane %v10310_v39, 2 }
0x1650   :  { %8777 = vmatmul.mubr.msk.f32.vlgmr.msra.gmra.mxu1 %vm298_vm4, %v3436_v47  ;;  %8789 = vmatprep.subr.mxu0 %v11599_v42 }
0x1651   :  { %8785 = vmatpush3.msra.mxu1 %v10338_v45  ;;  %8786 = vmatprep.mubr.msk.f32.mxu1 %vm9640_vm0, %v11599_v42  ;;  %v3746_v57 = vsel %vm605_vm1, %v3745_v23, %v3744_v22 }
0x1652   :  { %8782 = vmatmul.mubr.msk.f32.vlgmr.msra.gmra.mxu0 %vm298_vm4, %v3437_v33  ;;  %8820 = vmatprep.subr.mxu1 %v11599_v42  ;;  %v3748_v58 = vsel %vm608_vm2, %v3747_v55, %v3746_v57 }
0x1653   :  { %8790 = vmatpush3.msra.mxu0 %v10519_v51  ;;  %8817 = vmatprep.mubr.msk.f32.mxu0 %vm9640_vm0, %v11599_v42  ;;  %v3749_v59 = vsel %vm611_vm3, %v10338_v45, %v3748_v58 }
0x1654   :  { %8787 = vmatmul.mubr.msk.f32.vlgmr.msra.gmra.mxu1 %vm298_vm4, %v3438_v26  ;;  %8791 = vmatprep.subr.mxu0 %v11599_v42 }
0x1655   :  { %8792 = vmatpush3.msra.mxu0 %v10529_v14  ;;  %8821 = vmatpush3.msra.mxu1 %v10535_v44 }
0x1656   :  { %8793 = vmatprep.subr.mxu0 %v11599_v42  ;;  %8822 = vmatprep.subr.mxu1 %v11599_v42 }
0x1657   :  { %8794 = vmatpush3.msra.mxu0 %v10543_v29  ;;  %8823 = vmatpush3.msra.mxu1 %v10549_v35 }
0x1658   :  { %8795 = vmatprep.subr.mxu0 %v11599_v42  ;;  %8824 = vmatprep.subr.mxu1 %v11599_v42 }
0x1659   :  { %8796 = vmatpush3.msra.mxu0 %v10557_v27  ;;  %8825 = vmatpush3.msra.mxu1 %v10563_v31 }
0x165a   :  { %8797 = vmatprep.subr.mxu0 %v11599_v42  ;;  %8826 = vmatprep.subr.mxu1 %v11599_v42 }
0x165b   :  { %8798 = vmatpush3.msra.mxu0 %v10571_v40  ;;  %8827 = vmatpush3.msra.mxu1 %v10577_v49 }
0x165c   :  { %8799 = vmatprep.subr.mxu0 %v11599_v42  ;;  %8828 = vmatprep.subr.mxu1 %v11599_v42 }
0x165d   :  { %8800 = vmatpush3.msra.mxu0 %v10585_v1  ;;  %8829 = vmatpush3.msra.mxu1 %v10591_v2 }
0x165e   :  { %8801 = vmatprep.subr.mxu0 %v11599_v42  ;;  %8830 = vmatprep.subr.mxu1 %v11599_v42 }
0x165f   :  { %8802 = vmatpush3.msra.mxu0 %v10599_v53  ;;  %8831 = vmatpush3.msra.mxu1 %v10605_v36 }
0x1660   :  { %8803 = vmatprep.subr.mxu0 %v11599_v42  ;;  %8832 = vmatprep.subr.mxu1 %v11599_v42 }
0x1661   :  { %8804 = vmatpush3.msra.mxu0 %v10613_v3  ;;  %8833 = vmatpush3.msra.mxu1 %v10619_v4 }
0x1662   :  { %8805 = vmatprep.subr.mxu0 %v11599_v42  ;;  %8834 = vmatprep.subr.mxu1 %v11599_v42 }
0x1663   :  { %8806 = vmatpush3.msra.mxu0 %v10627_v6  ;;  %8835 = vmatpush3.msra.mxu1 %v10633_v8 }
0x1664   :  { %8807 = vmatprep.subr.mxu0 %v11599_v42  ;;  %8836 = vmatprep.mubr.msk.f32.mxu1 %vm9640_vm0, %v11599_v42 }
0x1665   :  { %8808 = vmatpush3.msra.mxu0 %v10642_v11  ;;  %8839 = vmatprep.subr.mxu1 %v11599_v42 }
0x1666   :  { %8809 = vmatprep.subr.mxu0 %v11599_v42  ;;  %3750 = vrot.lane.b32.xlu0 %v3749_v59, %s9643_s18 }
0x1667   :  { %8810 = vmatpush3.msra.mxu0 %v10650_v16 }
0x1668   :  { %8811 = vmatprep.subr.mxu0 %v11599_v42 }
0x1669   :  { %8812 = vmatpush3.msra.mxu0 %v10657_v17 }
0x166a   :  { %8813 = vmatprep.subr.mxu0 %v11599_v42 }
0x166b   :  { %8814 = vmatpush3.msra.mxu0 %v10664_v18 }
0x166c   :  { %8815 = vmatprep.subr.mxu0 %v11599_v42 }
0x166d   :  { %8816 = vmatpush3.msra.mxu0 %v10671_v21 }
0x166e   :  { %8854 = vmatprep.subr.mxu0 %v11599_v42 }
0x16d8   :  { %v3751_v57 = vpop.permute.xlu0 %3750 }
0x170e   :  { %v3508_v60 = vpop.f32.mrf.mxu0 }
0x1710   :  { %v8773_v61 = vpop.f32.mrf.mxu0  ;;  %v3581_v62 = vpop.f32.mrf.mxu1 }
0x1711   :  { %v3735_v41 = vrot.slane %v3581_v62, 7 }
0x1712   :  { %v8778_v48 = vpop.f32.mrf.mxu1  ;;  %v3654_v52 = vpop.f32.mrf.mxu0 }
0x1713   :  { %v3736_v34 = vsel %vm605_vm1, %v3735_v41, %v3508_v60  ;;  %v3737_v10 = vrot.slane %v3654_v52, 6 }
0x1714   :  { %v8783_v43 = vpop.f32.mrf.mxu0  ;;  %v3727_v47 = vpop.f32.mrf.mxu1 }
0x1715   :  { %v3739_v15 = vrot.slane %v3727_v47, 5  ;;  %v3738_v33 = vsel %vm608_vm2, %v3737_v10, %v3736_v34 }
0x1716   :  { %v8788_v26 = vpop.f32.mrf.mxu1 }
0x1717   :  { %v3740_v22 = vsel %vm611_vm3, %v3739_v15, %v3738_v33 }
0x1718   :  { %3741 = vrot.lane.b32.xlu1 %v3740_v22, %s9642_s17 }
0x171c   :  { %3753 = vrot.lane.b32.xlu1 %v10429_v13, %s9642_s17 }
0x178a   :  { %v3742_v23 = vpop.permute.xlu1 %3741 }
0x178b   :  { %v3756_v55 = vsel %vm797_vm8, %v10491_v38, %v3742_v23  ;;  %v10702_v38 = vld [vmem:[%s11568_s8] ss:$0 sm:$0xff] }
0x178c   :  { %v3757_v58 = vsel %vm799_vm9, %v3756_v55, %v3751_v57 }
0x178e   :  { %v3754_v59 = vpop.permute.xlu1 %3753 }
0x178f   :  { %v3758_v60 = vsel %vm801_vm10, %v3757_v58, %v3754_v59 }
0x1790   :  { %8818 = vmatmul.mubr.msk.f32.vlgmr.msra.gmra.mxu0 %vm803_vm11, %v3758_v60 }
0x1791   :  { %8855 = vmatpush3.xpose.msk.msra.mxu0 %vm169_vm6, %v10113_v63  ;;  %8856 = vmatprep.mubr.msk.f32.mxu0 %vm9640_vm0, %v11599_v42 }
0x1792   :  { %8864 = vmatprep.subr.mxu0 %v11599_v42 }
0x1850   :  { %v3828_v13 = vpop.f32.mrf.mxu0 }
0x1851   :  { %v3829_v61 = vadd.f32 %v10702_v38, %v3828_v13 }
0x1852   :  { %v8819_v62 = vpop.f32.mrf.mxu0 }
0x1853   :  { %9298 = vtanh.f32 %v3829_v61  ;;  %v8043_v48 = vmul.f32 -1.442695, %v3829_v61 }
0x1855   :  { %9300 = vpow2.f32 %v8043_v48 }
0x1860   :  { %v9299_v41 = vpop.eup %9298 }
0x1861   :  { %3841 = vrot.lane.b32.xlu1 %v9299_v41, %s9644_s22 }
0x1862   :  { %v9301_v52 = vpop.eup %9300 }
0x1863   :  { %v3835_v34 = vadd.f32 1.0, %v9301_v52 }
0x1865   :  { %9302 = vrcp.f32 %v3835_v34 }
0x1872   :  { %v9303_v10 = vpop.eup %9302 }
0x1873   :  { %v3839_v15 = vmul.f32 %v9303_v10, %v10424_v9 }
0x18d3   :  { %v3842_v43 = vpop.permute.xlu1 %3841 }
0x18d4   :  { %v3844_v47 = vmul.f32 %v9303_v10, %v3842_v43 }
0x18d6   :  { %3846 = vrot.lane.b32.xlu1 %v3844_v47, %s9644_s22 }
0x1948   :  { %v3847_v33 = vpop.permute.xlu1 %3846 }
0x1949   :  { %v10708_v26 = vadd.f32 %v3847_v33, %v3839_v15 }
0x194b   :  { %9304 = vtanh.f32 %v10708_v26 }
0x1958   :  { %v9305_v23 = vpop.eup %9304 }
0x1959   :  { %3852 = vrot.lane.b32.xlu1 %v9305_v23, %s9644_s22  ;;  %v10746_v23 = vld [vmem:[%s11570_s10] ss:$0 sm:$0xff] }
0x195d   :  { %3860 = vrot.lane.b32.xlu1 %v3740_v22, %s9644_s22 }
0x19cb   :  { %v3853_v55 = vpop.permute.xlu1 %3852 }
0x19cc   :  { %v10713_v57 = vmul.f32 %v9303_v10, %v3853_v55 }
0x19ce   :  { %v4022_v58 = vrot.slane %v10713_v57, %v9766_v7  ;;  %3857 = vrot.lane.b32.xlu0 %v10713_v57, %s9645_s2 }
0x19cf   :  { %v3861_v52 = vpop.permute.xlu1 %3860 }
0x19d0   :  { %v4023_v9 = vcombine.high %v4022_v58, %v4022_v58  ;;  %v4030_v59 = vrot.slane %v4022_v58, %v9766_v7 }
0x19d2   :  { %v4043_v60 = vrot.slane %v4030_v59, %v10052_v25  ;;  %v4037_v13 = vrot.slane %v4023_v9, %v9766_v7  ;;  %v4038_v61 = vcombine.high %v4030_v59, %v4030_v59 }
0x19d4   :  { %4044 = vrot.lane.b32.xlu1 %v4043_v60, %s9645_s2  ;;  %v4121_v22 = vrot.slane %v4037_v13, %v10052_v25  ;;  %v4199_v62 = vrot.slane %v4038_v61, %v10052_v25  ;;  %v4039_v41 = vcombine.high %v4037_v13, %v4037_v13 }
0x19d6   :  { %v4277_v48 = vrot.slane %v4039_v41, %v10052_v25 }
0x19d8   :  { %4122 = vrot.lane.b32.xlu1 %v4121_v22, %s9645_s2 }
0x19dc   :  { %4200 = vrot.lane.b32.xlu1 %v4199_v62, %s9645_s2 }
0x19e0   :  { %4278 = vrot.lane.b32.xlu1 %v4277_v48, %s9645_s2 }
0x1a40   :  { %v3858_v34 = vpop.permute.xlu0 %3857 }
0x1a41   :  { %v10730_v10 = vsel %vm169_vm6, %v3858_v34, %v3861_v52 }
0x1a42   :  { %11605 = vst [vmem:[#allocation31_spill] sm:$0xff] %v10730_v10  ;;  %8837 = vmatmul.mubr.msk.f32.vlgmr.msra.gmra.mxu1 %vm909_vm12, %v10730_v10 }
0x1a43   :  { %8840 = vmatpush3.msra.mxu1 %v10450_v20  ;;  %8841 = vmatprep.mubr.msk.f32.mxu1 %vm9640_vm0, %v11599_v42 }
0x1a44   :  { %8844 = vmatprep.subr.mxu1 %v11599_v42 }
0x1a46   :  { %v4045_v43 = vpop.permute.xlu1 %4044 }
0x1a4a   :  { %v4123_v47 = vpop.permute.xlu1 %4122 }
0x1a4e   :  { %v4201_v15 = vpop.permute.xlu1 %4200 }
0x1a4f   :  { %8857 = vmatmul.mubr.msk.f32.vlgmr.msra.gmra.mxu0 %vm169_vm6, %v4201_v15 }
0x1a50   :  { %8865 = vmatpush3.msra.mxu0 %v10394_v0  ;;  %8866 = vmatprep.mubr.msk.f32.mxu0 %vm9640_vm0, %v11599_v42 }
0x1a51   :  { %8874 = vmatprep.subr.mxu0 %v11599_v42 }
0x1a52   :  { %v4279_v61 = vpop.permute.xlu1 %4278 }
0x1b02   :  { %v3933_v33 = vpop.f32.mrf.mxu1 }
0x1b03   :  { %v10749_v55 = vadd.f32 %v10746_v23, %v3933_v33 }
0x1b04   :  { %v8838_v58 = vpop.f32.mrf.mxu1 }
0x1b05   :  { %11606 = vst [vmem:[#allocation32_spill] sm:$0xff] %v10749_v55  ;;  %v3937_v9 = vsel %vm268_vm5, %v10749_v55, -inf }
0x1b06   :  { %3938 = vmax.xlane.f32.xlu0 %v3937_v9 }
0x1b0f   :  { %v4270_v59 = vpop.f32.mrf.mxu0 }
0x1b11   :  { %v8858_v60 = vpop.f32.mrf.mxu0 }
0x1b8f   :  { %v3939_v13 = vpop.xlane.xlu0 %3938 }
0x1b90   :  { %vm3940_vm7 = vcmp.eq.f32.partialorder %v10749_v55, %v3939_v13 }
0x1b91   :  { %v8045_v22 = vsel %vm3940_vm7, 1.0, %v11599_v42 }
0x1b92   :  { %8842 = vmatmul.mubr.msk.f32.vlgmr.msra.gmra.mxu1 %vm298_vm4, %v8045_v22 }
0x1b93   :  { %8845 = vmatpush3.xpose.msk.msra.mxu1 %vm169_vm6, %v10094_v50  ;;  %8846 = vmatprep.mubr.msk.f32.mxu1 %vm9640_vm0, %v11599_v42 }
0x1b94   :  { %8849 = vmatprep.subr.mxu1 %v11599_v42 }
0x1b96   :  { %8847 = vmatmul.mubr.msk.f32.vlgmr.msra.gmra.mxu1 %vm169_vm6, %v4045_v43 }
0x1b97   :  { %8850 = vmatpush3.xpose.msk.msra.mxu1 %vm169_vm6, %v10104_v54  ;;  %8851 = vmatprep.mubr.msk.f32.mxu1 %vm9640_vm0, %v11599_v42 }
0x1b98   :  { %8859 = vmatprep.subr.mxu1 %v11599_v42 }
0x1b9a   :  { %8852 = vmatmul.mubr.msk.f32.vlgmr.msra.gmra.mxu1 %vm169_vm6, %v4123_v47  ;;  %v4354_v47 = vadd.f32 %v4270_v59, %v10144_v37 }
0x1b9b   :  { %8860 = vmatpush3.xpose.msk.msra.mxu1 %vm169_vm6, %v10122_v32  ;;  %8861 = vmatprep.mubr.msk.f32.mxu1 %vm9640_vm0, %v11599_v42 }
0x1b9c   :  { %8869 = vmatprep.subr.mxu1 %v11599_v42  ;;  %v4362_v13 = vrot.slane %v4354_v47, 6 }
0x1b9e   :  { %8862 = vmatmul.mubr.msk.f32.vlgmr.msra.gmra.mxu1 %vm169_vm6, %v4279_v61 }
0x1b9f   :  { %8870 = vmatpush3.msra.mxu1 %v10310_v39  ;;  %8871 = vmatprep.mubr.msk.f32.mxu1 %vm9640_vm0, %v11599_v42 }
0x1ba0   :  { %8879 = vmatprep.subr.mxu1 %v11599_v42 }
0x1c52   :  { %v10778_v62 = vpop.f32.mrf.mxu1 }
0x1c54   :  { %v8843_v41 = vpop.f32.mrf.mxu1 }
0x1c56   :  { %v4114_v48 = vpop.f32.mrf.mxu1 }
0x1c57   :  { %v4352_v33 = vadd.f32 %v4114_v48, %v10138_v30 }
0x1c58   :  { %v8848_v52 = vpop.f32.mrf.mxu1 }
0x1c5a   :  { %v4192_v34 = vpop.f32.mrf.mxu1 }
0x1c5b   :  { %v4353_v43 = vadd.f32 %v4192_v34, %v10141_v5 }
0x1c5c   :  { %v8853_v15 = vpop.f32.mrf.mxu1 }
0x1c5d   :  { %v4360_v58 = vrot.slane %v4353_v43, 7 }
0x1c5e   :  { %v4348_v39 = vpop.f32.mrf.mxu1 }
0x1c5f   :  { %v4355_v9 = vadd.f32 %v4348_v39, %v11602_v46  ;;  %v4361_v60 = vsel %vm605_vm1, %v4360_v58, %v4352_v33 }
0x1c60   :  { %v8863_v22 = vpop.f32.mrf.mxu1  ;;  %v4363_v41 = vsel %vm608_vm2, %v4362_v13, %v4361_v60 }
0x1c61   :  { %v4364_v61 = vrot.slane %v4355_v9, 5 }
0x1c63   :  { %v4365_v52 = vsel %vm611_vm3, %v4364_v61, %v4363_v41 }
0x1c64   :  { %v4367_v34 = vsel %vm268_vm5, %v4365_v52, -inf }
0x1c65   :  { %4368 = vmax.xlane.f32.xlu1 %v4367_v34 }
0x1cee   :  { %v4369_v59 = vpop.xlane.xlu1 %4368 }
0x1cef   :  { %v4371_v15 = vrot.slane %v4369_v59, 1  ;;  %v4372_v19 = vrot.slane %v4369_v59, 2  ;;  %v4373_v48 = vrot.slane %v4369_v59, 3  ;;  %v4378_v24 = vsub.f32 %v4352_v33, %v4369_v59 }
0x1cf1   :  { %v4379_v55 = vsub.f32 %v4353_v43, %v4371_v15  ;;  %v4380_v28 = vsub.f32 %v4354_v47, %v4372_v19  ;;  %v4381_v39 = vsub.f32 %v4355_v9, %v4373_v48  ;;  %v4382_v10 = vmul.f32 1.442695, %v4378_v24  ;;  %v10853_v48 = vld [vmem:[#allocation5 + $0x8] sm:$0xff] }
0x1cf3   :  { %v4384_v58 = vmul.f32 1.442695, %v4379_v55  ;;  %v4386_v56 = vmul.f32 1.442695, %v4380_v28  ;;  %v4388_v22 = vmul.f32 1.442695, %v4381_v39  ;;  %9306 = vpow2.f32 %v4382_v10 }
0x1cf4   :  { %v4723_v39 = vrot.slane %v10853_v48, 3 }
0x1cf5   :  { %9308 = vpow2.f32 %v4384_v58  ;;  %v10856_v58 = vld [vmem:[#allocation5 + $0x10] sm:$0xff] }
0x1cf6   :  { %9310 = vpow2.f32 %v4386_v56 }
0x1cf7   :  { %9312 = vpow2.f32 %v4388_v22  ;;  %v4725_v22 = vrot.slane %v10856_v58, 2 }
0x1d00   :  { %v9307_v60 = vpop.eup %9306 }
0x1d02   :  { %v9309_v13 = vpop.eup %9308 }
0x1d03   :  { %v9311_v61 = vpop.eup %9310  ;;  %v4394_v41 = vrot.slane %v9309_v13, 7 }
0x1d04   :  { %v9313_v52 = vpop.eup %9312  ;;  %v4396_v34 = vrot.slane %v9311_v61, 6 }
0x1d05   :  { %v4395_v46 = vsel %vm605_vm1, %v4394_v41, %v9307_v60  ;;  %v4398_v33 = vrot.slane %v9313_v52, 5 }
0x1d06   :  { %v4397_v19 = vsel %vm608_vm2, %v4396_v34, %v4395_v46 }
0x1d07   :  { %v4399_v24 = vsel %vm611_vm3, %v4398_v33, %v4397_v19 }
0x1d08   :  { %v4401_v28 = vsel %vm268_vm5, %v4399_v24, 0.0 }
0x1d09   :  { %4402 = vadd.xlane.f32.xlu0 %v4401_v28 }
0x1d92   :  { %v4403_v10 = vpop.xlane.xlu0 %4402 }
0x1d93   :  { %9314 = vrcp.f32 %v4403_v10 }
0x1da0   :  { %v9315_v56 = vpop.eup %9314 }
0x1da1   :  { %v4413_v55 = vmul.f32 %v9315_v56, %v9307_v60  ;;  %v4406_v43 = vrot.slane %v9315_v56, 1  ;;  %v4407_v47 = vrot.slane %v9315_v56, 2  ;;  %v4408_v59 = vrot.slane %v9315_v56, 3 }
0x1da3   :  { %8867 = vmatmul.mubr.msk.f32.vlgmr.msra.gmra.mxu0 %vm298_vm4, %v4413_v55  ;;  %v4414_v9 = vmul.f32 %v9309_v13, %v4406_v43  ;;  %v4415_v46 = vmul.f32 %v9311_v61, %v4407_v47  ;;  %v4416_v15 = vmul.f32 %v9313_v52, %v4408_v59  ;;  %v4727_v13 = vrot.slane %v10338_v45, 1 }
0x1da4   :  { %8875 = vmatpush3.msra.mxu0 %v10331_v12  ;;  %8876 = vmatprep.mubr.msk.f32.mxu0 %vm9640_vm0, %v11599_v42  ;;  %v4722_v12 = vrot.slane %v10394_v0, 4 }
0x1da5   :  { %8872 = vmatmul.mubr.msk.f32.vlgmr.msra.gmra.mxu1 %vm298_vm4, %v4414_v9  ;;  %8884 = vmatprep.subr.mxu0 %v11599_v42 }
0x1da6   :  { %8880 = vmatpush3.msra.mxu1 %v10338_v45  ;;  %8881 = vmatprep.mubr.msk.f32.mxu1 %vm9640_vm0, %v11599_v42  ;;  %v4724_v60 = vsel %vm605_vm1, %v4723_v39, %v4722_v12 }
0x1da7   :  { %8877 = vmatmul.mubr.msk.f32.vlgmr.msra.gmra.mxu0 %vm298_vm4, %v4415_v46  ;;  %8915 = vmatprep.subr.mxu1 %v11599_v42  ;;  %v4726_v61 = vsel %vm608_vm2, %v4725_v22, %v4724_v60 }
0x1da8   :  { %8885 = vmatpush3.msra.mxu0 %v10519_v51  ;;  %8912 = vmatprep.mubr.msk.f32.mxu0 %vm9640_vm0, %v11599_v42  ;;  %v4728_v41 = vsel %vm611_vm3, %v4727_v13, %v4726_v61 }
0x1da9   :  { %8882 = vmatmul.mubr.msk.f32.vlgmr.msra.gmra.mxu1 %vm298_vm4, %v4416_v15  ;;  %8886 = vmatprep.subr.mxu0 %v11599_v42 }
0x1daa   :  { %8887 = vmatpush3.msra.mxu0 %v10529_v14  ;;  %8916 = vmatpush3.msra.mxu1 %v10535_v44 }
0x1dab   :  { %8888 = vmatprep.subr.mxu0 %v11599_v42  ;;  %8917 = vmatprep.subr.mxu1 %v11599_v42 }
0x1dac   :  { %8889 = vmatpush3.msra.mxu0 %v10543_v29  ;;  %8918 = vmatpush3.msra.mxu1 %v10549_v35 }
0x1dad   :  { %8890 = vmatprep.subr.mxu0 %v11599_v42  ;;  %8919 = vmatprep.subr.mxu1 %v11599_v42 }
0x1dae   :  { %8891 = vmatpush3.msra.mxu0 %v10557_v27  ;;  %8920 = vmatpush3.msra.mxu1 %v10563_v31 }
0x1daf   :  { %8892 = vmatprep.subr.mxu0 %v11599_v42  ;;  %8921 = vmatprep.subr.mxu1 %v11599_v42 }
0x1db0   :  { %8893 = vmatpush3.msra.mxu0 %v10571_v40  ;;  %8922 = vmatpush3.msra.mxu1 %v10577_v49 }
0x1db1   :  { %8894 = vmatprep.subr.mxu0 %v11599_v42  ;;  %8923 = vmatprep.subr.mxu1 %v11599_v42 }
0x1db2   :  { %8895 = vmatpush3.msra.mxu0 %v10585_v1  ;;  %8924 = vmatpush3.msra.mxu1 %v10591_v2 }
0x1db3   :  { %8896 = vmatprep.subr.mxu0 %v11599_v42  ;;  %8925 = vmatprep.subr.mxu1 %v11599_v42 }
0x1db4   :  { %8897 = vmatpush3.msra.mxu0 %v10599_v53  ;;  %8926 = vmatpush3.msra.mxu1 %v10605_v36 }
0x1db5   :  { %8898 = vmatprep.subr.mxu0 %v11599_v42  ;;  %8927 = vmatprep.subr.mxu1 %v11599_v42 }
0x1db6   :  { %8899 = vmatpush3.msra.mxu0 %v10613_v3  ;;  %8928 = vmatpush3.msra.mxu1 %v10619_v4 }
0x1db7   :  { %8900 = vmatprep.subr.mxu0 %v11599_v42  ;;  %8929 = vmatprep.subr.mxu1 %v11599_v42 }
0x1db8   :  { %8901 = vmatpush3.msra.mxu0 %v10627_v6  ;;  %8930 = vmatpush3.msra.mxu1 %v10633_v8 }
0x1db9   :  { %8902 = vmatprep.subr.mxu0 %v11599_v42  ;;  %8931 = vmatprep.mubr.msk.f32.mxu1 %vm9640_vm0, %v11599_v42 }
0x1dba   :  { %8903 = vmatpush3.msra.mxu0 %v10642_v11  ;;  %8934 = vmatprep.subr.mxu1 %v11599_v42 }
0x1dbb   :  { %8904 = vmatprep.subr.mxu0 %v11599_v42  ;;  %4729 = vrot.lane.b32.xlu1 %v4728_v41, %s9643_s18 }
0x1dbc   :  { %8905 = vmatpush3.msra.mxu0 %v10650_v16 }
0x1dbd   :  { %8906 = vmatprep.subr.mxu0 %v11599_v42 }
0x1dbe   :  { %8907 = vmatpush3.msra.mxu0 %v10657_v17 }
0x1dbf   :  { %8908 = vmatprep.subr.mxu0 %v11599_v42 }
0x1dc0   :  { %8909 = vmatpush3.msra.mxu0 %v10664_v18 }
0x1dc1   :  { %8910 = vmatprep.subr.mxu0 %v11599_v42 }
0x1dc2   :  { %8911 = vmatpush3.msra.mxu0 %v10671_v21 }
0x1dc3   :  { %8949 = vmatprep.subr.mxu0 %v11599_v42 }
0x1e2d   :  { %v4730_v15 = vpop.permute.xlu1 %4729 }
0x1e63   :  { %v4486_v52 = vpop.f32.mrf.mxu0 }
0x1e65   :  { %v8868_v0 = vpop.f32.mrf.mxu0  ;;  %v4559_v34 = vpop.f32.mrf.mxu1 }
0x1e66   :  { %v4713_v33 = vrot.slane %v4559_v34, 7 }
0x1e67   :  { %v8873_v19 = vpop.f32.mrf.mxu1  ;;  %v4632_v24 = vpop.f32.mrf.mxu0 }
0x1e68   :  { %v4714_v28 = vsel %vm605_vm1, %v4713_v33, %v4486_v52  ;;  %v4715_v10 = vrot.slane %v4632_v24, 6 }
0x1e69   :  { %v8878_v56 = vpop.f32.mrf.mxu0  ;;  %v4705_v55 = vpop.f32.mrf.mxu1 }
0x1e6a   :  { %v4717_v43 = vrot.slane %v4705_v55, 5  ;;  %v4716_v45 = vsel %vm608_vm2, %v4715_v10, %v4714_v28 }
0x1e6b   :  { %v8883_v47 = vpop.f32.mrf.mxu1 }
0x1e6c   :  { %v4718_v9 = vsel %vm611_vm3, %v4717_v43, %v4716_v45 }
0x1e6d   :  { %4719 = vrot.lane.b32.xlu0 %v4718_v9, %s9642_s17 }
0x1e71   :  { %4732 = vrot.lane.b32.xlu0 %v10713_v57, %s9642_s17 }
0x1edf   :  { %v4720_v59 = vpop.permute.xlu0 %4719 }
0x1ee0   :  { %v4735_v46 = vsel %vm797_vm8, %v10778_v62, %v4720_v59 }
0x1ee1   :  { %v4736_v12 = vsel %vm799_vm9, %v4735_v46, %v4730_v15 }
0x1ee3   :  { %v4733_v39 = vpop.permute.xlu0 %4732 }
0x1ee4   :  { %v4737_v22 = vsel %vm801_vm10, %v4736_v12, %v4733_v39 }
0x1ee5   :  { %8913 = vmatmul.mubr.msk.f32.vlgmr.msra.gmra.mxu0 %vm803_vm11, %v4737_v22 }
0x1ee6   :  { %8950 = vmatpush3.xpose.msk.msra.mxu0 %vm169_vm6, %v10113_v63  ;;  %8951 = vmatprep.mubr.msk.f32.mxu0 %vm9640_vm0, %v11599_v42 }
0x1ee7   :  { %8959 = vmatprep.subr.mxu0 %v11599_v42 }
0x1fa5   :  { %v4807_v57 = vpop.f32.mrf.mxu0 }
0x1fa6   :  { %v4808_v60 = vadd.f32 %v10702_v38, %v4807_v57 }
0x1fa7   :  { %v8914_v62 = vpop.f32.mrf.mxu0 }
0x1fa8   :  { %9316 = vtanh.f32 %v4808_v60  ;;  %v8060_v61 = vmul.f32 -1.442695, %v4808_v60 }
0x1faa   :  { %9318 = vpow2.f32 %v8060_v61 }
0x1fb5   :  { %v9317_v13 = vpop.eup %9316 }
0x1fb6   :  { %4820 = vrot.lane.b32.xlu0 %v9317_v13, %s9644_s22 }
0x1fb7   :  { %v9319_v41 = vpop.eup %9318 }
0x1fb8   :  { %v4814_v52 = vadd.f32 1.0, %v9319_v41  ;;  %v10915_v41 = vld [vmem:[#allocation5] sm:$0xff] }
0x1fba   :  { %9320 = vrcp.f32 %v4814_v52 }
0x1fc7   :  { %v9321_v0 = vpop.eup %9320 }
0x1fc8   :  { %v4818_v19 = vmul.f32 %v9321_v0, %v10708_v26 }
0x2028   :  { %v4821_v34 = vpop.permute.xlu0 %4820 }
0x2029   :  { %v4823_v33 = vmul.f32 %v9321_v0, %v4821_v34 }
0x202b   :  { %4825 = vrot.lane.b32.xlu0 %v4823_v33, %s9644_s22 }
0x209d   :  { %v4826_v24 = vpop.permute.xlu0 %4825 }
0x209e   :  { %v10884_v28 = vadd.f32 %v4826_v24, %v4818_v19 }
0x20a0   :  { %9322 = vtanh.f32 %v10884_v28 }
0x20ad   :  { %v9323_v10 = vpop.eup %9322 }
0x20ae   :  { %4831 = vrot.lane.b32.xlu0 %v9323_v10, %s9644_s22 }
0x20b2   :  { %4839 = vrot.lane.b32.xlu0 %v4718_v9, %s9644_s22 }
0x2120   :  { %v4832_v56 = vpop.permute.xlu0 %4831 }
0x2121   :  { %v10889_v55 = vmul.f32 %v9321_v0, %v4832_v56 }
0x2123   :  { %v5001_v43 = vrot.slane %v10889_v55, %v9766_v7  ;;  %4836 = vrot.lane.b32.xlu1 %v10889_v55, %s9645_s2 }
0x2124   :  { %v4840_v22 = vpop.permute.xlu0 %4839 }
0x2125   :  { %v5002_v26 = vcombine.high %v5001_v43, %v5001_v43  ;;  %v5009_v45 = vrot.slane %v5001_v43, %v9766_v7 }
0x2127   :  { %v5022_v47 = vrot.slane %v5009_v45, %v10052_v25  ;;  %v5016_v59 = vrot.slane %v5002_v26, %v9766_v7  ;;  %v5017_v46 = vcombine.high %v5009_v45, %v5009_v45 }
0x2129   :  { %5023 = vrot.lane.b32.xlu0 %v5022_v47, %s9645_s2  ;;  %v5100_v9 = vrot.slane %v5016_v59, %v10052_v25  ;;  %v5178_v15 = vrot.slane %v5017_v46, %v10052_v25  ;;  %v5018_v12 = vcombine.high %v5016_v59, %v5016_v59 }
0x212b   :  { %v5256_v39 = vrot.slane %v5018_v12, %v10052_v25 }
0x212d   :  { %5101 = vrot.lane.b32.xlu0 %v5100_v9, %s9645_s2 }
0x2131   :  { %5179 = vrot.lane.b32.xlu0 %v5178_v15, %s9645_s2 }
0x2135   :  { %5257 = vrot.lane.b32.xlu0 %v5256_v39, %s9645_s2 }
0x2195   :  { %v4837_v57 = vpop.permute.xlu1 %4836 }
0x2196   :  { %v10906_v60 = vsel %vm169_vm6, %v4837_v57, %v4840_v22  ;;  %v11609_v57 = vld [vmem:[#allocation26_spill] sm:$0xff] }
0x2197   :  { %11607 = vst [vmem:[#allocation33_spill] sm:$0xff] %v10906_v60  ;;  %8932 = vmatmul.mubr.msk.f32.vlgmr.msra.gmra.mxu1 %vm909_vm12, %v10906_v60 }
0x2198   :  { %8935 = vmatpush3.msra.mxu1 %v10450_v20  ;;  %8936 = vmatprep.mubr.msk.f32.mxu1 %vm9640_vm0, %v11599_v42 }
0x2199   :  { %8939 = vmatprep.subr.mxu1 %v11599_v42 }
0x219b   :  { %v5024_v62 = vpop.permute.xlu0 %5023 }
0x219f   :  { %v5102_v13 = vpop.permute.xlu0 %5101 }
0x21a3   :  { %v5180_v61 = vpop.permute.xlu0 %5179 }
0x21a4   :  { %8952 = vmatmul.mubr.msk.f32.vlgmr.msra.gmra.mxu0 %vm169_vm6, %v5180_v61 }
0x21a5   :  { %8960 = vmatpush3.msra.mxu0 %v10915_v41  ;;  %8961 = vmatprep.mubr.msk.f32.mxu0 %vm9640_vm0, %v11599_v42 }
0x21a6   :  { %8969 = vmatprep.subr.mxu0 %v11599_v42 }
0x21a7   :  { %v5258_v56 = vpop.permute.xlu0 %5257 }
0x2257   :  { %v4912_v20 = vpop.f32.mrf.mxu1 }
0x2258   :  { %v10922_v52 = vadd.f32 %v10746_v23, %v4912_v20 }
0x2259   :  { %v8933_v0 = vpop.f32.mrf.mxu1 }
0x225a   :  { %11608 = vst [vmem:[#allocation34_spill] sm:$0xff] %v10922_v52  ;;  %v4916_v34 = vsel %vm268_vm5, %v10922_v52, -inf }
0x225b   :  { %4917 = vmax.xlane.f32.xlu1 %v4916_v34 }
0x2264   :  { %v5249_v33 = vpop.f32.mrf.mxu0 }
0x2265   :  { %v5333_v46 = vadd.f32 %v5249_v33, %v10144_v37 }
0x2266   :  { %v8953_v19 = vpop.f32.mrf.mxu0 }
0x2267   :  { %v5341_v61 = vrot.slane %v5333_v46, 6 }
0x22e4   :  { %v4918_v24 = vpop.xlane.xlu1 %4917 }
0x22e5   :  { %vm4919_vm13 = vcmp.eq.f32.partialorder %v10922_v52, %v4918_v24 }
0x22e6   :  { %v8062_v10 = vsel %vm4919_vm13, 1.0, %v11599_v42 }
0x22e7   :  { %8937 = vmatmul.mubr.msk.f32.vlgmr.msra.gmra.mxu1 %vm298_vm4, %v8062_v10 }
0x22e8   :  { %8940 = vmatpush3.xpose.msk.msra.mxu1 %vm169_vm6, %v10094_v50  ;;  %8941 = vmatprep.mubr.msk.f32.mxu1 %vm9640_vm0, %v11599_v42 }
0x22e9   :  { %8944 = vmatprep.subr.mxu1 %v11599_v42 }
0x22eb   :  { %8942 = vmatmul.mubr.msk.f32.vlgmr.msra.gmra.mxu1 %vm169_vm6, %v5024_v62 }
0x22ec   :  { %8945 = vmatpush3.xpose.msk.msra.mxu1 %vm169_vm6, %v10104_v54  ;;  %8946 = vmatprep.mubr.msk.f32.mxu1 %vm9640_vm0, %v11599_v42 }
0x22ed   :  { %8954 = vmatprep.subr.mxu1 %v11599_v42 }
0x22ef   :  { %8947 = vmatmul.mubr.msk.f32.vlgmr.msra.gmra.mxu1 %vm169_vm6, %v5102_v13 }
0x22f0   :  { %8955 = vmatpush3.xpose.msk.msra.mxu1 %vm169_vm6, %v10122_v32  ;;  %8956 = vmatprep.mubr.msk.f32.mxu1 %vm9640_vm0, %v11599_v42 }
0x22f1   :  { %8964 = vmatprep.subr.mxu1 %v11599_v42 }
0x22f3   :  { %8957 = vmatmul.mubr.msk.f32.vlgmr.msra.gmra.mxu1 %vm169_vm6, %v5258_v56 }
0x22f4   :  { %8965 = vmatpush3.msra.mxu1 %v10853_v48  ;;  %8966 = vmatprep.mubr.msk.f32.mxu1 %vm9640_vm0, %v11599_v42 }
0x22f5   :  { %8974 = vmatprep.subr.mxu1 %v11599_v42 }
0x23a7   :  { %v10951_v43 = vpop.f32.mrf.mxu1 }
0x23a9   :  { %v8938_v26 = vpop.f32.mrf.mxu1 }
0x23ab   :  { %v5093_v45 = vpop.f32.mrf.mxu1 }
0x23ac   :  { %v5331_v12 = vadd.f32 %v5093_v45, %v10138_v30 }
0x23ad   :  { %v8943_v47 = vpop.f32.mrf.mxu1 }
0x23af   :  { %v5171_v59 = vpop.f32.mrf.mxu1 }
0x23b0   :  { %v5332_v9 = vadd.f32 %v5171_v59, %v10141_v5 }
0x23b1   :  { %v8948_v15 = vpop.f32.mrf.mxu1 }
0x23b2   :  { %v5339_v39 = vrot.slane %v5332_v9, 7 }
0x23b3   :  { %v5327_v22 = vpop.f32.mrf.mxu1 }
0x23b4   :  { %v5334_v62 = vadd.f32 %v5327_v22, %v11609_v57  ;;  %v5340_v13 = vsel %vm605_vm1, %v5339_v39, %v5331_v12 }
0x23b5   :  { %v8958_v20 = vpop.f32.mrf.mxu1  ;;  %v5342_v34 = vsel %vm608_vm2, %v5341_v61, %v5340_v13 }
0x23b6   :  { %v5343_v0 = vrot.slane %v5334_v62, 5 }
0x23b8   :  { %v5344_v19 = vsel %vm611_vm3, %v5343_v0, %v5342_v34 }
0x23b9   :  { %v5346_v24 = vsel %vm268_vm5, %v5344_v19, -inf }
0x23ba   :  { %5347 = vmax.xlane.f32.xlu0 %v5346_v24 }
0x2443   :  { %v5348_v33 = vpop.xlane.xlu0 %5347 }
0x2444   :  { %v5350_v10 = vrot.slane %v5348_v33, 1  ;;  %v5351_v56 = vrot.slane %v5348_v33, 2  ;;  %v5352_v26 = vrot.slane %v5348_v33, 3  ;;  %v5357_v45 = vsub.f32 %v5331_v12, %v5348_v33 }
0x2446   :  { %v5358_v47 = vsub.f32 %v5332_v9, %v5350_v10  ;;  %v5359_v59 = vsub.f32 %v5333_v46, %v5351_v56  ;;  %v5360_v15 = vsub.f32 %v5334_v62, %v5352_v26  ;;  %v5361_v22 = vmul.f32 1.442695, %v5357_v45 }
0x2448   :  { %v5363_v39 = vmul.f32 1.442695, %v5358_v47  ;;  %v5365_v60 = vmul.f32 1.442695, %v5359_v59  ;;  %v5367_v20 = vmul.f32 1.442695, %v5360_v15  ;;  %9324 = vpow2.f32 %v5361_v22 }
0x2449   :  { %v10971_v59 = vld [vmem:[#allocation5 + $0x18] sm:$0xff] }
0x244a   :  { %9326 = vpow2.f32 %v5363_v39 }
0x244b   :  { %9328 = vpow2.f32 %v5365_v60 }
0x244c   :  { %9330 = vpow2.f32 %v5367_v20 }
0x2455   :  { %v9325_v13 = vpop.eup %9324 }
0x2457   :  { %v9327_v61 = vpop.eup %9326 }
0x2458   :  { %v9329_v0 = vpop.eup %9328  ;;  %v5373_v34 = vrot.slane %v9327_v61, 7 }
0x2459   :  { %v9331_v19 = vpop.eup %9330  ;;  %v5375_v24 = vrot.slane %v9329_v0, 6 }
0x245a   :  { %v5374_v52 = vsel %vm605_vm1, %v5373_v34, %v9325_v13  ;;  %v5377_v12 = vrot.slane %v9331_v19, 5 }
0x245b   :  { %v5376_v9 = vsel %vm608_vm2, %v5375_v24, %v5374_v52 }
0x245c   :  { %v5378_v46 = vsel %vm611_vm3, %v5377_v12, %v5376_v9 }
0x245d   :  { %v5380_v62 = vsel %vm268_vm5, %v5378_v46, 0.0 }
0x245e   :  { %5381 = vadd.xlane.f32.xlu1 %v5380_v62 }
0x24e7   :  { %v5382_v33 = vpop.xlane.xlu1 %5381 }
0x24e8   :  { %9332 = vrcp.f32 %v5382_v33 }
0x24f5   :  { %v9333_v60 = vpop.eup %9332 }
0x24f6   :  { %v5392_v10 = vmul.f32 %v9333_v60, %v9325_v13  ;;  %v5385_v56 = vrot.slane %v9333_v60, 1  ;;  %v5386_v26 = vrot.slane %v9333_v60, 2  ;;  %v5387_v47 = vrot.slane %v9333_v60, 3 }
0x24f8   :  { %8962 = vmatmul.mubr.msk.f32.vlgmr.msra.gmra.mxu0 %vm298_vm4, %v5392_v10  ;;  %v5393_v45 = vmul.f32 %v9327_v61, %v5385_v56  ;;  %v5394_v52 = vmul.f32 %v9329_v0, %v5386_v26  ;;  %v5395_v15 = vmul.f32 %v9331_v19, %v5387_v47 }
0x24f9   :  { %8970 = vmatpush3.msra.mxu0 %v10856_v58  ;;  %8971 = vmatprep.mubr.msk.f32.mxu0 %vm9640_vm0, %v11599_v42 }
0x24fa   :  { %8967 = vmatmul.mubr.msk.f32.vlgmr.msra.gmra.mxu1 %vm298_vm4, %v5393_v45  ;;  %8979 = vmatprep.subr.mxu0 %v11599_v42 }
0x24fb   :  { %8975 = vmatpush3.msra.mxu1 %v10971_v59  ;;  %8976 = vmatprep.mubr.msk.f32.mxu1 %vm9640_vm0, %v11599_v42 }
0x24fc   :  { %8972 = vmatmul.mubr.msk.f32.vlgmr.msra.gmra.mxu0 %vm298_vm4, %v5394_v52  ;;  %9010 = vmatprep.subr.mxu1 %v11599_v42 }
0x24fd   :  { %8980 = vmatpush3.msra.mxu0 %v10519_v51  ;;  %9007 = vmatprep.mubr.msk.f32.mxu0 %vm9640_vm0, %v11599_v42  ;;  %v5701_v51 = vrot.slane %v10915_v41, 5 }
0x24fe   :  { %8977 = vmatmul.mubr.msk.f32.vlgmr.msra.gmra.mxu1 %vm298_vm4, %v5395_v15  ;;  %8981 = vmatprep.subr.mxu0 %v11599_v42 }
0x24ff   :  { %8982 = vmatpush3.msra.mxu0 %v10529_v14  ;;  %9011 = vmatpush3.msra.mxu1 %v10535_v44  ;;  %v5702_v14 = vrot.slane %v10853_v48, 4  ;;  %v5704_v44 = vrot.slane %v10856_v58, 3 }
0x2500   :  { %8983 = vmatprep.subr.mxu0 %v11599_v42  ;;  %9012 = vmatprep.subr.mxu1 %v11599_v42 }
0x2501   :  { %8984 = vmatpush3.msra.mxu0 %v10543_v29  ;;  %9013 = vmatpush3.msra.mxu1 %v10549_v35  ;;  %v5703_v29 = vsel %vm605_vm1, %v5702_v14, %v5701_v51  ;;  %v5706_v35 = vrot.slane %v10971_v59, 2 }
0x2502   :  { %8985 = vmatprep.subr.mxu0 %v11599_v42  ;;  %9014 = vmatprep.subr.mxu1 %v11599_v42 }
0x2503   :  { %8986 = vmatpush3.msra.mxu0 %v10557_v27  ;;  %9015 = vmatpush3.msra.mxu1 %v10563_v31  ;;  %v5705_v27 = vsel %vm608_vm2, %v5704_v44, %v5703_v29 }
0x2504   :  { %8987 = vmatprep.subr.mxu0 %v11599_v42  ;;  %9016 = vmatprep.subr.mxu1 %v11599_v42  ;;  %v5707_v31 = vsel %vm611_vm3, %v5706_v35, %v5705_v27 }
0x2505   :  { %8988 = vmatpush3.msra.mxu0 %v10571_v40  ;;  %9017 = vmatpush3.msra.mxu1 %v10577_v49 }
0x2506   :  { %8989 = vmatprep.subr.mxu0 %v11599_v42  ;;  %9018 = vmatprep.subr.mxu1 %v11599_v42 }
0x2507   :  { %8990 = vmatpush3.msra.mxu0 %v10585_v1  ;;  %9019 = vmatpush3.msra.mxu1 %v10591_v2 }
0x2508   :  { %8991 = vmatprep.subr.mxu0 %v11599_v42  ;;  %9020 = vmatprep.subr.mxu1 %v11599_v42 }
0x2509   :  { %8992 = vmatpush3.msra.mxu0 %v10599_v53  ;;  %9021 = vmatpush3.msra.mxu1 %v10605_v36 }
0x250a   :  { %8993 = vmatprep.subr.mxu0 %v11599_v42  ;;  %9022 = vmatprep.subr.mxu1 %v11599_v42 }
0x250b   :  { %8994 = vmatpush3.msra.mxu0 %v10613_v3  ;;  %9023 = vmatpush3.msra.mxu1 %v10619_v4 }
0x250c   :  { %8995 = vmatprep.subr.mxu0 %v11599_v42  ;;  %9024 = vmatprep.subr.mxu1 %v11599_v42 }
0x250d   :  { %8996 = vmatpush3.msra.mxu0 %v10627_v6  ;;  %9025 = vmatpush3.msra.mxu1 %v10633_v8 }
0x250e   :  { %8997 = vmatprep.subr.mxu0 %v11599_v42  ;;  %9026 = vmatprep.mubr.msk.f32.mxu1 %vm9640_vm0, %v11599_v42 }
0x250f   :  { %8998 = vmatpush3.msra.mxu0 %v10642_v11  ;;  %9029 = vmatprep.subr.mxu1 %v11599_v42 }
0x2510   :  { %8999 = vmatprep.subr.mxu0 %v11599_v42  ;;  %5708 = vrot.lane.b32.xlu0 %v5707_v31, %s9643_s18 }
0x2511   :  { %9000 = vmatpush3.msra.mxu0 %v10650_v16 }
0x2512   :  { %9001 = vmatprep.subr.mxu0 %v11599_v42 }
0x2513   :  { %9002 = vmatpush3.msra.mxu0 %v10657_v17 }
0x2514   :  { %9003 = vmatprep.subr.mxu0 %v11599_v42 }
0x2515   :  { %9004 = vmatpush3.msra.mxu0 %v10664_v18 }
0x2516   :  { %9005 = vmatprep.subr.mxu0 %v11599_v42 }
0x2517   :  { %9006 = vmatpush3.msra.mxu0 %v10671_v21 }
0x2518   :  { %9044 = vmatprep.subr.mxu0 %v11599_v42 }
0x2582   :  { %v5709_v39 = vpop.permute.xlu0 %5708 }
0x25b8   :  { %v5465_v40 = vpop.f32.mrf.mxu0 }
0x25ba   :  { %v8963_v49 = vpop.f32.mrf.mxu0  ;;  %v5538_v1 = vpop.f32.mrf.mxu1 }
0x25bb   :  { %v5692_v2 = vrot.slane %v5538_v1, 7  ;;  %v11081_v49 = vld [vmem:[#allocation8] sm:$0xff] }
0x25bc   :  { %v8968_v53 = vpop.f32.mrf.mxu1  ;;  %v5611_v36 = vpop.f32.mrf.mxu0 }
0x25bd   :  { %v5693_v3 = vsel %vm605_vm1, %v5692_v2, %v5465_v40  ;;  %v5694_v4 = vrot.slane %v5611_v36, 6 }
0x25be   :  { %v8973_v6 = vpop.f32.mrf.mxu0  ;;  %v5684_v8 = vpop.f32.mrf.mxu1 }
0x25bf   :  { %v5696_v11 = vrot.slane %v5684_v8, 5  ;;  %v5695_v16 = vsel %vm608_vm2, %v5694_v4, %v5693_v3 }
0x25c0   :  { %v8978_v17 = vpop.f32.mrf.mxu1 }
0x25c1   :  { %v5697_v18 = vsel %vm611_vm3, %v5696_v11, %v5695_v16 }
0x25c2   :  { %5698 = vrot.lane.b32.xlu1 %v5697_v18, %s9642_s17 }
0x25c6   :  { %5711 = vrot.lane.b32.xlu1 %v10889_v55, %s9642_s17 }
0x2634   :  { %v5699_v21 = vpop.permute.xlu1 %5698 }
0x2635   :  { %v5714_v22 = vsel %vm797_vm8, %v10951_v43, %v5699_v21 }
0x2636   :  { %v5715_v20 = vsel %vm799_vm9, %v5714_v22, %v5709_v39 }
0x2638   :  { %v5712_v13 = vpop.permute.xlu1 %5711 }
0x2639   :  { %v5716_v61 = vsel %vm801_vm10, %v5715_v20, %v5712_v13 }
0x263a   :  { %9008 = vmatmul.mubr.msk.f32.vlgmr.msra.gmra.mxu0 %vm803_vm11, %v5716_v61 }
0x263b   :  { %9045 = vmatpush3.xpose.msk.msra.mxu0 %vm169_vm6, %v10113_v63  ;;  %9046 = vmatprep.mubr.msk.f32.mxu0 %vm9640_vm0, %v11599_v42 }
0x263c   :  { %9054 = vmatprep.subr.mxu0 %v11599_v42 }
0x26fa   :  { %v5786_v55 = vpop.f32.mrf.mxu0 }
0x26fb   :  { %v5787_v0 = vadd.f32 %v10702_v38, %v5786_v55 }
0x26fc   :  { %v9009_v43 = vpop.f32.mrf.mxu0 }
0x26fd   :  { %9334 = vtanh.f32 %v5787_v0  ;;  %v8077_v19 = vmul.f32 -1.442695, %v5787_v0 }
0x26ff   :  { %9336 = vpow2.f32 %v8077_v19 }
0x270a   :  { %v9335_v34 = vpop.eup %9334 }
0x270b   :  { %5799 = vrot.lane.b32.xlu1 %v9335_v34, %s9644_s22 }
0x270c   :  { %v9337_v24 = vpop.eup %9336 }
0x270d   :  { %v5793_v12 = vadd.f32 1.0, %v9337_v24 }
0x270f   :  { %9338 = vrcp.f32 %v5793_v12 }
0x271c   :  { %v9339_v9 = vpop.eup %9338 }
0x271d   :  { %v5797_v33 = vmul.f32 %v9339_v9, %v10884_v28 }
0x277d   :  { %v5800_v46 = vpop.permute.xlu1 %5799 }
0x277e   :  { %v5802_v62 = vmul.f32 %v9339_v9, %v5800_v46 }
0x2780   :  { %5804 = vrot.lane.b32.xlu1 %v5802_v62, %s9644_s22 }
0x27f2   :  { %v5805_v60 = vpop.permute.xlu1 %5804 }
0x27f3   :  { %v11055_v10 = vadd.f32 %v5805_v60, %v5797_v33 }
0x27f5   :  { %9340 = vtanh.f32 %v11055_v10 }
0x2802   :  { %v9341_v38 = vpop.eup %9340 }
0x2803   :  { %5810 = vrot.lane.b32.xlu1 %v9341_v38, %s9644_s22 }
0x2807   :  { %5818 = vrot.lane.b32.xlu1 %v5697_v18, %s9644_s22 }
0x2875   :  { %v5811_v56 = vpop.permute.xlu1 %5810 }
0x2876   :  { %v11060_v26 = vmul.f32 %v9339_v9, %v5811_v56 }
0x2878   :  { %v5980_v45 = vrot.slane %v11060_v26, %v9766_v7  ;;  %5815 = vrot.lane.b32.xlu0 %v11060_v26, %s9645_s2 }
0x2879   :  { %v5819_v27 = vpop.permute.xlu1 %5818 }
0x287a   :  { %v5981_v28 = vcombine.high %v5980_v45, %v5980_v45  ;;  %v5988_v47 = vrot.slane %v5980_v45, %v9766_v7 }
0x287c   :  { %v6001_v52 = vrot.slane %v5988_v47, %v10052_v25  ;;  %v5995_v15 = vrot.slane %v5981_v28, %v9766_v7  ;;  %v5996_v14 = vcombine.high %v5988_v47, %v5988_v47 }
0x287e   :  { %6002 = vrot.lane.b32.xlu1 %v6001_v52, %s9645_s2  ;;  %v6079_v51 = vrot.slane %v5995_v15, %v10052_v25  ;;  %v6157_v44 = vrot.slane %v5996_v14, %v10052_v25  ;;  %v5997_v29 = vcombine.high %v5995_v15, %v5995_v15 }
0x2880   :  { %v6235_v35 = vrot.slane %v5997_v29, %v10052_v25 }
0x2882   :  { %6080 = vrot.lane.b32.xlu1 %v6079_v51, %s9645_s2 }
0x2886   :  { %6158 = vrot.lane.b32.xlu1 %v6157_v44, %s9645_s2 }
0x288a   :  { %6236 = vrot.lane.b32.xlu1 %v6235_v35, %s9645_s2 }
0x28ea   :  { %v5816_v31 = vpop.permute.xlu0 %5815 }
0x28eb   :  { %v11077_v40 = vsel %vm169_vm6, %v5816_v31, %v5819_v27 }
0x28ec   :  { %9027 = vmatmul.mubr.msk.f32.vlgmr.msra.gmra.mxu1 %vm909_vm12, %v11077_v40 }
0x28ed   :  { %9030 = vmatpush3.msra.mxu1 %v11081_v49  ;;  %9031 = vmatprep.mubr.msk.f32.mxu1 %vm9640_vm0, %v11599_v42 }
0x28ee   :  { %9034 = vmatprep.subr.mxu1 %v11599_v42 }
0x28f0   :  { %v6003_v1 = vpop.permute.xlu1 %6002 }
0x28f4   :  { %v6081_v2 = vpop.permute.xlu1 %6080 }
0x28f8   :  { %v6159_v53 = vpop.permute.xlu1 %6158 }
0x28f9   :  { %9047 = vmatmul.mubr.msk.f32.vlgmr.msra.gmra.mxu0 %vm169_vm6, %v6159_v53 }
0x28fa   :  { %9055 = vmatpush3.msra.mxu0 %v10915_v41  ;;  %9056 = vmatprep.mubr.msk.f32.mxu0 %vm9640_vm0, %v11599_v42 }
0x28fb   :  { %9064 = vmatprep.subr.mxu0 %v11599_v42 }
0x29ac   :  { %v5891_v36 = vpop.f32.mrf.mxu1 }
0x29ad   :  { %v11093_v3 = vadd.f32 %v10746_v23, %v5891_v36  ;;  %v6237_v23 = vpop.permute.xlu1 %6236 }
0x29ae   :  { %v9028_v4 = vpop.f32.mrf.mxu1 }
0x29af   :  { %v5895_v6 = vsel %vm268_vm5, %v11093_v3, -inf }
0x29b0   :  { %5896 = vmax.xlane.f32.xlu0 %v5895_v6 }
0x29b9   :  { %v6228_v8 = vpop.f32.mrf.mxu0 }
0x29ba   :  { %v6312_v61 = vadd.f32 %v6228_v8, %v10144_v37 }
0x29bb   :  { %v9048_v11 = vpop.f32.mrf.mxu0 }
0x29bc   :  { %v6320_v12 = vrot.slane %v6312_v61, 6 }
0x2a39   :  { %v5897_v16 = vpop.xlane.xlu0 %5896 }
0x2a3a   :  { %vm5898_vm14 = vcmp.eq.f32.partialorder %v11093_v3, %v5897_v16 }
0x2a3b   :  { %v8079_v17 = vsel %vm5898_vm14, 1.0, %v11599_v42 }
0x2a3c   :  { %9032 = vmatmul.mubr.msk.f32.vlgmr.msra.gmra.mxu1 %vm298_vm4, %v8079_v17 }
0x2a3d   :  { %9035 = vmatpush3.xpose.msk.msra.mxu1 %vm169_vm6, %v10094_v50  ;;  %9036 = vmatprep.mubr.msk.f32.mxu1 %vm9640_vm0, %v11599_v42 }
0x2a3e   :  { %9039 = vmatprep.subr.mxu1 %v11599_v42 }
0x2a40   :  { %9037 = vmatmul.mubr.msk.f32.vlgmr.msra.gmra.mxu1 %vm169_vm6, %v6003_v1 }
0x2a41   :  { %9040 = vmatpush3.xpose.msk.msra.mxu1 %vm169_vm6, %v10104_v54  ;;  %9041 = vmatprep.mubr.msk.f32.mxu1 %vm9640_vm0, %v11599_v42 }
0x2a42   :  { %9049 = vmatprep.subr.mxu1 %v11599_v42 }
0x2a44   :  { %9042 = vmatmul.mubr.msk.f32.vlgmr.msra.gmra.mxu1 %vm169_vm6, %v6081_v2 }
0x2a45   :  { %9050 = vmatpush3.xpose.msk.msra.mxu1 %vm169_vm6, %v10122_v32  ;;  %9051 = vmatprep.mubr.msk.f32.mxu1 %vm9640_vm0, %v11599_v42 }
0x2a46   :  { %9059 = vmatprep.subr.mxu1 %v11599_v42 }
0x2a48   :  { %9052 = vmatmul.mubr.msk.f32.vlgmr.msra.gmra.mxu1 %vm169_vm6, %v6237_v23 }
0x2a49   :  { %9060 = vmatpush3.msra.mxu1 %v10853_v48  ;;  %9061 = vmatprep.mubr.msk.f32.mxu1 %vm9640_vm0, %v11599_v42 }
0x2a4a   :  { %9069 = vmatprep.subr.mxu1 %v11599_v42 }
0x2afc   :  { %v11122_v18 = vpop.f32.mrf.mxu1 }
0x2afe   :  { %v9033_v21 = vpop.f32.mrf.mxu1 }
0x2b00   :  { %v6072_v22 = vpop.f32.mrf.mxu1 }
0x2b01   :  { %v6310_v0 = vadd.f32 %v6072_v22, %v10138_v30 }
0x2b02   :  { %v9038_v39 = vpop.f32.mrf.mxu1 }
0x2b04   :  { %v6150_v20 = vpop.f32.mrf.mxu1 }
0x2b05   :  { %v6311_v13 = vadd.f32 %v6150_v20, %v10141_v5 }
0x2b06   :  { %v9043_v55 = vpop.f32.mrf.mxu1 }
0x2b07   :  { %v6318_v43 = vrot.slane %v6311_v13, 7 }
0x2b08   :  { %v6306_v34 = vpop.f32.mrf.mxu1 }
0x2b09   :  { %v6313_v19 = vadd.f32 %v6306_v34, %v11609_v57  ;;  %v6319_v24 = vsel %vm605_vm1, %v6318_v43, %v6310_v0  ;;  %v11160_v43 = vld [vmem:[%s11567_s7 + $0x60] sm:$0xff]  ;;  %v11166_v34 = vld [vmem:[%s11569_s9 + $0x38] sm:$0xff] }
0x2b0a   :  { %v9053_v9 = vpop.f32.mrf.mxu1  ;;  %v6321_v62 = vsel %vm608_vm2, %v6320_v12, %v6319_v24  ;;  %v11180_v24 = vld [vmem:[%s11569_s9 + $0x30] sm:$0xff] }
0x2b0b   :  { %v6322_v46 = vrot.slane %v6313_v19, 5  ;;  %v11188_v12 = vld [vmem:[%s11567_s7 + $0x50] sm:$0xff]  ;;  %v11194_v9 = vld [vmem:[%s11569_s9 + $0x28] sm:$0xff] }
0x2b0d   :  { %v6323_v33 = vsel %vm611_vm3, %v6322_v46, %v6321_v62  ;;  %v11202_v46 = vld [vmem:[%s11567_s7 + $0x48] sm:$0xff]  ;;  %v11208_v62 = vld [vmem:[%s11569_s9 + $0x20] sm:$0xff] }
0x2b0e   :  { %v6325_v60 = vsel %vm268_vm5, %v6323_v33, -inf  ;;  %v11216_v33 = vld [vmem:[%s11567_s7 + $0x40] sm:$0xff] }
0x2b0f   :  { %6326 = vmax.xlane.f32.xlu1 %v6325_v60  ;;  %v11222_v60 = vld [vmem:[%s11569_s9 + $0x18] sm:$0xff] }
0x2b98   :  { %v6327_v38 = vpop.xlane.xlu1 %6326 }
0x2b99   :  { %v6329_v56 = vrot.slane %v6327_v38, 1  ;;  %v6330_v45 = vrot.slane %v6327_v38, 2  ;;  %v6331_v28 = vrot.slane %v6327_v38, 3  ;;  %v6336_v47 = vsub.f32 %v6310_v0, %v6327_v38  ;;  %v11150_v0 = vld [vmem:[%s11567_s7 + $0x68] sm:$0xff]  ;;  %v11230_v38 = vld [vmem:[%s11567_s7 + $0x38] sm:$0xff] }
0x2b9b   :  { %v6337_v52 = vsub.f32 %v6311_v13, %v6329_v56  ;;  %v6338_v15 = vsub.f32 %v6312_v61, %v6330_v45  ;;  %v6339_v51 = vsub.f32 %v6313_v19, %v6331_v28  ;;  %v6340_v14 = vmul.f32 1.442695, %v6336_v47  ;;  %v11174_v19 = vld [vmem:[%s11567_s7 + $0x58] sm:$0xff]  ;;  %v11236_v56 = vld [vmem:[%s11569_s9 + $0x10] sm:$0xff]  ;;  %v11250_v28 = vld [vmem:[%s11569_s9 + $0x8] sm:$0xff] }
0x2b9c   :  { %v11244_v45 = vld [vmem:[%s11567_s7 + $0x30] sm:$0xff]  ;;  %v11258_v47 = vld [vmem:[%s11567_s7 + $0x28] sm:$0xff] }
0x2b9d   :  { %v6342_v44 = vmul.f32 1.442695, %v6337_v52  ;;  %v6344_v29 = vmul.f32 1.442695, %v6338_v15  ;;  %v6346_v35 = vmul.f32 1.442695, %v6339_v51  ;;  %9342 = vpow2.f32 %v6340_v14 }
0x2b9e   :  { %v11264_v52 = vld [vmem:[%s11569_s9] sm:$0xff]  ;;  %v11281_v51 = vld [vmem:[%s11567_s7 + $0x18] sm:$0xff]  ;;  %v11288_v14 = vld [vmem:[%s11567_s7 + $0x10] sm:$0xff] }
0x2b9f   :  { %9344 = vpow2.f32 %v6342_v44  ;;  %v11273_v15 = vld [vmem:[%s11567_s7 + $0x20] sm:$0xff]  ;;  %v11295_v44 = vld [vmem:[%s11567_s7 + $0x8] sm:$0xff] }
0x2ba0   :  { %9346 = vpow2.f32 %v6344_v29  ;;  %v11302_v29 = vld [vmem:[%s11567_s7] sm:$0xff] }
0x2ba1   :  { %9348 = vpow2.f32 %v6346_v35  ;;  %v6680_v35 = vrot.slane %v10915_v41, 6 }
0x2baa   :  { %v9343_v27 = vpop.eup %9342 }
0x2bac   :  { %v9345_v31 = vpop.eup %9344 }
0x2bad   :  { %v9347_v1 = vpop.eup %9346  ;;  %v6352_v2 = vrot.slane %v9345_v31, 7 }
0x2bae   :  { %v9349_v53 = vpop.eup %9348  ;;  %v6354_v36 = vrot.slane %v9347_v1, 6 }
0x2baf   :  { %v6353_v4 = vsel %vm605_vm1, %v6352_v2, %v9343_v27  ;;  %v6356_v6 = vrot.slane %v9349_v53, 5  ;;  %v6685_v2 = vrot.slane %v10971_v59, 3 }
0x2bb0   :  { %v6355_v8 = vsel %vm608_vm2, %v6354_v36, %v6353_v4 }
0x2bb1   :  { %v6357_v11 = vsel %vm611_vm3, %v6356_v6, %v6355_v8 }
0x2bb2   :  { %v6359_v16 = vsel %vm268_vm5, %v6357_v11, 0.0 }
0x2bb3   :  { %6360 = vadd.xlane.f32.xlu0 %v6359_v16 }
0x2c3c   :  { %v6361_v17 = vpop.xlane.xlu0 %6360 }
0x2c3d   :  { %9350 = vrcp.f32 %v6361_v17 }
0x2c4a   :  { %v9351_v23 = vpop.eup %9350 }
0x2c4b   :  { %v6371_v21 = vmul.f32 %v9351_v23, %v9343_v27  ;;  %v6364_v22 = vrot.slane %v9351_v23, 1  ;;  %v6365_v39 = vrot.slane %v9351_v23, 2  ;;  %v6366_v13 = vrot.slane %v9351_v23, 3 }
0x2c4c   :  { %v6681_v27 = vrot.slane %v10853_v48, 5 }
0x2c4d   :  { %9057 = vmatmul.mubr.msk.f32.vlgmr.msra.gmra.mxu0 %vm298_vm4, %v6371_v21  ;;  %v6372_v20 = vmul.f32 %v9345_v31, %v6364_v22  ;;  %v6373_v61 = vmul.f32 %v9347_v1, %v6365_v39  ;;  %v6374_v55 = vmul.f32 %v9349_v53, %v6366_v13  ;;  %v6683_v31 = vrot.slane %v10856_v58, 4 }
0x2c4e   :  { %9065 = vmatpush3.msra.mxu0 %v10856_v58  ;;  %9066 = vmatprep.mubr.msk.f32.mxu0 %vm9640_vm0, %v11599_v42  ;;  %v6682_v1 = vsel %vm605_vm1, %v6681_v27, %v6680_v35 }
0x2c4f   :  { %9062 = vmatmul.mubr.msk.f32.vlgmr.msra.gmra.mxu1 %vm298_vm4, %v6372_v20  ;;  %9074 = vmatprep.subr.mxu0 %v11599_v42  ;;  %v6684_v53 = vsel %vm608_vm2, %v6683_v31, %v6682_v1 }
0x2c50   :  { %9070 = vmatpush3.msra.mxu1 %v10971_v59  ;;  %9071 = vmatprep.mubr.msk.f32.mxu1 %vm9640_vm0, %v11599_v42  ;;  %v6686_v36 = vsel %vm611_vm3, %v6685_v2, %v6684_v53 }
0x2c51   :  { %9067 = vmatmul.mubr.msk.f32.vlgmr.msra.gmra.mxu0 %vm298_vm4, %v6373_v61  ;;  %9105 = vmatprep.subr.mxu1 %v11599_v42 }
0x2c52   :  { %9075 = vmatpush3.msra.mxu0 %v11150_v0  ;;  %9102 = vmatprep.mubr.msk.f32.mxu0 %vm9640_vm0, %v11599_v42 }
0x2c53   :  { %9072 = vmatmul.mubr.msk.f32.vlgmr.msra.gmra.mxu1 %vm298_vm4, %v6374_v55  ;;  %9076 = vmatprep.subr.mxu0 %v11599_v42 }
0x2c54   :  { %9077 = vmatpush3.msra.mxu0 %v11160_v43  ;;  %9106 = vmatpush3.msra.mxu1 %v11166_v34 }
0x2c55   :  { %9078 = vmatprep.subr.mxu0 %v11599_v42  ;;  %9107 = vmatprep.subr.mxu1 %v11599_v42 }
0x2c56   :  { %9079 = vmatpush3.msra.mxu0 %v11174_v19  ;;  %9108 = vmatpush3.msra.mxu1 %v11180_v24 }
0x2c57   :  { %9080 = vmatprep.subr.mxu0 %v11599_v42  ;;  %9109 = vmatprep.subr.mxu1 %v11599_v42 }
0x2c58   :  { %9081 = vmatpush3.msra.mxu0 %v11188_v12  ;;  %9110 = vmatpush3.msra.mxu1 %v11194_v9 }
0x2c59   :  { %9082 = vmatprep.subr.mxu0 %v11599_v42  ;;  %9111 = vmatprep.subr.mxu1 %v11599_v42 }
0x2c5a   :  { %9083 = vmatpush3.msra.mxu0 %v11202_v46  ;;  %9112 = vmatpush3.msra.mxu1 %v11208_v62 }
0x2c5b   :  { %9084 = vmatprep.subr.mxu0 %v11599_v42  ;;  %9113 = vmatprep.subr.mxu1 %v11599_v42 }
0x2c5c   :  { %9085 = vmatpush3.msra.mxu0 %v11216_v33  ;;  %9114 = vmatpush3.msra.mxu1 %v11222_v60 }
0x2c5d   :  { %9086 = vmatprep.subr.mxu0 %v11599_v42  ;;  %9115 = vmatprep.subr.mxu1 %v11599_v42 }
0x2c5e   :  { %9087 = vmatpush3.msra.mxu0 %v11230_v38  ;;  %9116 = vmatpush3.msra.mxu1 %v11236_v56 }
0x2c5f   :  { %9088 = vmatprep.subr.mxu0 %v11599_v42  ;;  %9117 = vmatprep.subr.mxu1 %v11599_v42 }
0x2c60   :  { %9089 = vmatpush3.msra.mxu0 %v11244_v45  ;;  %9118 = vmatpush3.msra.mxu1 %v11250_v28 }
0x2c61   :  { %9090 = vmatprep.subr.mxu0 %v11599_v42  ;;  %9119 = vmatprep.subr.mxu1 %v11599_v42 }
0x2c62   :  { %9091 = vmatpush3.msra.mxu0 %v11258_v47  ;;  %9120 = vmatpush3.msra.mxu1 %v11264_v52 }
0x2c63   :  { %9092 = vmatprep.subr.mxu0 %v11599_v42  ;;  %9121 = vmatprep.mubr.msk.f32.mxu1 %vm9640_vm0, %v11599_v42 }
0x2c64   :  { %9093 = vmatpush3.msra.mxu0 %v11273_v15  ;;  %9124 = vmatprep.subr.mxu1 %v11599_v42 }
0x2c65   :  { %9094 = vmatprep.subr.mxu0 %v11599_v42  ;;  %6687 = vrot.lane.b32.xlu1 %v6686_v36, %s9643_s18 }
0x2c66   :  { %9095 = vmatpush3.msra.mxu0 %v11281_v51 }
0x2c67   :  { %9096 = vmatprep.subr.mxu0 %v11599_v42 }
0x2c68   :  { %9097 = vmatpush3.msra.mxu0 %v11288_v14 }
0x2c69   :  { %9098 = vmatprep.subr.mxu0 %v11599_v42 }
0x2c6a   :  { %9099 = vmatpush3.msra.mxu0 %v11295_v44 }
0x2c6b   :  { %9100 = vmatprep.subr.mxu0 %v11599_v42 }
0x2c6c   :  { %9101 = vmatpush3.msra.mxu0 %v11302_v29 }
0x2c6d   :  { %9139 = vmatprep.subr.mxu0 %v11599_v42 }
0x2cd7   :  { %v6688_v35 = vpop.permute.xlu1 %6687 }
0x2d0d   :  { %v6444_v4 = vpop.f32.mrf.mxu0 }
0x2d0f   :  { %v9058_v6 = vpop.f32.mrf.mxu0  ;;  %v6517_v8 = vpop.f32.mrf.mxu1 }
0x2d10   :  { %v6671_v11 = vrot.slane %v6517_v8, 7 }
0x2d11   :  { %v9063_v16 = vpop.f32.mrf.mxu1  ;;  %v6590_v17 = vpop.f32.mrf.mxu0 }
0x2d12   :  { %v6672_v48 = vsel %vm605_vm1, %v6671_v11, %v6444_v4  ;;  %v6673_v23 = vrot.slane %v6590_v17, 6 }
0x2d13   :  { %v9068_v58 = vpop.f32.mrf.mxu0  ;;  %v6663_v21 = vpop.f32.mrf.mxu1 }
0x2d14   :  { %v6675_v22 = vrot.slane %v6663_v21, 5  ;;  %v6674_v39 = vsel %vm608_vm2, %v6673_v23, %v6672_v48 }
0x2d15   :  { %v9073_v20 = vpop.f32.mrf.mxu1 }
0x2d16   :  { %v6676_v13 = vsel %vm611_vm3, %v6675_v22, %v6674_v39 }
0x2d17   :  { %6677 = vrot.lane.b32.xlu0 %v6676_v13, %s9642_s17 }
0x2d1b   :  { %6690 = vrot.lane.b32.xlu0 %v11060_v26, %s9642_s17 }
0x2d89   :  { %v6678_v61 = vpop.permute.xlu0 %6677 }
0x2d8a   :  { %v6693_v55 = vsel %vm797_vm8, %v11122_v18, %v6678_v61  ;;  %v11333_v18 = vld [vmem:[%s11568_s8] ss:$0 sm:$0xff] }
0x2d8b   :  { %v6694_v27 = vsel %vm799_vm9, %v6693_v55, %v6688_v35 }
0x2d8d   :  { %v6691_v31 = vpop.permute.xlu0 %6690 }
0x2d8e   :  { %v6695_v1 = vsel %vm801_vm10, %v6694_v27, %v6691_v31 }
0x2d8f   :  { %9103 = vmatmul.mubr.msk.f32.vlgmr.msra.gmra.mxu0 %vm803_vm11, %v6695_v1 }
0x2d90   :  { %9140 = vmatpush3.xpose.msk.msra.mxu0 %vm169_vm6, %v10113_v63  ;;  %9141 = vmatprep.mubr.msk.f32.mxu0 %vm9640_vm0, %v11599_v42 }
0x2d91   :  { %9149 = vmatprep.subr.mxu0 %v11599_v42 }
0x2e4f   :  { %v6765_v26 = vpop.f32.mrf.mxu0 }
0x2e50   :  { %v6766_v2 = vadd.f32 %v11333_v18, %v6765_v26 }
0x2e51   :  { %v9104_v53 = vpop.f32.mrf.mxu0 }
0x2e52   :  { %9352 = vtanh.f32 %v6766_v2  ;;  %v8094_v4 = vmul.f32 -1.442695, %v6766_v2 }
0x2e54   :  { %9354 = vpow2.f32 %v8094_v4 }
0x2e5f   :  { %v9353_v36 = vpop.eup %9352 }
0x2e60   :  { %6778 = vrot.lane.b32.xlu0 %v9353_v36, %s9644_s22 }
0x2e61   :  { %v9355_v63 = vpop.eup %9354 }
0x2e62   :  { %v6772_v6 = vadd.f32 1.0, %v9355_v63 }
0x2e64   :  { %9356 = vrcp.f32 %v6772_v6 }
0x2e71   :  { %v9357_v8 = vpop.eup %9356 }
0x2e72   :  { %v6776_v17 = vmul.f32 %v9357_v8, %v11055_v10 }
0x2ed2   :  { %v6779_v11 = vpop.permute.xlu0 %6778 }
0x2ed3   :  { %v6781_v16 = vmul.f32 %v9357_v8, %v6779_v11 }
0x2ed5   :  { %6783 = vrot.lane.b32.xlu0 %v6781_v16, %s9644_s22 }
0x2f47   :  { %v6784_v48 = vpop.permute.xlu0 %6783 }
0x2f48   :  { %v11339_v23 = vadd.f32 %v6784_v48, %v6776_v17  ;;  %v11405_v48 = vld [vmem:[#allocation5 + $0x8] sm:$0xff] }
0x2f4a   :  { %9358 = vtanh.f32 %v11339_v23 }
0x2f57   :  { %v9359_v58 = vpop.eup %9358 }
0x2f58   :  { %6789 = vrot.lane.b32.xlu0 %v9359_v58, %s9644_s22 }
0x2f5c   :  { %6797 = vrot.lane.b32.xlu0 %v6676_v13, %s9644_s22 }
0x2fca   :  { %v6790_v21 = vpop.permute.xlu0 %6789 }
0x2fcb   :  { %v11344_v22 = vmul.f32 %v9357_v8, %v6790_v21 }
0x2fcd   :  { %v6959_v39 = vrot.slane %v11344_v22, %v9766_v7  ;;  %6794 = vrot.lane.b32.xlu1 %v11344_v22, %s9645_s2 }
0x2fce   :  { %v6798_v26 = vpop.permute.xlu0 %6797 }
0x2fcf   :  { %v6960_v10 = vcombine.high %v6959_v39, %v6959_v39  ;;  %v6967_v20 = vrot.slane %v6959_v39, %v9766_v7 }
0x2fd1   :  { %v6974_v61 = vrot.slane %v6960_v10, %v9766_v7  ;;  %v6980_v55 = vrot.slane %v6967_v20, %v10052_v25  ;;  %v6975_v35 = vcombine.high %v6967_v20, %v6967_v20 }
0x2fd3   :  { %6981 = vrot.lane.b32.xlu0 %v6980_v55, %s9645_s2  ;;  %v7058_v13 = vrot.slane %v6974_v61, %v10052_v25  ;;  %v7136_v27 = vrot.slane %v6975_v35, %v10052_v25  ;;  %v6976_v31 = vcombine.high %v6974_v61, %v6974_v61 }
0x2fd5   :  { %v7214_v1 = vrot.slane %v6976_v31, %v10052_v25 }
0x2fd7   :  { %7059 = vrot.lane.b32.xlu0 %v7058_v13, %s9645_s2 }
0x2fdb   :  { %7137 = vrot.lane.b32.xlu0 %v7136_v27, %s9645_s2 }
0x2fdf   :  { %7215 = vrot.lane.b32.xlu0 %v7214_v1, %s9645_s2 }
0x303f   :  { %v6795_v7 = vpop.permute.xlu1 %6794 }
0x3040   :  { %v11361_v2 = vsel %vm169_vm6, %v6795_v7, %v6798_v26 }
0x3041   :  { %9122 = vmatmul.mubr.msk.f32.vlgmr.msra.gmra.mxu1 %vm909_vm12, %v11361_v2 }
0x3042   :  { %9125 = vmatpush3.msra.mxu1 %v11081_v49  ;;  %9126 = vmatprep.mubr.msk.f32.mxu1 %vm9640_vm0, %v11599_v42  ;;  %v11377_v49 = vld [vmem:[%s11570_s10] ss:$0 sm:$0xff]  ;;  %s9646_s10 = smov 24  }
0x3043   :  { %9129 = vmatprep.subr.mxu1 %v11599_v42 }
0x3045   :  { %v6982_v53 = vpop.permute.xlu0 %6981 }
0x3049   :  { %v7060_v36 = vpop.permute.xlu0 %7059 }
0x304d   :  { %v7138_v25 = vpop.permute.xlu0 %7137 }
0x304e   :  { %9142 = vmatmul.mubr.msk.f32.vlgmr.msra.gmra.mxu0 %vm169_vm6, %v7138_v25 }
0x304f   :  { %9150 = vmatpush3.msra.mxu0 %v10915_v41  ;;  %9151 = vmatprep.mubr.msk.f32.mxu0 %vm9640_vm0, %v11599_v42 }
0x3050   :  { %9159 = vmatprep.subr.mxu0 %v11599_v42 }
0x3101   :  { %v6870_v4 = vpop.f32.mrf.mxu1 }
0x3102   :  { %v11380_v63 = vadd.f32 %v11377_v49, %v6870_v4 }
0x3103   :  { %v9123_v6 = vpop.f32.mrf.mxu1 }
0x3104   :  { %v6874_v8 = vsel %vm268_vm5, %v11380_v63, -inf }
0x3105   :  { %6875 = vmax.xlane.f32.xlu1 %v6874_v8 }
0x310e   :  { %v7207_v41 = vpop.f32.mrf.mxu0 }
0x310f   :  { %v7291_v20 = vadd.f32 %v7207_v41, %v10144_v37 }
0x3110   :  { %v9143_v11 = vpop.f32.mrf.mxu0 }
0x3111   :  { %v7299_v1 = vrot.slane %v7291_v20, 6 }
0x318e   :  { %v6876_v16 = vpop.xlane.xlu1 %6875 }
0x318f   :  { %vm6877_vm15 = vcmp.eq.f32.partialorder %v11380_v63, %v6876_v16 }
0x3190   :  { %v8096_v17 = vsel %vm6877_vm15, 1.0, %v11599_v42 }
0x3191   :  { %9127 = vmatmul.mubr.msk.f32.vlgmr.msra.gmra.mxu1 %vm298_vm4, %v8096_v17 }
0x3192   :  { %9130 = vmatpush3.xpose.msk.msra.mxu1 %vm169_vm6, %v10094_v50  ;;  %9131 = vmatprep.mubr.msk.f32.mxu1 %vm9640_vm0, %v11599_v42  ;;  %v7216_v50 = vpop.permute.xlu0 %7215 }
0x3193   :  { %9134 = vmatprep.subr.mxu1 %v11599_v42 }
0x3195   :  { %9132 = vmatmul.mubr.msk.f32.vlgmr.msra.gmra.mxu1 %vm169_vm6, %v6982_v53 }
0x3196   :  { %9135 = vmatpush3.xpose.msk.msra.mxu1 %vm169_vm6, %v10104_v54  ;;  %9136 = vmatprep.mubr.msk.f32.mxu1 %vm9640_vm0, %v11599_v42 }
0x3197   :  { %9144 = vmatprep.subr.mxu1 %v11599_v42 }
0x3199   :  { %9137 = vmatmul.mubr.msk.f32.vlgmr.msra.gmra.mxu1 %vm169_vm6, %v7060_v36 }
0x319a   :  { %9145 = vmatpush3.xpose.msk.msra.mxu1 %vm169_vm6, %v10122_v32  ;;  %9146 = vmatprep.mubr.msk.f32.mxu1 %vm9640_vm0, %v11599_v42 }
0x319b   :  { %9154 = vmatprep.subr.mxu1 %v11599_v42 }
0x319d   :  { %9147 = vmatmul.mubr.msk.f32.vlgmr.msra.gmra.mxu1 %vm169_vm6, %v7216_v50 }
0x319e   :  { %9155 = vmatpush3.msra.mxu1 %v11405_v48  ;;  %9156 = vmatprep.mubr.msk.f32.mxu1 %vm9640_vm0, %v11599_v42 }
0x319f   :  { %9164 = vmatprep.subr.mxu1 %v11599_v42 }
0x3251   :  { %v11411_v54 = vpop.f32.mrf.mxu1 }
0x3253   :  { %v9128_v32 = vpop.f32.mrf.mxu1 }
0x3255   :  { %v7051_v58 = vpop.f32.mrf.mxu1 }
0x3256   :  { %v7289_v55 = vadd.f32 %v7051_v58, %v10138_v30 }
0x3257   :  { %v9133_v21 = vpop.f32.mrf.mxu1 }
0x3259   :  { %v7129_v39 = vpop.f32.mrf.mxu1 }
0x325a   :  { %v7290_v10 = vadd.f32 %v7129_v39, %v10141_v5 }
0x325b   :  { %v9138_v61 = vpop.f32.mrf.mxu1 }
0x325c   :  { %v7297_v35 = vrot.slane %v7290_v10, 7 }
0x325d   :  { %v7285_v13 = vpop.f32.mrf.mxu1 }
0x325e   :  { %v7298_v27 = vsel %vm605_vm1, %v7297_v35, %v7289_v55  ;;  %v7292_v31 = vadd.f32 %v7285_v13, %v11609_v57 }
0x325f   :  { %v9148_v26 = vpop.f32.mrf.mxu1  ;;  %v7300_v53 = vsel %vm608_vm2, %v7299_v1, %v7298_v27 }
0x3260   :  { %v7301_v7 = vrot.slane %v7292_v31, 5 }
0x3262   :  { %v7302_v36 = vsel %vm611_vm3, %v7301_v7, %v7300_v53 }
0x3263   :  { %v7304_v5 = vsel %vm268_vm5, %v7302_v36, -inf }
0x3264   :  { %7305 = vmax.xlane.f32.xlu0 %v7304_v5 }
0x32ed   :  { %v7306_v37 = vpop.xlane.xlu0 %7305 }
0x32ee   :  { %v7308_v25 = vrot.slane %v7306_v37, 1  ;;  %v7309_v4 = vrot.slane %v7306_v37, 2  ;;  %v7310_v30 = vrot.slane %v7306_v37, 3  ;;  %v7315_v6 = vsub.f32 %v7289_v55, %v7306_v37  ;;  %v11426_v37 = vld [vmem:[#allocation5 + $0x10] sm:$0xff] }
0x32f0   :  { %v7316_v8 = vsub.f32 %v7290_v10, %v7308_v25  ;;  %v7317_v41 = vsub.f32 %v7291_v20, %v7309_v4  ;;  %v7318_v11 = vsub.f32 %v7292_v31, %v7310_v30  ;;  %v7319_v16 = vmul.f32 1.442695, %v7315_v6 }
0x32f2   :  { %v7321_v57 = vmul.f32 1.442695, %v7316_v8  ;;  %v7323_v17 = vmul.f32 1.442695, %v7317_v41  ;;  %v7325_v50 = vmul.f32 1.442695, %v7318_v11  ;;  %9360 = vpow2.f32 %v7319_v16 }
0x32f4   :  { %9362 = vpow2.f32 %v7321_v57 }
0x32f5   :  { %9364 = vpow2.f32 %v7323_v17 }
0x32f6   :  { %9366 = vpow2.f32 %v7325_v50 }
0x32ff   :  { %v9361_v32 = vpop.eup %9360 }
0x3301   :  { %v9363_v58 = vpop.eup %9362 }
0x3302   :  { %v9365_v21 = vpop.eup %9364  ;;  %v7331_v39 = vrot.slane %v9363_v58, 7 }
0x3303   :  { %v9367_v61 = vpop.eup %9366  ;;  %v7333_v35 = vrot.slane %v9365_v21, 6 }
0x3304   :  { %v7332_v13 = vsel %vm605_vm1, %v7331_v39, %v9361_v32  ;;  %v7335_v55 = vrot.slane %v9367_v61, 5 }
0x3305   :  { %v7334_v10 = vsel %vm608_vm2, %v7333_v35, %v7332_v13  ;;  %v11610_v35 = vld [vmem:[#allocation30_spill] sm:$0xff] }
0x3306   :  { %v7336_v20 = vsel %vm611_vm3, %v7335_v55, %v7334_v10  ;;  %v11611_v13 = vld [vmem:[#allocation34_spill] sm:$0xff]  ;;  %v11612_v55 = vld [vmem:[#allocation31_spill] sm:$0xff] }
0x3307   :  { %v7338_v27 = vsel %vm268_vm5, %v7336_v20, 0.0  ;;  %v11613_v20 = vld [vmem:[#allocation28_spill] sm:$0xff] }
0x3308   :  { %7339 = vadd.xlane.f32.xlu1 %v7338_v27  ;;  %v11614_v27 = vld [vmem:[#allocation32_spill] sm:$0xff] }
0x3391   :  { %v7340_v31 = vpop.xlane.xlu1 %7339 }
0x3392   :  { %9368 = vrcp.f32 %v7340_v31  ;;  %v11615_v31 = vld [vmem:[#allocation27_spill] sm:$0xff] }
0x339f   :  { %v9369_v1 = vpop.eup %9368 }
0x33a0   :  { %v7350_v26 = vmul.f32 %v9369_v1, %v9361_v32  ;;  %v7343_v7 = vrot.slane %v9369_v1, 1  ;;  %v7344_v53 = vrot.slane %v9369_v1, 2  ;;  %v7345_v5 = vrot.slane %v9369_v1, 3 }
0x33a2   :  { %9152 = vmatmul.mubr.msk.f32.vlgmr.msra.gmra.mxu0 %vm298_vm4, %v7350_v26  ;;  %v7351_v36 = vmul.f32 %v9363_v58, %v7343_v7  ;;  %v7352_v25 = vmul.f32 %v9365_v21, %v7344_v53  ;;  %v7353_v4 = vmul.f32 %v9367_v61, %v7345_v5 }
0x33a3   :  { %9160 = vmatpush3.msra.mxu0 %v11426_v37  ;;  %9161 = vmatprep.mubr.msk.f32.mxu0 %vm9640_vm0, %v11599_v42 }
0x33a4   :  { %9157 = vmatmul.mubr.msk.f32.vlgmr.msra.gmra.mxu1 %vm298_vm4, %v7351_v36  ;;  %9169 = vmatprep.subr.mxu0 %v11599_v42 }
0x33a5   :  { %9165 = vmatpush3.msra.mxu1 %v10971_v59  ;;  %9166 = vmatprep.mubr.msk.f32.mxu1 %vm9640_vm0, %v11599_v42 }
0x33a6   :  { %9162 = vmatmul.mubr.msk.f32.vlgmr.msra.gmra.mxu0 %vm298_vm4, %v7352_v25  ;;  %9200 = vmatprep.subr.mxu1 %v11599_v42 }
0x33a7   :  { %9170 = vmatpush3.msra.mxu0 %v11150_v0  ;;  %9197 = vmatprep.mubr.msk.f32.mxu0 %vm9640_vm0, %v11599_v42  ;;  %v9438_v0 = vld [vmem:[#allocation5] sm:$0xff] }
0x33a8   :  { %9167 = vmatmul.mubr.msk.f32.vlgmr.msra.gmra.mxu1 %vm298_vm4, %v7353_v4  ;;  %9171 = vmatprep.subr.mxu0 %v11599_v42 }
0x33a9   :  { %9172 = vmatpush3.msra.mxu0 %v11160_v43  ;;  %9201 = vmatpush3.msra.mxu1 %v11166_v34  ;;  %v7659_v43 = vrot.slane %v9438_v0, 7  ;;  %v7660_v34 = vrot.slane %v11405_v48, 6 }
0x33aa   :  { %9173 = vmatprep.subr.mxu0 %v11599_v42  ;;  %9202 = vmatprep.subr.mxu1 %v11599_v42 }
0x33ab   :  { %9174 = vmatpush3.msra.mxu0 %v11174_v19  ;;  %9203 = vmatpush3.msra.mxu1 %v11180_v24  ;;  %v7662_v19 = vrot.slane %v11426_v37, 5  ;;  %v7661_v24 = vsel %vm605_vm1, %v7660_v34, %v7659_v43  ;;  %v11617_v37 = vld [vmem:[#allocation25_spill] sm:$0xff] }
0x33ac   :  { %9175 = vmatprep.subr.mxu0 %v11599_v42  ;;  %9204 = vmatprep.subr.mxu1 %v11599_v42  ;;  %v11618_v34 = vld [vmem:[#allocation29_spill] sm:$0xff] }
0x33ad   :  { %9176 = vmatpush3.msra.mxu0 %v11188_v12  ;;  %9205 = vmatpush3.msra.mxu1 %v11194_v9  ;;  %v7664_v12 = vrot.slane %v10971_v59, 4  ;;  %v7663_v9 = vsel %vm608_vm2, %v7662_v19, %v7661_v24  ;;  %v11619_v24 = vld [vmem:[#allocation24_spill] sm:$0xff] }
0x33ae   :  { %9177 = vmatprep.subr.mxu0 %v11599_v42  ;;  %9206 = vmatprep.subr.mxu1 %v11599_v42 }
0x33af   :  { %9178 = vmatpush3.msra.mxu0 %v11202_v46  ;;  %9207 = vmatpush3.msra.mxu1 %v11208_v62  ;;  %v7665_v46 = vsel %vm611_vm3, %v7664_v12, %v7663_v9 }
0x33b0   :  { %9179 = vmatprep.subr.mxu0 %v11599_v42  ;;  %9208 = vmatprep.subr.mxu1 %v11599_v42 }
0x33b1   :  { %9180 = vmatpush3.msra.mxu0 %v11216_v33  ;;  %9209 = vmatpush3.msra.mxu1 %v11222_v60 }
0x33b2   :  { %9181 = vmatprep.subr.mxu0 %v11599_v42  ;;  %9210 = vmatprep.subr.mxu1 %v11599_v42 }
0x33b3   :  { %9182 = vmatpush3.msra.mxu0 %v11230_v38  ;;  %9211 = vmatpush3.msra.mxu1 %v11236_v56 }
0x33b4   :  { %9183 = vmatprep.subr.mxu0 %v11599_v42  ;;  %9212 = vmatprep.subr.mxu1 %v11599_v42 }
0x33b5   :  { %9184 = vmatpush3.msra.mxu0 %v11244_v45  ;;  %9213 = vmatpush3.msra.mxu1 %v11250_v28 }
0x33b6   :  { %9185 = vmatprep.subr.mxu0 %v11599_v42  ;;  %9214 = vmatprep.subr.mxu1 %v11599_v42 }
0x33b7   :  { %9186 = vmatpush3.msra.mxu0 %v11258_v47  ;;  %9215 = vmatpush3.msra.mxu1 %v11264_v52 }
0x33b8   :  { %9187 = vmatprep.subr.mxu0 %v11599_v42  ;;  %9216 = vmatprep.mubr.msk.f32.mxu1 %vm9640_vm0, %v11599_v42  ;;  %vm7909_vm0 = vcmask 195584  }
0x33b9   :  { %9188 = vmatpush3.msra.mxu0 %v11273_v15  ;;  %7666 = vrot.lane.b32.xlu0 %v7665_v46, %s9643_s18 }
0x33ba   :  { %9189 = vmatprep.subr.mxu0 %v11599_v42 }
0x33bb   :  { %9190 = vmatpush3.msra.mxu0 %v11281_v51 }
0x33bc   :  { %9191 = vmatprep.subr.mxu0 %v11599_v42 }
0x33bd   :  { %9192 = vmatpush3.msra.mxu0 %v11288_v14 }
0x33be   :  { %9193 = vmatprep.subr.mxu0 %v11599_v42 }
0x33bf   :  { %9194 = vmatpush3.msra.mxu0 %v11295_v44 }
0x33c0   :  { %9195 = vmatprep.subr.mxu0 %v11599_v42 }
0x33c1   :  { %9196 = vmatpush3.msra.mxu0 %v11302_v29 }
0x342b   :  { %v7667_v48 = vpop.permute.xlu0 %7666 }
0x3462   :  { %v7423_v62 = vpop.f32.mrf.mxu0 }
0x3464   :  { %v9153_v42 = vpop.f32.mrf.mxu0  ;;  %v7496_v33 = vpop.f32.mrf.mxu1 }
0x3465   :  { %v7650_v60 = vrot.slane %v7496_v33, 7 }
0x3466   :  { %v9158_v38 = vpop.f32.mrf.mxu1  ;;  %v7569_v56 = vpop.f32.mrf.mxu0 }
0x3467   :  { %v7651_v45 = vsel %vm605_vm1, %v7650_v60, %v7423_v62  ;;  %v7652_v28 = vrot.slane %v7569_v56, 6  ;;  %vm7912_vm1 = vcmask 326656  }
0x3468   :  { %v9163_v47 = vpop.f32.mrf.mxu0  ;;  %v7642_v52 = vpop.f32.mrf.mxu1 }
0x3469   :  { %v7653_v15 = vsel %vm608_vm2, %v7652_v28, %v7651_v45  ;;  %v7654_v59 = vrot.slane %v7642_v52, 5  ;;  %vm617_vm2 = vcmask 519168   ;;  %v11620_v28 = vld [vmem:[#allocation33_spill] sm:$0xff] }
0x346a   :  { %v9168_v51 = vpop.f32.mrf.mxu1 }
0x346b   :  { %v7655_v14 = vsel %vm611_vm3, %v7654_v59, %v7653_v15 }
0x346c   :  { %7656 = vrot.lane.b32.xlu1 %v7655_v14, %s9642_s17 }
0x3470   :  { %7669 = vrot.lane.b32.xlu1 %v11344_v22, %s9642_s17 }
0x34de   :  { %v7657_v44 = vpop.permute.xlu1 %7656 }
0x34df   :  { %v7672_v29 = vsel %vm797_vm8, %v11411_v54, %v7657_v44 }
0x34e0   :  { %v7673_v30 = vsel %vm799_vm9, %v7672_v29, %v7667_v48 }
0x34e2   :  { %v7670_v6 = vpop.permute.xlu1 %7669 }
0x34e3   :  { %v7674_v8 = vsel %vm801_vm10, %v7673_v30, %v7670_v6 }
0x34e4   :  { %9198 = vmatmul.mubr.msk.f32.vlgmr.msra.gmra.mxu0 %vm803_vm11, %v7674_v8 }
0x35a4   :  { %v7744_v41 = vpop.f32.mrf.mxu0 }
0x35a5   :  { %v7745_v11 = vadd.f32 %v11333_v18, %v7744_v41 }
0x35a6   :  { %v9199_v16 = vpop.f32.mrf.mxu0 }
0x35a7   :  { %9370 = vtanh.f32 %v7745_v11  ;;  %v8111_v22 = vmul.f32 -1.442695, %v7745_v11 }
0x35a9   :  { %9372 = vpow2.f32 %v8111_v22 }
0x35b4   :  { %v9371_v57 = vpop.eup %9370 }
0x35b5   :  { %7757 = vrot.lane.b32.xlu1 %v9371_v57, %s9644_s22 }
0x35b6   :  { %v9373_v17 = vpop.eup %9372 }
0x35b7   :  { %v7751_v54 = vadd.f32 1.0, %v9373_v17 }
0x35b9   :  { %9374 = vrcp.f32 %v7751_v54 }
0x35c6   :  { %v9375_v50 = vpop.eup %9374 }
0x35c7   :  { %v7755_v21 = vmul.f32 %v9375_v50, %v11339_v23 }
0x3627   :  { %v7758_v32 = vpop.permute.xlu1 %7757 }
0x3628   :  { %v7760_v58 = vmul.f32 %v9375_v50, %v7758_v32 }
0x362a   :  { %7762 = vrot.lane.b32.xlu1 %v7760_v58, %s9644_s22 }
0x369c   :  { %v7763_v39 = vpop.permute.xlu1 %7762 }
0x369d   :  { %v7765_v61 = vadd.f32 %v7763_v39, %v7755_v21 }
0x369f   :  { %9376 = vtanh.f32 %v7765_v61 }
0x36ac   :  { %v9377_v18 = vpop.eup %9376 }
0x36ad   :  { %7768 = vrot.lane.b32.xlu1 %v9377_v18, %s9644_s22 }
0x36b1   :  { %7776 = vrot.lane.b32.xlu1 %v7655_v14, %s9644_s22 }
0x36b5   :  { %7884 = vrot.lane.b32.xlu1 %v11610_v35, %s9642_s17  ;;  %s9647_s17 = smov 40  }
0x36b9   :  { %7892 = vrot.lane.b32.xlu1 %v11611_v13, %s9644_s22 }
0x36bd   :  { %7856 = vrot.lane.b32.xlu1 %v11612_v55, %s9645_s2 }
0x36c1   :  { %7900 = vrot.lane.b32.xlu1 %v11380_v63, %s9643_s18  ;;  %v11616_v63 = vld [vmem:[#allocation23_spill] sm:$0xff] }
0x371f   :  { %v7769_v23 = vpop.permute.xlu1 %7768 }
0x3720   :  { %v7771_v10 = vmul.f32 %v9375_v50, %v7769_v23 }
0x3722   :  { %7773 = vrot.lane.b32.xlu0 %v7771_v10, %s9645_s2 }
0x3723   :  { %v7777_v1 = vpop.permute.xlu1 %7776 }
0x3726   :  { %7880 = vrot.lane.b32.xlu0 %v11613_v20, %s9633_s25  ;;  %s9648_s25 = smov [#allocation12]  }
0x3727   :  { %v7885_v26 = vpop.permute.xlu1 %7884  ;;  %s7934_s18 = sshll.u32 %s9648_s25, 4  ;;  %s7935_s18 = int_to_ptr.vmem [resolvable:$true] %s7934_s18 }
0x3728   :  { %s9539_s28 = scalar_lea.vmem %s7935_s18, 64  ;;  %p9544_p12 = scmp.lt.s32.totalorder %s7935_s18, %s7935_s18 }
0x3729   :  { %p9540_p11 = scmp.ne.s32.totalorder %s7935_s18, %s9539_s28  ;;  %p9545_p13 = scmp.lt.s32.totalorder %s9539_s28, %s9539_s28 }
0x372a   :  { %7888 = vrot.lane.b32.xlu0 %v11614_v27, %s9646_s10 }
0x372b   :  { %v7893_v36 = vpop.permute.xlu1 %7892  ;;  %p9546_p0 = por %p9545_p13, %p9544_p12 }
0x372d   :  { %p9547_p1 = pnand %p9546_p0, %p9540_p11 }
0x372e   :  { %7853 = vrot.lane.b32.xlu0 %v11615_v31, %s9645_s2 }
0x372f   :  { %v7857_v0 = vpop.permute.xlu1 %7856 }
0x3730   :  { %v7866_v19 = vsel %vm909_vm12, %v11618_v34, %v7857_v0 }
0x3732   :  { %7859 = vrot.lane.b32.xlu0 %v11077_v40, %s9645_s2 }
0x3733   :  { %v7901_v56 = vpop.permute.xlu1 %7900 }
0x3736   :  { %7896 = vrot.lane.b32.xlu0 %v11093_v3, %s9647_s17 }
0x373a   :  { %613 = vrot.lane.b32.xlu0 %v11616_v63, %s9644_s22  ;;  %s9649_s22 = smov [#allocation11]  }
0x3794   :  { %v7774_v7 = vpop.permute.xlu0 %7773 }
0x3795   :  { %v7779_v53 = vsel %vm169_vm6, %v7774_v7, %v7777_v1 }
0x3796   :  { %7862 = vrot.lane.b32.xlu1 %v7779_v53, %s9645_s2  ;;  %9217 = vmatmul.mubr.msk.f32.vlgmr.msra.gmra.mxu1 %vm909_vm12, %v7779_v53  ;;  %s7924_s2 = sshll.u32 %s9649_s22, 4  ;;  %s7925_s2 = int_to_ptr.vmem [resolvable:$true] %s7924_s2 }
0x3798   :  { %v7881_v5 = vpop.permute.xlu0 %7880 }
0x3799   :  { %v7907_v40 = vsel %vm298_vm4, %v11617_v37, %v7881_v5 }
0x379a   :  { %v7908_v3 = vsel %vm797_vm8, %v7907_v40, %v7885_v26 }
0x379c   :  { %v7889_v25 = vpop.permute.xlu0 %7888 }
0x379d   :  { %v7910_v4 = vsel %vm7909_vm0, %v7908_v3, %v7889_v25 }
0x379e   :  { %v7911_v42 = vsel %vm169_vm6, %v7910_v4, %v7893_v36 }
0x37a0   :  { %v7854_v43 = vpop.permute.xlu0 %7853 }
0x37a1   :  { %v7865_v12 = vsel %vm909_vm12, %v11619_v24, %v7854_v43 }
0x37a2   :  { %v7873_v9 = vcombine.low %v7865_v12, %v7866_v19 }
0x37a4   :  { %7877 = vst [vmem:[#allocation15] sm:$0xff] %v7873_v9  ;;  %v7860_v46 = vpop.permute.xlu0 %7859 }
0x37a5   :  { %v7867_v47 = vsel %vm909_vm12, %v11620_v28, %v7860_v46 }
0x37a8   :  { %v7897_v62 = vpop.permute.xlu0 %7896 }
0x37a9   :  { %v7913_v33 = vsel %vm7912_vm1, %v7911_v42, %v7897_v62 }
0x37ac   :  { %v614_v60 = vpop.permute.xlu0 %613 }
0x37ad   :  { %v616_v38 = vsel %vm169_vm6, 0.0, %v614_v60 }
0x37ae   :  { %618 = vst.msk [vmem:[#allocation11] sm:$0xf] %vm617_vm2, %v616_v38 }
0x3808   :  { %v7863_v45 = vpop.permute.xlu1 %7862 }
0x3809   :  { %v7868_v52 = vsel %vm909_vm12, %v11361_v2, %v7863_v45 }
0x380a   :  { %v7874_v15 = vcombine.low %v7867_v47, %v7868_v52 }
0x380c   :  { %7878 = vst [vmem:[#allocation15 + $0x8] sm:$0xff] %v7874_v15 }
0x380d   :  { %9550 = shalt.err (!%p9547_p1)
}
0x380e   :  { %7937 = dma.vmem_to_hbm [thread:$0]  %s7935_s18, 64, %s11574_s14, [#allocation13]  }
0x380f   :  { %s9559_s30 = scalar_lea.vmem %s7925_s2, 64  ;;  %p9564_p3 = scmp.lt.s32.totalorder %s7925_s2, %s7925_s2 }
0x3810   :  { %p9560_p2 = scmp.ne.s32.totalorder %s7925_s2, %s9559_s30  ;;  %p9565_p4 = scmp.lt.s32.totalorder %s9559_s30, %s9559_s30 }
0x3812   :  { %p9566_p5 = por %p9565_p4, %p9564_p3 }
0x3814   :  { %p9567_p6 = pnand %p9566_p5, %p9560_p2 }
0x3816   :  { %9570 = shalt.err (!%p9567_p6)
}
0x3817   :  { %7927 = dma.vmem_to_hbm [thread:$0]  %s7925_s2, 64, %s11573_s13, [#allocation4]  }
0x3818   :  { %s9650_s3 = smov [#allocation15]  }
0x3819   :  { %s7954_s5 = sshll.u32 %s9650_s3, 4  ;;  %s7955_s5 = int_to_ptr.vmem [resolvable:$true] %s7954_s5 }
0x381a   :  { %s9579_s24 = scalar_lea.vmem %s7955_s5, 256  ;;  %p9584_p8 = scmp.lt.s32.totalorder %s7955_s5, %s7955_s5 }
0x381b   :  { %p9580_p7 = scmp.ne.s32.totalorder %s7955_s5, %s9579_s24  ;;  %p9585_p9 = scmp.lt.s32.totalorder %s9579_s24, %s9579_s24 }
0x381d   :  { %p9586_p10 = por %p9585_p9, %p9584_p8 }
0x381f   :  { %p9587_p11 = pnand %p9586_p10, %p9580_p7 }
0x3821   :  { %9590 = shalt.err (!%p9587_p11)
}
0x3822   :  { %7957 = dma.vmem_to_hbm [thread:$0]  %s7955_s5, 256, %s11576_s16, [#allocation16]   ;;  %vm7915_vm3 = vcmask 457728   ;;  %v7914_v14 = vsel %vm799_vm9, %v7913_v33, %v7901_v56 }
0x3823   :  { %s9651_s19 = smov 56   ;;  %s9652_s13 = smov [#allocation14]  }
0x3824   :  { %s7944_s20 = sshll.u32 %s9652_s13, 4  ;;  %s7945_s20 = int_to_ptr.vmem [resolvable:$true] %s7944_s20 }
0x3825   :  { %s9599_s21 = scalar_lea.vmem %s7945_s20, 64  ;;  %p9604_p13 = scmp.lt.s32.totalorder %s7945_s20, %s7945_s20 }
0x3826   :  { %p9600_p12 = scmp.ne.s32.totalorder %s7945_s20, %s9599_s21  ;;  %p9605_p0 = scmp.lt.s32.totalorder %s9599_s21, %s9599_s21 }
0x3828   :  { %p9606_p1 = por %p9605_p0, %p9604_p13 }
0x382a   :  { %p9607_p2 = pnand %p9606_p1, %p9600_p12 }
0x3856   :  { %v7849_v2 = vpop.f32.mrf.mxu1 }
0x3857   :  { %v7850_v59 = vadd.f32 %v11377_v49, %v7849_v2 }
0x3858   :  { %v9218_v51 = vpop.f32.mrf.mxu1 }
0x3859   :  { %7904 = vrot.lane.b32.xlu1 %v7850_v59, %s9651_s19 }
0x38cb   :  { %v7905_v44 = vpop.permute.xlu1 %7904 }
0x38cc   :  { %v7916_v29 = vsel %vm7915_vm3, %v7914_v14, %v7905_v44 }
0x38cd   :  { %7917 = vst.msk [vmem:[#allocation14] sm:$0xf] %vm617_vm2, %v7916_v29 }
0x38ce   :  { %9610 = shalt.err (!%p9607_p2)
}
0x38cf   :  { %7947 = dma.vmem_to_hbm [thread:$0]  %s7945_s20, 64, %s11575_s15, [#allocation13]  }
0x38d0   :  { %9625 = dma.done.wait [#allocation4], 64  }
0x38d1   :  { %9626 = vsyncadd [#allocation4], 4294967232 }
0x38d2   :  { %9627 = dma.done.wait [#allocation13], 128  }
0x38d3   :  { %9628 = vsyncadd [#allocation13], 4294967168 }
0x38d4   :  { %9629 = dma.done.wait [#allocation16], 256  }
0x38d5   :  { %9630 = vsyncadd [#allocation16], 4294967040 }
0x38d6   :  { %7970 = vsyncpa [#allocation3], 1 }
0x38d7   :  { %7971 = vsyncpa [#allocation6], 1 }
0x38d8   :  { %7972 = vsyncpa [#allocation9], 1 }
0x38d9   :  { %7973 = vsyncpa [#allocation4], 1 }
0x38da   :  { %7974 = vsyncpa [#allocation13], 1 }
0x38db   :  { %7975 = vsyncpa [#allocation16], 1 }

</bundles_post_ra>
